<compile_context>
chip_gen: v5e
topology: v5e:2x2
jax: 0.10.0
libtpu: 0.0.40
codegen_flags: <defaults>
</compile_context>

<pallas_src>
import numpy as np
import jax
import jax.numpy as jnp
from jax.experimental import pallas as pl
from jax.experimental.pallas import tpu as pltpu


_INT32_SENTINEL = np.int32(np.iinfo(np.int32).max)


# ---------------------------------------------------------------------------
# Fused Seg_lay kernel: k-NN interpolation + concat + FP MLP stack
# ---------------------------------------------------------------------------
def _make_seg_lay_kernel(k: int, p: float, D: int, Np: int, relu_flags):
    n_layers = len(relu_flags)
    # bits reserved in the packed (distance | column index) word for the index
    nb = max(1, int(np.ceil(np.log2(Np)))) if Np > 1 else 1
    clear_mask = np.int32(-(1 << nb))          # == ~((1 << nb) - 1)

    def kernel(q_ref, tf_ref, pct_ref, pf_ref, *rest):
        wrefs = rest[:-1]
        o_ref = rest[-1]
        assert len(wrefs) == 3 + 2 * (n_layers - 1)

        q = q_ref[...]                           # (tn, D)  f32 query coords
        pct = pct_ref[...]                       # (D, Np)  f32 source coords^T
        tn = q.shape[0]

        # ---- squared pairwise distances (pure VPU; D tiny, unrolled) ----
        d2 = jnp.zeros((tn, Np), jnp.float32)
        for dd in range(D):
            diff = q[:, dd:dd + 1] - pct[dd:dd + 1, :]
            d2 = d2 + diff * diff

        # ---- pack (d2 | column index) into one sortable int32 word ----
        # d2 >= 0 so its f32 bit pattern orders like a non-negative int32; the
        # low `nb` mantissa bits carry the column index (tie-break = lowest
        # index).  min + argmin then cost ONE reduction per neighbour.
        col = jax.lax.broadcasted_iota(jnp.int32, (tn, Np), 1)
        packed = (pltpu.bitcast(d2, jnp.int32) & jnp.int32(clear_mask)) | col

        sentinel = jnp.int32(_INT32_SENTINEL)
        raw_sum = jnp.zeros((tn, 1), jnp.float32)
        wraw = jnp.zeros((tn, Np), jnp.float32)
        for _ in range(k):
            mp = jnp.min(packed, axis=1, keepdims=True)      # single XLU reduce
            onehot = packed == mp                            # exactly one hit/row
            d2min = pltpu.bitcast(mp & jnp.int32(clear_mask), jnp.float32)
            if p == 2.0:
                raw = pl.reciprocal(d2min, approx=True)      # d2^-1 == dist^-2
            else:
                raw = jnp.exp(jnp.log(d2min) * jnp.float32(-0.5 * p))  # dist^-p
            raw_sum = raw_sum + raw
            wraw = wraw + jnp.where(onehot, raw, jnp.float32(0.0))  # no inf*0 leak
            packed = jnp.where(onehot, sentinel, packed)

        # ---- normalize once (hoisted reciprocal); NaN->1 only on selected cols ----
        sel = packed == sentinel                 # selected-column mask, free
        inv = pl.reciprocal(raw_sum, approx=True)
        wn = wraw * inv
        wmat = jnp.where(sel,
                         jnp.where(jnp.isnan(wn), jnp.float32(1.0), wn),
                         jnp.float32(0.0))

        # ---- interpolation: W @ source_features on the MXU (bf16 in, f32 acc) ----
        pf = pf_ref[...].astype(jnp.bfloat16)    # (Np, C_from)
        interp = jnp.dot(wmat.astype(jnp.bfloat16), pf,
                         preferred_element_type=jnp.float32)  # (tn, C_from)

        # ---- fused FP stack; torch.cat == split matmul (BN folded into w/b) ----
        w0a = wrefs[0][...]                      # (C_to,   C0) bf16
        w0b = wrefs[1][...]                      # (C_from, C0) bf16
        b0 = wrefs[2][...]                       # (1, C0)      f32
        x_to = tf_ref[...].astype(jnp.bfloat16)  # (tn, C_to)
        y = (jnp.dot(x_to, w0a, preferred_element_type=jnp.float32)
             + jnp.dot(interp.astype(jnp.bfloat16), w0b,
                       preferred_element_type=jnp.float32)
             + b0)
        if relu_flags[0]:
            y = jnp.maximum(y, jnp.float32(0.0))
        r = 3
        for l in range(1, n_layers):
            w = wrefs[r][...]
            b = wrefs[r + 1][...]
            r += 2
            y = jnp.dot(y.astype(jnp.bfloat16), w,
                        preferred_element_type=jnp.float32) + b
            if relu_flags[l]:
                y = jnp.maximum(y, jnp.float32(0.0))

        o_ref[...] = y.astype(o_ref.dtype)

    return kernel


def _pick_tile_n(N: int, Np: int, vmem_budget_bytes: int = 8 << 20) -> int:
    """Largest row tile dividing N whose (tile, Np) f32 intermediates fit the budget."""
    for t in (512, 256, 128, 64, 32, 16, 8):
        if t <= N and N % t == 0 and t * max(Np, 128) * 4 * 6 <= vmem_budget_bytes:
            return t
    return N


def seg_lay_forward(to_coords, to_features, from_coords, from_features, fp_layers, k, p):
    """One Seg_lay: features <- FP(cat(to_features, k_means(from -> to_coords)))."""
    N, D = to_coords.shape
    Np, C_from = from_features.shape
    C_to = to_features.shape[1]
    kk = int(min(k, Np))
    relu_flags = tuple(bool(l["relu"]) for l in fp_layers)
    C_out = fp_layers[0]["wf"].shape[1] if len(fp_layers) == 1 else fp_layers[-1]["wf"].shape[1]

    # BN already folded into (wf, bf); split layer-0 weights for the concat matmul.
    w0 = fp_layers[0]["wf"]
    weight_args = [w0[:C_to], w0[C_to:], fp_layers[0]["bf"]]
    for lay in fp_layers[1:]:
        weight_args += [lay["wf"], lay["bf"]]

    tile_n = _pick_tile_n(N, Np)
    grid = (N // tile_n,)

    def row_spec(c):
        return pl.BlockSpec((tile_n, c), lambda i: (i, 0))

    def full_spec(shape):
        return pl.BlockSpec(shape, lambda i: (0, 0))

    in_specs = [row_spec(D), row_spec(C_to),
                full_spec((D, Np)), full_spec((Np, C_from))]
    in_specs += [full_spec(tuple(w.shape)) for w in weight_args]

    return pl.pallas_call(
        _make_seg_lay_kernel(kk, float(p), D, Np, relu_flags),
        out_shape=jax.ShapeDtypeStruct((N, C_out), jnp.float32),
        grid=grid,
        in_specs=in_specs,
        out_specs=row_spec(C_out),
        compiler_params=pltpu.CompilerParams(
            dimension_semantics=("parallel",),           # shard rows across TCs (v7x)
            vmem_limit_bytes=32 * 1024 * 1024),
    )(to_coords.astype(jnp.float32),
      to_features.astype(jnp.float32),
      jnp.transpose(from_coords).astype(jnp.float32),
      from_features.astype(jnp.float32),
      *weight_args)


# ---------------------------------------------------------------------------
# Parameter construction (deterministic, eval-mode BN folded into the Linear)
# ---------------------------------------------------------------------------
def init_fp_params(key, inp_dim, L, last):
    layers = []
    n_layer = len(L)
    for i, out_dim in enumerate(L):
        key, k1, k2, k3, k4, k5, k6 = jax.random.split(key, 7)
        w = jax.random.normal(k1, (inp_dim, out_dim), jnp.float32) / np.sqrt(inp_dim)
        b = 0.01 * jax.random.normal(k2, (1, out_dim), jnp.float32)
        has_bn = not (last and i == n_layer - 1)
        if has_bn:
            gamma = 1.0 + 0.1 * jax.random.normal(k3, (1, out_dim), jnp.float32)
            beta = 0.1 * jax.random.normal(k4, (1, out_dim), jnp.float32)
            r_mean = 0.1 * jax.random.normal(k5, (1, out_dim), jnp.float32)
            r_var = 1.0 + 0.1 * jax.random.uniform(k6, (1, out_dim), jnp.float32)
            scale = gamma / jnp.sqrt(r_var + 1e-5)
            shift = beta - r_mean * scale
        else:
            scale = jnp.ones((1, out_dim), jnp.float32)
            shift = jnp.zeros((1, out_dim), jnp.float32)
        wf = (w * scale).astype(jnp.bfloat16)         # BN scale folded; bf16 MXU operand
        bf = (b * scale + shift).astype(jnp.float32)  # BN shift folded into bias
        layers.append(dict(wf=wf, bf=bf, relu=has_bn))
        inp_dim = out_dim
    return layers, key


# ---------------------------------------------------------------------------
# Seg_net forward
# ---------------------------------------------------------------------------
def seg_net_forward(sdp, params, k, p):
    sdp = list(sdp)
    for i, fp_layers in enumerate(params):
        frm = sdp[-1 - i]
        to = sdp[-2 - i]
        feats = seg_lay_forward(to["coords"], to["features"],
                                frm["coords"], frm["features"],
                                fp_layers, k, p)
        sdp[-2 - i] = dict(coords=to["coords"], features=feats)
    return sdp[0]


if __name__ == "__main__":
    key = jax.random.PRNGKey(0)
    k_nn, p_pow = 3, 2.0
    D = 3

    # point hierarchy: sdp[0] finest ... sdp[-1] coarsest
    Ns = [1024, 256, 64]
    Cs = [8, 8, 16]
    sdp = []
    for n, c in zip(Ns, Cs):
        key, kc, kf = jax.random.split(key, 3)
        sdp.append(dict(coords=jax.random.uniform(kc, (n, D), jnp.float32),
                        features=jax.random.normal(kf, (n, c), jnp.float32)))

    # Seg_net(k, p, inp_dims, FP_configs) with 2 Seg_lay stages
    FP_configs = [[32, 16], [16, 8]]
    inp_dims = [Cs[1] + Cs[2],                  # stage 0: to=sdp[1] (8) + from=sdp[2] (16)
                Cs[0] + FP_configs[0][-1]]      # stage 1: to=sdp[0] (8) + propagated (16)

    params = []
    for i, cfg in enumerate(FP_configs):
        layers, key = init_fp_params(key, inp_dims[i], cfg, i == len(FP_configs) - 1)
        params.append(layers)

    out = seg_net_forward(sdp, params, k_nn, p_pow)
    feats = jax.block_until_ready(out["features"])
    assert feats.shape == (Ns[0], FP_configs[-1][-1])
    assert bool(jnp.all(jnp.isfinite(feats)))
    print("KERNEL_OK")
</pallas_src>

<mosaic_0001>
module attributes {stable_mosaic.version = 11 : i64} {
  func.func @kernel(%arg0: i32, %arg1: memref<256x3xf32, #tpu.memory_space<vmem>>, %arg2: memref<256x8xf32, #tpu.memory_space<vmem>>, %arg3: memref<3x64xf32, #tpu.memory_space<vmem>>, %arg4: memref<64x16xf32, #tpu.memory_space<vmem>>, %arg5: memref<8x32xbf16, #tpu.memory_space<vmem>>, %arg6: memref<16x32xbf16, #tpu.memory_space<vmem>>, %arg7: memref<1x32xf32, #tpu.memory_space<vmem>>, %arg8: memref<32x16xbf16, #tpu.memory_space<vmem>>, %arg9: memref<1x16xf32, #tpu.memory_space<vmem>>, %arg10: memref<256x16xf32, #tpu.memory_space<vmem>>) attributes {dimension_semantics = [#tpu.dimension_semantics<parallel>], iteration_bounds = array<i64: 1>, scalar_prefetch = 0 : i64, scratch_operands = 0 : i64, tpu.core_type = #tpu.core_type<tc>, window_params = [{transform_indices = @transform_0, window_bounds = array<i64: 256, 3>}, {transform_indices = @transform_1, window_bounds = array<i64: 256, 8>}, {pipeline_mode = #tpu.pipeline_mode<synchronous>, transform_indices = @transform_2, window_bounds = array<i64: 3, 64>}, {pipeline_mode = #tpu.pipeline_mode<synchronous>, transform_indices = @transform_3, window_bounds = array<i64: 64, 16>}, {pipeline_mode = #tpu.pipeline_mode<synchronous>, transform_indices = @transform_4, window_bounds = array<i64: 8, 32>}, {pipeline_mode = #tpu.pipeline_mode<synchronous>, transform_indices = @transform_5, window_bounds = array<i64: 16, 32>}, {pipeline_mode = #tpu.pipeline_mode<synchronous>, transform_indices = @transform_6, window_bounds = array<i64: 1, 32>}, {pipeline_mode = #tpu.pipeline_mode<synchronous>, transform_indices = @transform_7, window_bounds = array<i64: 32, 16>}, {pipeline_mode = #tpu.pipeline_mode<synchronous>, transform_indices = @transform_8, window_bounds = array<i64: 1, 16>}, {transform_indices = @transform_9, window_bounds = array<i64: 256, 16>}]} {
    %c0 = arith.constant 0 : index
    %c0_0 = arith.constant 0 : index
    %0 = vector.load %arg1[%c0, %c0_0] : memref<256x3xf32, #tpu.memory_space<vmem>>, vector<256x3xf32>
    %c0_1 = arith.constant 0 : index
    %c0_2 = arith.constant 0 : index
    %1 = vector.load %arg3[%c0_1, %c0_2] : memref<3x64xf32, #tpu.memory_space<vmem>>, vector<3x64xf32>
    %cst = arith.constant 0.000000e+00 : f32
    %2 = vector.broadcast %cst : f32 to vector<256x64xf32>
    %3 = vector.extract_strided_slice %0 {offsets = [0, 0], sizes = [256, 1], strides = [1, 1]} : vector<256x3xf32> to vector<256x1xf32>
    %4 = vector.extract_strided_slice %1 {offsets = [0, 0], sizes = [1, 64], strides = [1, 1]} : vector<3x64xf32> to vector<1x64xf32>
    %5 = vector.broadcast %3 : vector<256x1xf32> to vector<256x64xf32>
    %6 = vector.broadcast %4 : vector<1x64xf32> to vector<256x64xf32>
    %7 = arith.subf %5, %6 : vector<256x64xf32>
    %8 = arith.mulf %7, %7 : vector<256x64xf32>
    %9 = arith.addf %2, %8 : vector<256x64xf32>
    %10 = vector.extract_strided_slice %0 {offsets = [0, 1], sizes = [256, 1], strides = [1, 1]} : vector<256x3xf32> to vector<256x1xf32>
    %11 = vector.extract_strided_slice %1 {offsets = [1, 0], sizes = [1, 64], strides = [1, 1]} : vector<3x64xf32> to vector<1x64xf32>
    %12 = vector.broadcast %10 : vector<256x1xf32> to vector<256x64xf32>
    %13 = vector.broadcast %11 : vector<1x64xf32> to vector<256x64xf32>
    %14 = arith.subf %12, %13 : vector<256x64xf32>
    %15 = arith.mulf %14, %14 : vector<256x64xf32>
    %16 = arith.addf %9, %15 : vector<256x64xf32>
    %17 = vector.extract_strided_slice %0 {offsets = [0, 2], sizes = [256, 1], strides = [1, 1]} : vector<256x3xf32> to vector<256x1xf32>
    %18 = vector.extract_strided_slice %1 {offsets = [2, 0], sizes = [1, 64], strides = [1, 1]} : vector<3x64xf32> to vector<1x64xf32>
    %19 = vector.broadcast %17 : vector<256x1xf32> to vector<256x64xf32>
    %20 = vector.broadcast %18 : vector<1x64xf32> to vector<256x64xf32>
    %21 = arith.subf %19, %20 : vector<256x64xf32>
    %22 = arith.mulf %21, %21 : vector<256x64xf32>
    %23 = arith.addf %16, %22 : vector<256x64xf32>
    %24 = tpu.iota {dimensions = array<i32: 1>} : vector<256x64xi32>
    %25 = tpu.bitcast %23 : vector<256x64xf32> -> vector<256x64xi32>
    %c-64_i32 = arith.constant -64 : i32
    %26 = vector.broadcast %c-64_i32 : i32 to vector<256x64xi32>
    %27 = arith.andi %25, %26 : vector<256x64xi32>
    %28 = arith.ori %27, %24 : vector<256x64xi32>
    %cst_3 = arith.constant 0.000000e+00 : f32
    %29 = vector.broadcast %cst_3 : f32 to vector<256x1xf32>
    %cst_4 = arith.constant 0.000000e+00 : f32
    %30 = vector.broadcast %cst_4 : f32 to vector<256x64xf32>
    %cst_5 = arith.constant dense<2147483647> : vector<256xi32>
    %31 = vector.multi_reduction <minsi>, %28, %cst_5 [1] : vector<256x64xi32> to vector<256xi32>
    %32 = vector.shape_cast %31 : vector<256xi32> to vector<256x1xi32>
    %33 = vector.broadcast %32 : vector<256x1xi32> to vector<256x64xi32>
    %34 = arith.cmpi eq, %28, %33 : vector<256x64xi32>
    %c-64_i32_6 = arith.constant -64 : i32
    %35 = vector.broadcast %c-64_i32_6 : i32 to vector<256x1xi32>
    %36 = arith.andi %32, %35 : vector<256x1xi32>
    %37 = tpu.bitcast %36 : vector<256x1xi32> -> vector<256x1xf32>
    %38 = tpu.reciprocal %37 {approx = true} : vector<256x1xf32> -> vector<256x1xf32>
    %39 = arith.addf %29, %38 : vector<256x1xf32>
    %cst_7 = arith.constant 0.000000e+00 : f32
    %40 = vector.shape_cast %38 : vector<256x1xf32> to vector<256x1xf32>
    %41 = vector.broadcast %40 : vector<256x1xf32> to vector<256x64xf32>
    %42 = vector.broadcast %cst_7 : f32 to vector<256x64xf32>
    %43 = arith.select %34, %41, %42 : vector<256x64xi1>, vector<256x64xf32>
    %44 = arith.addf %30, %43 : vector<256x64xf32>
    %c2147483647_i32 = arith.constant 2147483647 : i32
    %45 = vector.broadcast %c2147483647_i32 : i32 to vector<256x64xi32>
    %46 = arith.select %34, %45, %28 : vector<256x64xi1>, vector<256x64xi32>
    %cst_8 = arith.constant dense<2147483647> : vector<256xi32>
    %47 = vector.multi_reduction <minsi>, %46, %cst_8 [1] : vector<256x64xi32> to vector<256xi32>
    %48 = vector.shape_cast %47 : vector<256xi32> to vector<256x1xi32>
    %49 = vector.broadcast %48 : vector<256x1xi32> to vector<256x64xi32>
    %50 = arith.cmpi eq, %46, %49 : vector<256x64xi32>
    %c-64_i32_9 = arith.constant -64 : i32
    %51 = vector.broadcast %c-64_i32_9 : i32 to vector<256x1xi32>
    %52 = arith.andi %48, %51 : vector<256x1xi32>
    %53 = tpu.bitcast %52 : vector<256x1xi32> -> vector<256x1xf32>
    %54 = tpu.reciprocal %53 {approx = true} : vector<256x1xf32> -> vector<256x1xf32>
    %55 = arith.addf %39, %54 : vector<256x1xf32>
    %cst_10 = arith.constant 0.000000e+00 : f32
    %56 = vector.shape_cast %54 : vector<256x1xf32> to vector<256x1xf32>
    %57 = vector.broadcast %56 : vector<256x1xf32> to vector<256x64xf32>
    %58 = vector.broadcast %cst_10 : f32 to vector<256x64xf32>
    %59 = arith.select %50, %57, %58 : vector<256x64xi1>, vector<256x64xf32>
    %60 = arith.addf %44, %59 : vector<256x64xf32>
    %c2147483647_i32_11 = arith.constant 2147483647 : i32
    %61 = vector.broadcast %c2147483647_i32_11 : i32 to vector<256x64xi32>
    %62 = arith.select %50, %61, %46 : vector<256x64xi1>, vector<256x64xi32>
    %cst_12 = arith.constant dense<2147483647> : vector<256xi32>
    %63 = vector.multi_reduction <minsi>, %62, %cst_12 [1] : vector<256x64xi32> to vector<256xi32>
    %64 = vector.shape_cast %63 : vector<256xi32> to vector<256x1xi32>
    %65 = vector.broadcast %64 : vector<256x1xi32> to vector<256x64xi32>
    %66 = arith.cmpi eq, %62, %65 : vector<256x64xi32>
    %c-64_i32_13 = arith.constant -64 : i32
    %67 = vector.broadcast %c-64_i32_13 : i32 to vector<256x1xi32>
    %68 = arith.andi %64, %67 : vector<256x1xi32>
    %69 = tpu.bitcast %68 : vector<256x1xi32> -> vector<256x1xf32>
    %70 = tpu.reciprocal %69 {approx = true} : vector<256x1xf32> -> vector<256x1xf32>
    %71 = arith.addf %55, %70 : vector<256x1xf32>
    %cst_14 = arith.constant 0.000000e+00 : f32
    %72 = vector.shape_cast %70 : vector<256x1xf32> to vector<256x1xf32>
    %73 = vector.broadcast %72 : vector<256x1xf32> to vector<256x64xf32>
    %74 = vector.broadcast %cst_14 : f32 to vector<256x64xf32>
    %75 = arith.select %66, %73, %74 : vector<256x64xi1>, vector<256x64xf32>
    %76 = arith.addf %60, %75 : vector<256x64xf32>
    %c2147483647_i32_15 = arith.constant 2147483647 : i32
    %77 = vector.broadcast %c2147483647_i32_15 : i32 to vector<256x64xi32>
    %78 = arith.select %66, %77, %62 : vector<256x64xi1>, vector<256x64xi32>
    %c2147483647_i32_16 = arith.constant 2147483647 : i32
    %79 = vector.broadcast %c2147483647_i32_16 : i32 to vector<256x64xi32>
    %80 = arith.cmpi eq, %78, %79 : vector<256x64xi32>
    %81 = tpu.reciprocal %71 {approx = true} : vector<256x1xf32> -> vector<256x1xf32>
    %82 = vector.broadcast %81 : vector<256x1xf32> to vector<256x64xf32>
    %83 = arith.mulf %76, %82 : vector<256x64xf32>
    %84 = arith.cmpf one, %83, %83 : vector<256x64xf32>
    %cst_17 = arith.constant 1.000000e+00 : f32
    %85 = vector.broadcast %cst_17 : f32 to vector<256x64xf32>
    %86 = arith.select %84, %85, %83 : vector<256x64xi1>, vector<256x64xf32>
    %cst_18 = arith.constant 0.000000e+00 : f32
    %87 = vector.broadcast %cst_18 : f32 to vector<256x64xf32>
    %88 = arith.select %80, %86, %87 : vector<256x64xi1>, vector<256x64xf32>
    %c0_19 = arith.constant 0 : index
    %c0_20 = arith.constant 0 : index
    %89 = vector.load %arg4[%c0_19, %c0_20] : memref<64x16xf32, #tpu.memory_space<vmem>>, vector<64x16xf32>
    %90 = arith.truncf %89 : vector<64x16xf32> to vector<64x16xbf16>
    %91 = arith.truncf %88 : vector<256x64xf32> to vector<256x64xbf16>
    %cst_21 = arith.constant dense<0.000000e+00> : vector<256x16xf32>
    %92 = tpu.matmul %91, %90, %cst_21 {dimension_numbers = #tpu.dot_dimension_numbers<[1], [0], [0], [1], [0, 0, 1, 1], [], []>} : vector<256x64xbf16>, vector<64x16xbf16>, vector<256x16xf32> -> vector<256x16xf32>
    %c0_22 = arith.constant 0 : index
    %c0_23 = arith.constant 0 : index
    %93 = vector.load %arg5[%c0_22, %c0_23] : memref<8x32xbf16, #tpu.memory_space<vmem>>, vector<8x32xbf16>
    %c0_24 = arith.constant 0 : index
    %c0_25 = arith.constant 0 : index
    %94 = vector.load %arg6[%c0_24, %c0_25] : memref<16x32xbf16, #tpu.memory_space<vmem>>, vector<16x32xbf16>
    %c0_26 = arith.constant 0 : index
    %c0_27 = arith.constant 0 : index
    %95 = vector.load %arg7[%c0_26, %c0_27] : memref<1x32xf32, #tpu.memory_space<vmem>>, vector<1x32xf32>
    %c0_28 = arith.constant 0 : index
    %c0_29 = arith.constant 0 : index
    %96 = vector.load %arg2[%c0_28, %c0_29] : memref<256x8xf32, #tpu.memory_space<vmem>>, vector<256x8xf32>
    %97 = arith.truncf %96 : vector<256x8xf32> to vector<256x8xbf16>
    %cst_30 = arith.constant dense<0.000000e+00> : vector<256x32xf32>
    %98 = tpu.matmul %97, %93, %cst_30 {dimension_numbers = #tpu.dot_dimension_numbers<[1], [0], [0], [1], [0, 0, 1, 1], [], []>} : vector<256x8xbf16>, vector<8x32xbf16>, vector<256x32xf32> -> vector<256x32xf32>
    %99 = arith.truncf %92 : vector<256x16xf32> to vector<256x16xbf16>
    %cst_31 = arith.constant dense<0.000000e+00> : vector<256x32xf32>
    %100 = tpu.matmul %99, %94, %cst_31 {dimension_numbers = #tpu.dot_dimension_numbers<[1], [0], [0], [1], [0, 0, 1, 1], [], []>} : vector<256x16xbf16>, vector<16x32xbf16>, vector<256x32xf32> -> vector<256x32xf32>
    %101 = arith.addf %98, %100 : vector<256x32xf32>
    %102 = vector.broadcast %95 : vector<1x32xf32> to vector<256x32xf32>
    %103 = arith.addf %101, %102 : vector<256x32xf32>
    %cst_32 = arith.constant 0.000000e+00 : f32
    %104 = vector.broadcast %cst_32 : f32 to vector<256x32xf32>
    %105 = arith.maximumf %103, %104 : vector<256x32xf32>
    %c0_33 = arith.constant 0 : index
    %c0_34 = arith.constant 0 : index
    %106 = vector.load %arg8[%c0_33, %c0_34] : memref<32x16xbf16, #tpu.memory_space<vmem>>, vector<32x16xbf16>
    %c0_35 = arith.constant 0 : index
    %c0_36 = arith.constant 0 : index
    %107 = vector.load %arg9[%c0_35, %c0_36] : memref<1x16xf32, #tpu.memory_space<vmem>>, vector<1x16xf32>
    %108 = arith.truncf %105 : vector<256x32xf32> to vector<256x32xbf16>
    %cst_37 = arith.constant dense<0.000000e+00> : vector<256x16xf32>
    %109 = tpu.matmul %108, %106, %cst_37 {dimension_numbers = #tpu.dot_dimension_numbers<[1], [0], [0], [1], [0, 0, 1, 1], [], []>} : vector<256x32xbf16>, vector<32x16xbf16>, vector<256x16xf32> -> vector<256x16xf32>
    %110 = vector.broadcast %107 : vector<1x16xf32> to vector<256x16xf32>
    %111 = arith.addf %109, %110 : vector<256x16xf32>
    %cst_38 = arith.constant 0.000000e+00 : f32
    %112 = vector.broadcast %cst_38 : f32 to vector<256x16xf32>
    %113 = arith.maximumf %111, %112 : vector<256x16xf32>
    %c0_39 = arith.constant 0 : index
    %c0_40 = arith.constant 0 : index
    %114 = vector.load %arg10[%c0_39, %c0_40] : memref<256x16xf32, #tpu.memory_space<vmem>>, vector<256x16xf32>
    tpu.vector_store %arg10[%c0_39, %c0_40], %113 {strides = array<i32>} : memref<256x16xf32, #tpu.memory_space<vmem>>, vector<256x16xf32>,
    return
  }
  func.func @transform_0(%arg0: i32) -> (i32, i32) {
    %c0_i32 = arith.constant 0 : i32
    %c0_i32_0 = arith.constant 0 : i32
    return %arg0, %c0_i32 : i32, i32
  }
  func.func @transform_1(%arg0: i32) -> (i32, i32) {
    %c0_i32 = arith.constant 0 : i32
    %c0_i32_0 = arith.constant 0 : i32
    return %arg0, %c0_i32 : i32, i32
  }
  func.func @transform_2(%arg0: i32) -> (i32, i32) {
    %c0_i32 = arith.constant 0 : i32
    %c0_i32_0 = arith.constant 0 : i32
    %c0_i32_1 = arith.constant 0 : i32
    return %c0_i32, %c0_i32_0 : i32, i32
  }
  func.func @transform_3(%arg0: i32) -> (i32, i32) {
    %c0_i32 = arith.constant 0 : i32
    %c0_i32_0 = arith.constant 0 : i32
    %c0_i32_1 = arith.constant 0 : i32
    return %c0_i32, %c0_i32_0 : i32, i32
  }
  func.func @transform_4(%arg0: i32) -> (i32, i32) {
    %c0_i32 = arith.constant 0 : i32
    %c0_i32_0 = arith.constant 0 : i32
    %c0_i32_1 = arith.constant 0 : i32
    return %c0_i32, %c0_i32_0 : i32, i32
  }
  func.func @transform_5(%arg0: i32) -> (i32, i32) {
    %c0_i32 = arith.constant 0 : i32
    %c0_i32_0 = arith.constant 0 : i32
    %c0_i32_1 = arith.constant 0 : i32
    return %c0_i32, %c0_i32_0 : i32, i32
  }
  func.func @transform_6(%arg0: i32) -> (i32, i32) {
    %c0_i32 = arith.constant 0 : i32
    %c0_i32_0 = arith.constant 0 : i32
    %c0_i32_1 = arith.constant 0 : i32
    return %c0_i32, %c0_i32_0 : i32, i32
  }
  func.func @transform_7(%arg0: i32) -> (i32, i32) {
    %c0_i32 = arith.constant 0 : i32
    %c0_i32_0 = arith.constant 0 : i32
    %c0_i32_1 = arith.constant 0 : i32
    return %c0_i32, %c0_i32_0 : i32, i32
  }
  func.func @transform_8(%arg0: i32) -> (i32, i32) {
    %c0_i32 = arith.constant 0 : i32
    %c0_i32_0 = arith.constant 0 : i32
    %c0_i32_1 = arith.constant 0 : i32
    return %c0_i32, %c0_i32_0 : i32, i32
  }
  func.func @transform_9(%arg0: i32) -> (i32, i32) {
    %c0_i32 = arith.constant 0 : i32
    %c0_i32_0 = arith.constant 0 : i32
    return %arg0, %c0_i32 : i32, i32
  }
}

</mosaic_0001>

<bundles_post_ra>
// kernel: tpu_custom_call.1
= control target key start
LH: loop header
LB: loop body
LE: loop exit
PB: predicated region body
PF: predicated region fallthrough
CT: control target
= control target key end

     0   :  { %v8300_v0 = vmov 0   ;;  %v8302_v21 = vmov 2   ;;  %v8304_v23 = vmov 1   ;;  %v773_v61 = vlaneseq  ;;  %s8290_s0 = inlined_call_operand.vmem [shape: f32[256,3], index: 0, kind: input, shape index: {}]   ;;  %s8291_s2 = inlined_call_operand.vmem [shape: f32[3,64], index: 2, kind: input, shape index: {}]   ;;  %s8292_s3 = inlined_call_operand.vmem [shape: f32[64,16], index: 3, kind: input, shape index: {}]   ;;  %s8293_s4 = inlined_call_operand.vmem [shape: bf16[8,32], index: 4, kind: input, shape index: {}]   ;;  %s8294_s1 = inlined_call_operand.vmem [shape: f32[256,8], index: 1, kind: input, shape index: {}]   ;;  %s8295_s5 = inlined_call_operand.vmem [shape: bf16[16,32], index: 5, kind: input, shape index: {}]   ;;  %s8296_s6 = inlined_call_operand.vmem [shape: f32[1,32], index: 6, kind: input, shape index: {}]   ;;  %s8297_s7 = inlined_call_operand.vmem [shape: bf16[32,16], index: 7, kind: input, shape index: {}]   ;;  %s8298_s8 = inlined_call_operand.vmem [shape: f32[1,16], index: 8, kind: input, shape index: {}]   ;;  %s8299_s9 = inlined_call_operand.vmem [shape: f32[256,16], index: 9, kind: output, shape index: {}]  }
   0x1   :  { %4184 = vset.pattern.permute.xlu2 %v8300_v0  ;;  %4183 = vset.pattern.permute.xlu1 %v8300_v0  ;;  %v37_v1 = vld [vmem:[%s8290_s0 + $0x20] sm:$0xff]  ;;  %v35_v2 = vld [vmem:[%s8290_s0 + $0x10] sm:$0xff]  ;;  %v4542_v4 = vld [vmem:[%s8290_s0 + $0x28] sm:$0xff]  ;;  %vm871_vm0 = vcmask 523264  }
   0x2   :  { %v33_v3 = vld [vmem:[%s8290_s0] sm:$0xff]  ;;  %4182 = vset.pattern.permute.xlu0 %v8300_v0  ;;  %88 = vperm.xlu2 %4184, %v37_v1   ;;  %v36_v5 = vld [vmem:[%s8290_s0 + $0x18] sm:$0xff]  ;;  %v34_v6 = vld [vmem:[%s8290_s0 + $0x8] sm:$0xff] }
   0x3   :  { %78 = vperm.xlu1 %4183, %v35_v2   ;;  %68 = vperm.xlu0 %4182, %v33_v3   ;;  %v4554_v7 = vld [vmem:[%s8290_s0 + $0x40] sm:$0xff]  ;;  %v40_v8 = vld [vmem:[%s8290_s0 + $0x38] sm:$0xff]  ;;  %v4562_v9 = vld [vmem:[%s8290_s0 + $0x30] sm:$0xff] }
   0x4   :  { %v4569_v10 = vld [vmem:[%s8290_s0 + $0x58] sm:$0xff]  ;;  %v4574_v11 = vld [vmem:[%s8290_s0 + $0x50] sm:$0xff]  ;;  %v42_v12 = vld [vmem:[%s8290_s0 + $0x48] sm:$0xff] }
   0x5   :  { %v4584_v13 = vld [vmem:[%s8290_s0 + $0x70] sm:$0xff]  ;;  %v4589_v14 = vld [vmem:[%s8290_s0 + $0x68] sm:$0xff]  ;;  %v45_v15 = vld [vmem:[%s8290_s0 + $0x60] sm:$0xff] }
   0x6   :  { %v4599_v16 = vld [vmem:[%s8290_s0 + $0x88] sm:$0xff]  ;;  %v4604_v17 = vld [vmem:[%s8290_s0 + $0x80] sm:$0xff]  ;;  %v4609_v18 = vld [vmem:[%s8290_s0 + $0x78] sm:$0xff] }
   0x7   :  { %v4617_v19 = vld [vmem:[%s8290_s0 + $0xa0] sm:$0xff]  ;;  %v4622_v20 = vld [vmem:[%s8290_s0 + $0x98] sm:$0xff] }
   0x8   :  { %v4630_v22 = vld [vmem:[%s8290_s0 + $0xb8] sm:$0xff]  ;;  %v65_v47 = vld [vmem:[%s8291_s2] sm:$0x7] }
   0x9   :  { %v4687_v48 = vperm.slane %v65_v47, 0  ;;  %v4689_v49 = vperm.slane %v65_v47, 2  ;;  %v4692_v51 = vperm.slane %v65_v47, 1 }
   0xa   :  { %93 = vperm.xlu2 %4184, %v4542_v4  }
   0xb   :  { %83 = vperm.xlu1 %4183, %v36_v5   ;;  %73 = vperm.xlu0 %4182, %v34_v6  }
  0x12   :  { %108 = vperm.xlu2 %4184, %v4554_v7  }
  0x13   :  { %103 = vperm.xlu1 %4183, %v40_v8   ;;  %98 = vperm.xlu0 %4182, %v4562_v9  }
  0x1a   :  { %123 = vperm.xlu2 %4184, %v4569_v10  }
  0x1b   :  { %118 = vperm.xlu1 %4183, %v4574_v11   ;;  %113 = vperm.xlu0 %4182, %v42_v12  }
  0x22   :  { %138 = vperm.xlu2 %4184, %v4584_v13  }
  0x23   :  { %133 = vperm.xlu1 %4183, %v4589_v14   ;;  %128 = vperm.xlu0 %4182, %v45_v15  }
  0x2a   :  { %153 = vperm.xlu2 %4184, %v4599_v16  }
  0x2b   :  { %148 = vperm.xlu1 %4183, %v4604_v17   ;;  %143 = vperm.xlu0 %4182, %v4609_v18  }
  0x32   :  { %168 = vperm.xlu2 %4184, %v4617_v19  }
  0x33   :  { %163 = vperm.xlu1 %4183, %v4622_v20   ;;  %4187 = vset.pattern.permute.xlu0 %v8302_v21 }
  0x34   :  { %549 = vperm.xlu0 %4187, %v33_v3  }
  0x3a   :  { %183 = vperm.xlu2 %4184, %v4630_v22  }
  0x3b   :  { %4185 = vset.pattern.permute.xlu1 %v8304_v23 }
  0x3c   :  { %324 = vperm.xlu1 %4185, %v33_v3   ;;  %561 = vperm.xlu0 %4187, %v36_v5  }
  0x42   :  { %4186 = vset.pattern.permute.xlu2 %v8304_v23 }
  0x43   :  { %328 = vperm.xlu2 %4186, %v34_v6  }
  0x44   :  { %4188 = vset.pattern.permute.xlu1 %v8302_v21  ;;  %565 = vperm.xlu0 %4187, %v37_v1  }
  0x45   :  { %553 = vperm.xlu1 %4188, %v34_v6  }
  0x4b   :  { %332 = vperm.xlu2 %4186, %v35_v2  }
  0x4c   :  { %581 = vperm.xlu0 %4187, %v4554_v7  }
  0x4d   :  { %4189 = vset.pattern.permute.xlu1 %v8304_v23 }
  0x4e   :  { %336 = vperm.xlu1 %4189, %v36_v5  }
  0x53   :  { %4190 = vset.pattern.permute.xlu2 %v8302_v21 }
  0x54   :  { %585 = vperm.xlu0 %4187, %v42_v12   ;;  %557 = vperm.xlu2 %4190, %v35_v2  }
  0x56   :  { %340 = vperm.xlu1 %4189, %v37_v1  }
  0x5c   :  { %593 = vperm.xlu0 %4187, %v4569_v10   ;;  %v4640_v24 = vpop.permute.xlu2 %88  ;;  %577 = vperm.xlu2 %4190, %v40_v8  }
  0x5e   :  { %4191 = vset.pattern.permute.xlu1 %v8302_v21 }
  0x5f   :  { %569 = vperm.xlu1 %4191, %v4542_v4  }
  0x64   :  { %597 = vperm.xlu0 %4187, %v45_v15   ;;  %v4644_v25 = vpop.permute.xlu2 %93  ;;  %4192 = vset.pattern.permute.xlu2 %v8304_v23 }
  0x67   :  { %573 = vperm.xlu1 %4191, %v4562_v9  }
  0x6c   :  { %4193 = vset.pattern.permute.xlu0 %v8304_v23  ;;  %v4649_v26 = vpop.permute.xlu2 %108 }
  0x6d   :  { %352 = vperm.xlu0 %4193, %v40_v8  }
  0x74   :  { %v4651_v27 = vpop.permute.xlu2 %123 }
  0x75   :  { %v79_v28 = vpop.permute.xlu1 %78  ;;  %356 = vperm.xlu0 %4193, %v4554_v7   ;;  %v69_v29 = vpop.permute.xlu0 %68  ;;  %v4701_v7 = vand.u32 127, %v773_v61 }
  0x76   :  { %v227_v50 = vsub.f32 %v69_v29, %v4687_v48  ;;  %v229_v62 = vsub.f32 %v79_v28, %v4687_v48 }
  0x78   :  { %v259_v55 = vmul.f32 %v227_v50, %v227_v50  ;;  %v261_v8 = vmul.f32 %v229_v62, %v229_v62 }
  0x7c   :  { %v4654_v30 = vpop.permute.xlu2 %138 }
  0x7d   :  { %v4656_v31 = vpop.permute.xlu1 %83  ;;  %360 = vperm.xlu0 %4193, %v42_v12   ;;  %v74_v32 = vpop.permute.xlu0 %73 }
  0x7e   :  { %v228_v63 = vsub.f32 %v74_v32, %v4687_v48  ;;  %v230_v61 = vsub.f32 %v4656_v31, %v4687_v48 }
  0x80   :  { %v260_v12 = vmul.f32 %v228_v63, %v228_v63 }
  0x84   :  { %v4658_v33 = vpop.permute.xlu2 %153 }
  0x85   :  { %8515 = vst [vmem:[#allocation2_spill] sm:$0xff] %v4658_v33  ;;  %v4660_v34 = vpop.permute.xlu1 %103  ;;  %364 = vperm.xlu0 %4193, %v4574_v11   ;;  %v4663_v35 = vpop.permute.xlu0 %98 }
  0x8c   :  { %v4665_v36 = vpop.permute.xlu2 %168 }
  0x8d   :  { %8516 = vst [vmem:[#allocation3_spill] sm:$0xff] %v4665_v36  ;;  %v4667_v37 = vpop.permute.xlu1 %118  ;;  %372 = vperm.xlu0 %4193, %v45_v15   ;;  %v4669_v38 = vpop.permute.xlu0 %113 }
  0x94   :  { %v4671_v39 = vpop.permute.xlu2 %183 }
  0x95   :  { %8517 = vst [vmem:[#allocation4_spill] sm:$0xff] %v4671_v39  ;;  %v4673_v40 = vpop.permute.xlu1 %133  ;;  %376 = vperm.xlu0 %4193, %v4589_v14   ;;  %v4676_v41 = vpop.permute.xlu0 %128 }
  0x9d   :  { %v4678_v42 = vpop.permute.xlu1 %148  ;;  %v329_v43 = vpop.permute.xlu2 %328 }
  0x9e   :  { %v4680_v44 = vpop.permute.xlu0 %143  ;;  %v453_v1 = vsub.f32 %v329_v43, %v4692_v51 }
  0x9f   :  { %8518 = vst [vmem:[#allocation5_spill] sm:$0xff] %v4680_v44 }
  0xa0   :  { %v485_v15 = vmul.f32 %v453_v1, %v453_v1 }
  0xa2   :  { %v517_v43 = vadd.f32 %v485_v15, %v260_v12 }
  0xa5   :  { %v4682_v45 = vpop.permute.xlu1 %163  ;;  %v333_v46 = vpop.permute.xlu2 %332 }
  0xa6   :  { %8519 = vst [vmem:[#allocation6_spill] sm:$0xff] %v4682_v45  ;;  %v550_v52 = vpop.permute.xlu0 %549  ;;  %v454_v58 = vsub.f32 %v333_v46, %v4692_v51 }
  0xa7   :  { %v677_v53 = vsub.f32 %v550_v52, %v4689_v49 }
  0xa8   :  { %v486_v5 = vmul.f32 %v454_v58, %v454_v58 }
  0xa9   :  { %v709_v59 = vmul.f32 %v677_v53, %v677_v53 }
  0xaa   :  { %v518_v50 = vadd.f32 %v486_v5, %v261_v8 }
  0xae   :  { %v325_v54 = vpop.permute.xlu1 %324  ;;  %v558_v57 = vpop.permute.xlu2 %557 }
  0xaf   :  { %v452_v56 = vsub.f32 %v325_v54, %v4692_v51  ;;  %v679_v2 = vsub.f32 %v558_v57, %v4689_v49  ;;  %v562_v58 = vpop.permute.xlu0 %561 }
  0xb0   :  { %v680_v62 = vsub.f32 %v562_v58, %v4689_v49 }
  0xb1   :  { %v484_v60 = vmul.f32 %v452_v56, %v452_v56  ;;  %v711_v29 = vmul.f32 %v679_v2, %v679_v2 }
  0xb2   :  { %v712_v8 = vmul.f32 %v680_v62, %v680_v62 }
  0xb3   :  { %v516_v3 = vadd.f32 %v484_v60, %v259_v55  ;;  %v743_v52 = vadd.f32 %v711_v29, %v518_v50 }
  0xb5   :  { %v741_v6 = vadd.f32 %v709_v59, %v516_v3  ;;  %v809_v57 = vand.u32 4294967232, %v743_v52 }
  0xb7   :  { %v807_v46 = vand.u32 4294967232, %v741_v6  ;;  %v554_v47 = vpop.permute.xlu1 %553  ;;  %v4723_v3 = vor.u32 %v809_v57, %v4701_v7  ;;  %v262_v6 = vmul.f32 %v230_v61, %v230_v61  ;;  %v566_v57 = vpop.permute.xlu0 %565 }
  0xb8   :  { %v678_v28 = vsub.f32 %v554_v47, %v4689_v49 }
  0xb9   :  { %v4705_v32 = vor.u32 %v807_v46, %v4701_v7  ;;  %v902_v46 = vsel %vm871_vm0, %v4723_v3, 2147483647 }
  0xba   :  { %v710_v53 = vmul.f32 %v678_v28, %v678_v28  ;;  %v904_v28 = vshra.s32 %v902_v46, 16 }
  0xbb   :  { %v4709_v54 = vsel %vm871_vm0, %v4705_v32, 2147483647 }
  0xbc   :  { %v742_v55 = vadd.f32 %v710_v53, %v517_v43  ;;  %v874_v56 = vshra.s32 %v4709_v54, 16  ;;  %v906_v52 = vcvt.s32.f32 %v904_v28 }
  0xbe   :  { %v808_v59 = vand.u32 4294967232, %v742_v55  ;;  %v4712_v60 = vcvt.s32.f32 %v874_v56 }
  0xbf   :  { %v4735_v58 = vpop.permute.xlu0 %581 }
  0xc0   :  { %v4718_v63 = vor.u32 %v808_v59, %v4701_v7  ;;  %v337_v1 = vpop.permute.xlu1 %336  ;;  %877 = vmin.xlane.f32.xlu1 %v4712_v60 }
  0xc1   :  { %v455_v2 = vsub.f32 %v337_v1, %v4692_v51  ;;  %v231_v1 = vsub.f32 %v4640_v24, %v4687_v48 }
  0xc2   :  { %v887_v5 = vsel %vm871_vm0, %v4718_v63, 2147483647 }
  0xc3   :  { %v487_v12 = vmul.f32 %v455_v2, %v455_v2  ;;  %v889_v31 = vshra.s32 %v887_v5, 16  ;;  %v888_v0 = vand.u32 65535, %v887_v5 }
  0xc5   :  { %v519_v15 = vadd.f32 %v487_v12, %v262_v6  ;;  %v891_v29 = vcvt.s32.f32 %v889_v31  ;;  %v681_v6 = vsub.f32 %v566_v57, %v4689_v49  ;;  %v890_v36 = vcvt.s32.f32 %v888_v0 }
  0xc7   :  { %v744_v47 = vadd.f32 %v712_v8, %v519_v15  ;;  %892 = vmin.xlane.f32.xlu2 %v891_v29  ;;  %v586_v59 = vpop.permute.xlu0 %585  ;;  %v263_v8 = vmul.f32 %v231_v1, %v231_v1  ;;  %v713_v12 = vmul.f32 %v681_v6, %v681_v6  ;;  %v236_v6 = vsub.f32 %v4669_v38, %v4687_v48 }
  0xc8   :  { %v341_v61 = vpop.permute.xlu1 %340  ;;  %v903_v38 = vand.u32 65535, %v902_v46  ;;  %v232_v46 = vsub.f32 %v4644_v25, %v4687_v48 }
  0xc9   :  { %v810_v50 = vand.u32 4294967232, %v744_v47  ;;  %v456_v62 = vsub.f32 %v341_v61, %v4692_v51 }
  0xcb   :  { %v4730_v43 = vor.u32 %v810_v50, %v4701_v7 }
  0xcd   :  { %v917_v53 = vsel %vm871_vm0, %v4730_v43, 2147483647 }
  0xce   :  { %v919_v55 = vshra.s32 %v917_v53, 16 }
  0xcf   :  { %907 = vmin.xlane.f32.xlu2 %v906_v52  ;;  %v4743_v2 = vpop.permute.xlu0 %593 }
  0xd0   :  { %v921_v56 = vcvt.s32.f32 %v919_v55 }
  0xd2   :  { %922 = vmin.xlane.f32.xlu1 %v921_v56 }
  0xd7   :  { %v4746_v15 = vpop.permute.xlu0 %597 }
  0xdf   :  { %v353_v50 = vpop.permute.xlu0 %352 }
  0xe7   :  { %344 = vperm.xlu2 %4192, %v4542_v4   ;;  %v488_v4 = vmul.f32 %v456_v62, %v456_v62  ;;  %v4758_v57 = vpop.permute.xlu0 %356  ;;  %v570_v62 = vpop.permute.xlu1 %569 }
  0xe9   :  { %v520_v31 = vadd.f32 %v488_v4, %v263_v8  ;;  %v686_v4 = vsub.f32 %v586_v59, %v4689_v49 }
  0xef   :  { %348 = vperm.xlu2 %4192, %v4562_v9   ;;  %v745_v9 = vadd.f32 %v713_v12, %v520_v31  ;;  %v361_v61 = vpop.permute.xlu0 %360  ;;  %v268_v12 = vmul.f32 %v236_v6, %v236_v6  ;;  %v578_v31 = vpop.permute.xlu2 %577 }
  0xf0   :  { %v461_v1 = vsub.f32 %v361_v61, %v4692_v51 }
  0xf2   :  { %v493_v8 = vmul.f32 %v461_v1, %v461_v1  ;;  %v918_v1 = vand.u32 65535, %v917_v53 }
  0xf7   :  { %368 = vperm.xlu2 %4192, %v4569_v10   ;;  %v811_v10 = vand.u32 4294967232, %v745_v9  ;;  %v574_v9 = vpop.permute.xlu1 %573 }
  0xf9   :  { %v4749_v47 = vor.u32 %v811_v10, %v4701_v7  ;;  %v718_v10 = vmul.f32 %v686_v4, %v686_v4  ;;  %v905_v4 = vcvt.s32.f32 %v903_v38 }
  0xfb   :  { %v4753_v28 = vsel %vm871_vm0, %v4749_v47, 2147483647 }
  0xfc   :  { %v934_v24 = vshra.s32 %v4753_v28, 16 }
  0xfe   :  { %v4756_v55 = vcvt.s32.f32 %v934_v24  ;;  %v525_v24 = vadd.f32 %v493_v8, %v268_v12  ;;  %v459_v8 = vsub.f32 %v353_v50, %v4692_v51  ;;  %v684_v50 = vsub.f32 %v578_v31, %v4689_v49 }
  0xff   :  { %4194 = vset.pattern.permute.xlu2 %v8302_v21 }
 0x100   :  { %v750_v21 = vadd.f32 %v718_v10, %v525_v24  ;;  %v264_v24 = vmul.f32 %v232_v46, %v232_v46 }
 0x102   :  { %v816_v39 = vand.u32 4294967232, %v750_v21 }
 0x104   :  { %v4771_v59 = vor.u32 %v816_v39, %v4701_v7 }
 0x106   :  { %8520 = vst [vmem:[#allocation7_spill] sm:$0xff] %v4771_v59  ;;  %v4778_v0 = vsel %vm871_vm0, %v4771_v59, 2147483647 }
 0x107   :  { %v1009_v39 = vshra.s32 %v4778_v0, 16 }
 0x109   :  { %v4789_v10 = vcvt.s32.f32 %v1009_v39  ;;  %v683_v39 = vsub.f32 %v574_v9, %v4689_v49 }
 0x120   :  { %937 = vmin.xlane.f32.xlu2 %v4756_v55 }
 0x133   :  { %v4768_v33 = vpop.xlane.xlu1 %877 }
 0x134   :  { %vm879_vm4 = vcmp.eq.f32.partialorder %v4712_v60, %v4768_v33 }
 0x13a   :  { %v4765_v23 = vpop.xlane.xlu2 %892 }
 0x13b   :  { %vm894_vm1 = vcmp.eq.f32.partialorder %v891_v29, %v4765_v23 }
 0x13c   :  { %v895_v61 = vsel %vm894_vm1, %v890_v36, inf  ;;  %v920_v36 = vcvt.s32.f32 %v918_v1  ;;  %v491_v1 = vmul.f32 %v459_v8, %v459_v8 }
 0x13d   :  { %896 = vmin.xlane.f32.xlu0 %v895_v61 }
 0x142   :  { %v4773_v6 = vpop.xlane.xlu2 %907 }
 0x143   :  { %vm909_vm2 = vcmp.eq.f32.partialorder %v906_v52, %v4773_v6  ;;  %v682_v52 = vsub.f32 %v570_v62, %v4689_v49  ;;  %v233_v62 = vsub.f32 %v4663_v35, %v4687_v48 }
 0x144   :  { %v910_v5 = vsel %vm909_vm2, %v905_v4, inf }
 0x145   :  { %911 = vmin.xlane.f32.xlu0 %v910_v5  ;;  %v4780_v21 = vpop.xlane.xlu1 %922  ;;  %v714_v61 = vmul.f32 %v682_v52, %v682_v52  ;;  %v265_v52 = vmul.f32 %v233_v62, %v233_v62  ;;  %v235_v62 = vsub.f32 %v4649_v26, %v4687_v48 }
 0x146   :  { %vm924_vm3 = vcmp.eq.f32.partialorder %v921_v56, %v4780_v21  ;;  %v234_v56 = vsub.f32 %v4660_v34, %v4687_v48 }
 0x147   :  { %v925_v29 = vsel %vm924_vm3, %v920_v36, inf }
 0x148   :  { %926 = vmin.xlane.f32.xlu2 %v925_v29  ;;  %v266_v25 = vmul.f32 %v234_v56, %v234_v56  ;;  %v715_v56 = vmul.f32 %v683_v39, %v683_v39 }
 0x14a   :  { %v345_v53 = vpop.permute.xlu2 %344  ;;  %v523_v29 = vadd.f32 %v491_v1, %v266_v25 }
 0x14b   :  { %v457_v12 = vsub.f32 %v345_v53, %v4692_v51  ;;  %v716_v53 = vmul.f32 %v684_v50, %v684_v50 }
 0x14d   :  { %v489_v38 = vmul.f32 %v457_v12, %v457_v12  ;;  %1012 = vmin.xlane.f32.xlu0 %v4789_v10 }
 0x14f   :  { %v521_v4 = vadd.f32 %v489_v38, %v264_v24  ;;  %v748_v24 = vadd.f32 %v716_v53, %v523_v29 }
 0x151   :  { %v746_v5 = vadd.f32 %v714_v61, %v521_v4  ;;  %v814_v1 = vand.u32 4294967232, %v748_v24  ;;  %v460_v4 = vsub.f32 %v4758_v57, %v4692_v51 }
 0x152   :  { %v349_v36 = vpop.permute.xlu2 %348 }
 0x153   :  { %v812_v46 = vand.u32 4294967232, %v746_v5  ;;  %v458_v34 = vsub.f32 %v349_v36, %v4692_v51  ;;  %v685_v5 = vsub.f32 %v4735_v58, %v4689_v49  ;;  %v492_v36 = vmul.f32 %v460_v4, %v460_v4 }
 0x154   :  { %v4824_v39 = vor.u32 %v814_v1, %v4701_v7 }
 0x155   :  { %v490_v12 = vmul.f32 %v458_v34, %v458_v34  ;;  %v4800_v8 = vor.u32 %v812_v46, %v4701_v7  ;;  %v267_v46 = vmul.f32 %v235_v62, %v235_v62  ;;  %v717_v26 = vmul.f32 %v685_v5, %v685_v5 }
 0x156   :  { %v4831_v53 = vsel %vm871_vm0, %v4824_v39, 2147483647 }
 0x157   :  { %v522_v38 = vadd.f32 %v490_v12, %v265_v52  ;;  %v4804_v35 = vsel %vm871_vm0, %v4800_v8, 2147483647  ;;  %v524_v52 = vadd.f32 %v492_v36, %v267_v46  ;;  %v979_v58 = vshra.s32 %v4831_v53, 16 }
 0x158   :  { %v949_v31 = vshra.s32 %v4804_v35, 16  ;;  %v238_v36 = vsub.f32 %v4651_v27, %v4687_v48  ;;  %v688_v46 = vsub.f32 %v4743_v2, %v4689_v49 }
 0x159   :  { %v747_v61 = vadd.f32 %v715_v56, %v522_v38  ;;  %v749_v12 = vadd.f32 %v717_v26, %v524_v52  ;;  %v4835_v24 = vcvt.s32.f32 %v979_v58  ;;  %v873_v38 = vand.u32 65535, %v4709_v54 }
 0x15a   :  { %v4807_v9 = vcvt.s32.f32 %v949_v31  ;;  %v369_v62 = vpop.permute.xlu2 %368  ;;  %v720_v52 = vmul.f32 %v688_v46, %v688_v46 }
 0x15b   :  { %v813_v25 = vand.u32 4294967232, %v747_v61  ;;  %v815_v56 = vand.u32 4294967232, %v749_v12  ;;  %v875_v61 = vcvt.s32.f32 %v873_v38  ;;  %v463_v54 = vsub.f32 %v369_v62, %v4692_v51 }
 0x15c   :  { %952 = vmin.xlane.f32.xlu1 %v4807_v9 }
 0x15d   :  { %v4815_v50 = vor.u32 %v813_v25, %v4701_v7  ;;  %v4840_v31 = vor.u32 %v815_v56, %v4701_v7  ;;  %v880_v1 = vsel %vm879_vm4, %v875_v61, inf  ;;  %v495_v60 = vmul.f32 %v463_v54, %v463_v54 }
 0x15e   :  { %v933_v56 = vand.u32 65535, %v4753_v28 }
 0x15f   :  { %v4821_v29 = vsel %vm871_vm0, %v4815_v50, 2147483647  ;;  %v4846_v4 = vsel %vm871_vm0, %v4840_v31, 2147483647 }
 0x160   :  { %v964_v57 = vshra.s32 %v4821_v29, 16  ;;  %v994_v25 = vshra.s32 %v4846_v4, 16 }
 0x162   :  { %v4827_v34 = vcvt.s32.f32 %v964_v57  ;;  %v4849_v5 = vcvt.s32.f32 %v994_v25  ;;  %v270_v57 = vmul.f32 %v238_v36, %v238_v36  ;;  %v4863_v25 = vpop.permute.xlu0 %364 }
 0x164   :  { %967 = vmin.xlane.f32.xlu1 %v4827_v34  ;;  %v527_v26 = vadd.f32 %v495_v60, %v270_v57  ;;  %v899_v60 = vcvt.f32.s32 %v4765_v23 }
 0x166   :  { %v752_v58 = vadd.f32 %v720_v52, %v527_v26  ;;  %v900_v46 = vshll.u32 %v899_v60, 16  ;;  %v914_v52 = vcvt.f32.s32 %v4773_v6 }
 0x168   :  { %v818_v12 = vand.u32 4294967232, %v752_v58 }
 0x16a   :  { %v4859_v38 = vor.u32 %v818_v12, %v4701_v7  ;;  %v373_v54 = vpop.permute.xlu0 %372  ;;  %v929_v12 = vcvt.f32.s32 %v4780_v21 }
 0x16c   :  { %982 = vmin.xlane.f32.xlu1 %v4835_v24  ;;  %8521 = vst [vmem:[#allocation8_spill] sm:$0xff] %v4859_v38  ;;  %v4869_v2 = vsel %vm871_vm0, %v4859_v38, 2147483647  ;;  %v930_v44 = vshll.u32 %v929_v12, 16 }
 0x16d   :  { %v1039_v62 = vshra.s32 %v4869_v2, 16 }
 0x16f   :  { %v4872_v28 = vcvt.s32.f32 %v1039_v62 }
 0x172   :  { %v4875_v36 = vpop.permute.xlu0 %376 }
 0x174   :  { %881 = vmin.xlane.f32.xlu1 %v880_v1  ;;  %v935_v1 = vcvt.s32.f32 %v933_v56 }
 0x17c   :  { %997 = vmin.xlane.f32.xlu1 %v4849_v5 }
 0x193   :  { %v4861_v61 = vpop.xlane.xlu2 %937 }
 0x194   :  { %vm939_vm5 = vcmp.eq.f32.partialorder %v4756_v55, %v4861_v61 }
 0x195   :  { %v940_v27 = vsel %vm939_vm5, %v935_v1, inf  ;;  %v915_v1 = vshll.u32 %v914_v52, 16  ;;  %v948_v52 = vand.u32 65535, %v4804_v35  ;;  %v464_v35 = vsub.f32 %v373_v54, %v4692_v51 }
 0x196   :  { %941 = vmin.xlane.f32.xlu2 %v940_v27  ;;  %v963_v54 = vand.u32 65535, %v4821_v29 }
 0x197   :  { %v950_v12 = vcvt.s32.f32 %v948_v52 }
 0x19e   :  { %1042 = vmin.xlane.f32.xlu2 %v4872_v28 }
 0x1b0   :  { %v897_v57 = vpop.xlane.xlu0 %896 }
 0x1b1   :  { %v898_v55 = vcvt.f32.s32 %v897_v57 }
 0x1b3   :  { %v901_v26 = vadd.s32 %v900_v46, %v898_v55  ;;  %v4920_v55 = vld [vmem:[%s8290_s0 + $0x90] sm:$0xff] }
 0x1b5   :  { %v1385_v58 = vand.u32 4294967232, %v901_v26  ;;  %vm1353_vm6 = vcmp.eq.s32.totalorder %v4718_v63, %v901_v26 }
 0x1b6   :  { %601 = vperm.xlu2 %4194, %v4589_v14  }
 0x1b7   :  { %4213 = vrcp.f32 %v1385_v58 }
 0x1b8   :  { %v912_v56 = vpop.xlane.xlu0 %911 }
 0x1b9   :  { %v913_v27 = vcvt.f32.s32 %v912_v56 }
 0x1bb   :  { %v4881_v62 = vadd.s32 %v915_v1, %v913_v27  ;;  %v927_v38 = vpop.xlane.xlu2 %926  ;;  %v8528_v1 = vmov 1  }
 0x1bc   :  { %v928_v23 = vcvt.f32.s32 %v927_v38 }
 0x1bd   :  { %v4883_v45 = vpop.eup %4213  ;;  %v1386_v6 = vand.u32 4294967232, %v4881_v62  ;;  %vm1354_vm7 = vcmp.eq.s32.totalorder %v4723_v3, %v4881_v62 }
 0x1be   :  { %8522 = vst [vmem:[#allocation9_spill] sm:$0xff] %v4883_v45  ;;  %v4890_v14 = vsel %vm1353_vm6, %v4883_v45, 0.0  ;;  %v4892_v21 = vadd.s32 %v930_v44, %v928_v23  ;;  %605 = vperm.xlu2 %4194, %v4584_v13  }
 0x1bf   :  { %8523 = vst [vmem:[#allocation10_spill] sm:$0xff] %v4890_v14  ;;  %4215 = vrcp.f32 %v1386_v6  ;;  %v884_v6 = vcvt.f32.s32 %v4768_v33 }
 0x1c0   :  { %v1387_v60 = vand.u32 4294967232, %v4892_v21  ;;  %vm1355_vm8 = vcmp.eq.s32.totalorder %v4730_v43, %v4892_v21 }
 0x1c1   :  { %v885_v52 = vshll.u32 %v884_v6, 16  ;;  %v944_v6 = vcvt.f32.s32 %v4861_v61  ;;  %v240_v61 = vsub.f32 %v4673_v40, %v4687_v48 }
 0x1c2   :  { %4217 = vrcp.f32 %v1387_v60 }
 0x1c5   :  { %v4896_v38 = vpop.eup %4215 }
 0x1c6   :  { %8524 = vst [vmem:[#allocation11_spill] sm:$0xff] %v4896_v38  ;;  %v4904_v57 = vsel %vm1354_vm7, %v4896_v38, 0.0  ;;  %609 = vperm.xlu2 %4194, %v4609_v18  }
 0x1c7   :  { %8525 = vst [vmem:[#allocation12_spill] sm:$0xff] %v4904_v57  ;;  %v239_v57 = vsub.f32 %v4676_v41, %v4687_v48  ;;  %v4950_v41 = vsel %vm1353_vm6, 2147483647, %v4718_v63 }
 0x1c8   :  { %v4907_v44 = vpop.eup %4217  ;;  %8529 = vst [vmem:[#allocation15_spill] sm:$0xff] %v4950_v41 }
 0x1c9   :  { %8526 = vst [vmem:[#allocation13_spill] sm:$0xff] %v4907_v44  ;;  %v4915_v46 = vsel %vm1355_vm8, %v4907_v44, 0.0 }
 0x1ca   :  { %8527 = vst [vmem:[#allocation14_spill] sm:$0xff] %v4915_v46  ;;  %v271_v46 = vmul.f32 %v239_v57, %v239_v57 }
 0x1ce   :  { %621 = vperm.xlu2 %4194, %v4920_v55  }
 0x1cf   :  { %v4924_v58 = vpop.xlane.xlu1 %952 }
 0x1d0   :  { %vm954_vm9 = vcmp.eq.f32.partialorder %v4807_v9, %v4924_v58  ;;  %v689_v9 = vsub.f32 %v4746_v15, %v4689_v49  ;;  %v965_v15 = vcvt.s32.f32 %v963_v54  ;;  %v465_v54 = vsub.f32 %v4875_v36, %v4692_v51 }
 0x1d1   :  { %v955_v56 = vsel %vm954_vm9, %v950_v12, inf  ;;  %v496_v12 = vmul.f32 %v464_v35, %v464_v35 }
 0x1d2   :  { %956 = vmin.xlane.f32.xlu1 %v955_v56  ;;  %v721_v33 = vmul.f32 %v689_v9, %v689_v9 }
 0x1d3   :  { %v528_v14 = vadd.f32 %v496_v12, %v271_v46 }
 0x1d5   :  { %v753_v45 = vadd.f32 %v721_v33, %v528_v14 }
 0x1d6   :  { %4195 = vset.pattern.permute.xlu2 %v8528_v1 }
 0x1d7   :  { %v4929_v27 = vpop.xlane.xlu1 %967  ;;  %v819_v14 = vand.u32 4294967232, %v753_v45 }
 0x1d8   :  { %vm969_vm10 = vcmp.eq.f32.partialorder %v4827_v34, %v4929_v27  ;;  %v4964_v34 = vsel %vm871_vm0, %v4950_v41, 2147483647 }
 0x1d9   :  { %v1625_v63 = vshra.s32 %v4964_v34, 16  ;;  %v4968_v26 = vor.u32 %v819_v14, %v4701_v7 }
 0x1db   :  { %v4971_v57 = vcvt.s32.f32 %v1625_v63 }
 0x1df   :  { %v4931_v23 = vpop.xlane.xlu1 %982 }
 0x1e0   :  { %vm984_vm13 = vcmp.eq.f32.partialorder %v4835_v24, %v4931_v23  ;;  %v1008_v24 = vand.u32 65535, %v4778_v0 }
 0x1e7   :  { %v882_v60 = vpop.xlane.xlu1 %881 }
 0x1e8   :  { %v883_v38 = vcvt.f32.s32 %v882_v60  ;;  %v945_v60 = vshll.u32 %v944_v6, 16 }
 0x1ea   :  { %v4939_v56 = vadd.s32 %v885_v52, %v883_v38  ;;  %v970_v38 = vsel %vm969_vm10, %v965_v15, inf }
 0x1eb   :  { %589 = vperm.xlu1 %4191, %v4574_v11  }
 0x1ec   :  { %v1384_v44 = vand.u32 4294967232, %v4939_v56  ;;  %vm1352_vm11 = vcmp.eq.s32.totalorder %v4705_v32, %v4939_v56 }
 0x1ee   :  { %4219 = vrcp.f32 %v1384_v44  ;;  %v4975_v44 = vsel %vm871_vm0, %v4968_v26, 2147483647 }
 0x1ef   :  { %v1054_v45 = vshra.s32 %v4975_v44, 16 }
 0x1f1   :  { %v4980_v46 = vcvt.s32.f32 %v1054_v45  ;;  %v272_v45 = vmul.f32 %v240_v61, %v240_v61 }
 0x1f3   :  { %613 = vperm.xlu1 %4191, %v4604_v17  }
 0x1f4   :  { %v4952_v11 = vpop.eup %4219 }
 0x1f5   :  { %v4960_v29 = vsel %vm1352_vm11, %v4952_v11, 0.0 }
 0x1f7   :  { %971 = vmin.xlane.f32.xlu2 %v970_v38  ;;  %v497_v38 = vmul.f32 %v465_v54, %v465_v54 }
 0x1f9   :  { %v529_v36 = vadd.f32 %v497_v38, %v272_v45  ;;  %v8533_v45 = vmov 2  }
 0x1fb   :  { %625 = vperm.xlu1 %4191, %v4622_v20  }
 0x1ff   :  { %1628 = vmin.xlane.f32.xlu2 %v4971_v57 }
 0x203   :  { %4196 = vset.pattern.permute.xlu1 %v8528_v1 }
 0x207   :  { %1057 = vmin.xlane.f32.xlu2 %v4980_v46 }
 0x209   :  { %v942_v35 = vpop.xlane.xlu2 %941 }
 0x20a   :  { %v943_v52 = vcvt.f32.s32 %v942_v35 }
 0x20c   :  { %v4984_v9 = vadd.s32 %v945_v60, %v943_v52  ;;  %v978_v52 = vand.u32 65535, %v4831_v53 }
 0x20e   :  { %v1388_v12 = vand.u32 4294967232, %v4984_v9  ;;  %vm1356_vm12 = vcmp.eq.s32.totalorder %v4749_v47, %v4984_v9  ;;  %v1624_v9 = vand.u32 65535, %v4964_v34 }
 0x210   :  { %4221 = vrcp.f32 %v1388_v12 }
 0x211   :  { %v4987_v33 = vpop.xlane.xlu2 %1042 }
 0x216   :  { %v4991_v15 = vpop.eup %4221 }
 0x217   :  { %8530 = vst [vmem:[#allocation16_spill] sm:$0xff] %v4991_v15  ;;  %v5001_v14 = vsel %vm1356_vm12, %v4991_v15, 0.0 }
 0x218   :  { %8531 = vst [vmem:[#allocation17_spill] sm:$0xff] %v5001_v14  ;;  %v980_v14 = vcvt.s32.f32 %v978_v52 }
 0x219   :  { %v602_v63 = vpop.permute.xlu2 %601 }
 0x21a   :  { %v690_v6 = vsub.f32 %v602_v63, %v4689_v49  ;;  %v985_v54 = vsel %vm984_vm13, %v980_v14, inf  ;;  %v1010_v14 = vcvt.s32.f32 %v1008_v24 }
 0x21c   :  { %v722_v35 = vmul.f32 %v690_v6, %v690_v6  ;;  %v959_v6 = vcvt.f32.s32 %v4924_v58 }
 0x21e   :  { %v754_v60 = vadd.f32 %v722_v35, %v529_v36  ;;  %v960_v35 = vshll.u32 %v959_v6, 16 }
 0x21f   :  { %380 = vperm.xlu2 %4195, %v4584_v13   ;;  %v5020_v13 = vpop.xlane.xlu0 %1012 }
 0x220   :  { %v820_v40 = vand.u32 4294967232, %v754_v60  ;;  %vm1014_vm14 = vcmp.eq.f32.partialorder %v4789_v10, %v5020_v13  ;;  %v993_v10 = vand.u32 65535, %v4846_v4 }
 0x221   :  { %v1015_v63 = vsel %vm1014_vm14, %v1010_v14, inf  ;;  %v462_v14 = vsub.f32 %v4863_v25, %v4692_v51 }
 0x222   :  { %v5009_v12 = vor.u32 %v820_v40, %v4701_v7  ;;  %v995_v4 = vcvt.s32.f32 %v993_v10 }
 0x223   :  { %v494_v21 = vmul.f32 %v462_v14, %v462_v14 }
 0x224   :  { %8532 = vst [vmem:[#allocation18_spill] sm:$0xff] %v5009_v12  ;;  %v5013_v61 = vsel %vm871_vm0, %v5009_v12, 2147483647 }
 0x225   :  { %986 = vmin.xlane.f32.xlu1 %v985_v54  ;;  %v1069_v53 = vshra.s32 %v5013_v61, 16  ;;  %v5050_v54 = vsel %vm1355_vm8, 2147483647, %v4730_v43 }
 0x226   :  { %8536 = vst [vmem:[#allocation21_spill] sm:$0xff] %v5050_v54  ;;  %v5054_v24 = vsel %vm871_vm0, %v5050_v54, 2147483647 }
 0x227   :  { %392 = vperm.xlu2 %4195, %v4599_v16   ;;  %v5017_v38 = vcvt.s32.f32 %v1069_v53  ;;  %v5027_v16 = vpop.xlane.xlu1 %997  ;;  %v1655_v6 = vshra.s32 %v5054_v24, 16 }
 0x228   :  { %vm999_vm1 = vcmp.eq.f32.partialorder %v4849_v5, %v5027_v16  ;;  %v237_v5 = vsub.f32 %v4667_v37, %v4687_v48  ;;  %v974_v37 = vcvt.f32.s32 %v4929_v27 }
 0x229   :  { %v1000_v53 = vsel %vm999_vm1, %v995_v4, inf }
 0x22d   :  { %1072 = vmin.xlane.f32.xlu1 %v5017_v38 }
 0x22f   :  { %404 = vperm.xlu2 %4195, %v4617_v19   ;;  %v606_v19 = vpop.permute.xlu2 %605 }
 0x235   :  { %1016 = vmin.xlane.f32.xlu1 %v1015_v63 }
 0x237   :  { %4200 = vset.pattern.permute.xlu2 %v8533_v45  ;;  %v5058_v63 = vpop.permute.xlu2 %609 }
 0x23f   :  { %v5067_v25 = vpop.permute.xlu2 %621 }
 0x245   :  { %v957_v36 = vpop.xlane.xlu1 %956 }
 0x246   :  { %v958_v60 = vcvt.f32.s32 %v957_v36  ;;  %v269_v36 = vmul.f32 %v237_v5, %v237_v5 }
 0x248   :  { %v5030_v52 = vadd.s32 %v960_v35, %v958_v60  ;;  %v5064_v60 = vcvt.s32.f32 %v1655_v6  ;;  %v5082_v6 = vsel %vm1352_vm11, 2147483647, %v4705_v32  ;;  %v5099_v32 = vsel %vm1354_vm7, 2147483647, %v4723_v3 }
 0x249   :  { %v5088_v27 = vsel %vm871_vm0, %v5082_v6, 2147483647  ;;  %8538 = vst [vmem:[#allocation23_spill] sm:$0xff] %v5099_v32  ;;  %vm1044_vm7 = vcmp.eq.f32.partialorder %v4872_v28, %v4987_v33  ;;  %v243_v28 = vsub.f32 %v4678_v42, %v4687_v48 }
 0x24a   :  { %v1389_v0 = vand.u32 4294967232, %v5030_v52  ;;  %vm1357_vm15 = vcmp.eq.s32.totalorder %v4800_v8, %v5030_v52 }
 0x24c   :  { %4223 = vrcp.f32 %v1389_v0  ;;  %v526_v0 = vadd.f32 %v494_v21, %v269_v36 }
 0x252   :  { %v5034_v40 = vpop.eup %4223 }
 0x253   :  { %8534 = vst [vmem:[#allocation19_spill] sm:$0xff] %v5034_v40  ;;  %v5042_v58 = vsel %vm1357_vm15, %v5034_v40, 0.0 }
 0x254   :  { %8535 = vst [vmem:[#allocation20_spill] sm:$0xff] %v5042_v58 }
 0x258   :  { %1001 = vmin.xlane.f32.xlu2 %v1000_v53 }
 0x25d   :  { %v590_v43 = vpop.permute.xlu1 %589 }
 0x25e   :  { %v687_v35 = vsub.f32 %v590_v43, %v4689_v49  ;;  %v975_v43 = vshll.u32 %v974_v37, 16  ;;  %v5107_v37 = vsel %vm871_vm0, %v5099_v32, 2147483647 }
 0x260   :  { %v719_v10 = vmul.f32 %v687_v35, %v687_v35  ;;  %1658 = vmin.xlane.f32.xlu2 %v5064_v60 }
 0x262   :  { %v751_v4 = vadd.f32 %v719_v10, %v526_v0 }
 0x264   :  { %v817_v53 = vand.u32 4294967232, %v751_v4  ;;  %v1610_v4 = vshra.s32 %v5088_v27, 16 }
 0x265   :  { %v5130_v12 = vpop.permute.xlu1 %613 }
 0x266   :  { %v5070_v58 = vor.u32 %v817_v53, %v4701_v7  ;;  %v5103_v53 = vcvt.s32.f32 %v1610_v4  ;;  %v691_v4 = vsub.f32 %v606_v19, %v4689_v49 }
 0x268   :  { %8537 = vst [vmem:[#allocation22_spill] sm:$0xff] %v5070_v58  ;;  %v5075_v14 = vsel %vm871_vm0, %v5070_v58, 2147483647 }
 0x269   :  { %v1024_v5 = vshra.s32 %v5075_v14, 16 }
 0x26a   :  { %v972_v21 = vpop.xlane.xlu2 %971 }
 0x26b   :  { %v973_v36 = vcvt.f32.s32 %v972_v21  ;;  %v5084_v35 = vcvt.s32.f32 %v1024_v5  ;;  %v1640_v21 = vshra.s32 %v5107_v37, 16 }
 0x26d   :  { %v5090_v0 = vadd.s32 %v975_v43, %v973_v36  ;;  %1027 = vmin.xlane.f32.xlu0 %v5084_v35  ;;  %v5123_v43 = vcvt.s32.f32 %v1640_v21  ;;  %v241_v36 = vsub.f32 %v4654_v30, %v4687_v48  ;;  %v5139_v30 = vpop.permute.xlu1 %625 }
 0x26f   :  { %v1390_v10 = vand.u32 4294967232, %v5090_v0  ;;  %vm1358_vm2 = vcmp.eq.s32.totalorder %v4815_v50, %v5090_v0  ;;  %v273_v32 = vmul.f32 %v241_v36, %v241_v36  ;;  %v5154_v36 = vld [vmem:[%s8290_s0 + $0xa8] sm:$0xff]  ;;  %v5348_v0 = vsel %vm1357_vm15, 2147483647, %v4800_v8 }
 0x270   :  { %v1654_v8 = vand.u32 65535, %v5054_v24 }
 0x271   :  { %4225 = vrcp.f32 %v1390_v10 }
 0x272   :  { %v5101_v56 = vpop.xlane.xlu2 %1628 }
 0x273   :  { %vm1630_vm6 = vcmp.eq.f32.partialorder %v4971_v57, %v5101_v56 }
 0x275   :  { %1613 = vmin.xlane.f32.xlu0 %v5103_v53 }
 0x277   :  { %v5110_v5 = vpop.eup %4225 }
 0x278   :  { %8539 = vst [vmem:[#allocation24_spill] sm:$0xff] %v5110_v5  ;;  %v5119_v3 = vsel %vm1358_vm2, %v5110_v5, 0.0  ;;  %v723_v5 = vmul.f32 %v691_v4, %v691_v4 }
 0x279   :  { %8540 = vst [vmem:[#allocation25_spill] sm:$0xff] %v5119_v3 }
 0x27a   :  { %v5121_v62 = vpop.xlane.xlu2 %1057 }
 0x27b   :  { %vm1059_vm9 = vcmp.eq.f32.partialorder %v4980_v46, %v5121_v62 }
 0x27d   :  { %1643 = vmin.xlane.f32.xlu0 %v5123_v43 }
 0x282   :  { %v381_v10 = vpop.permute.xlu2 %380 }
 0x283   :  { %v466_v40 = vsub.f32 %v381_v10, %v4692_v51  ;;  %v1019_v10 = vcvt.f32.s32 %v5020_v13  ;;  %v4469_v13 = vld [vmem:[%s8290_s0 + $0x88] sm:$0xff] }
 0x285   :  { %v498_v15 = vmul.f32 %v466_v40, %v466_v40 }
 0x287   :  { %v530_v3 = vadd.f32 %v498_v15, %v273_v32  ;;  %v989_v15 = vcvt.f32.s32 %v4931_v23 }
 0x289   :  { %v755_v1 = vadd.f32 %v723_v5, %v530_v3  ;;  %v990_v32 = vshll.u32 %v989_v15, 16 }
 0x28b   :  { %v821_v54 = vand.u32 4294967232, %v755_v1 }
 0x28d   :  { %v5133_v21 = vor.u32 %v821_v54, %v4701_v7 }
 0x28f   :  { %8541 = vst [vmem:[#allocation26_spill] sm:$0xff] %v5133_v21  ;;  %v5137_v58 = vsel %vm871_vm0, %v5133_v21, 2147483647  ;;  %v8551_v21 = vmov 0  }
 0x290   :  { %v1084_v19 = vshra.s32 %v5137_v58, 16 }
 0x291   :  { %388 = vperm.xlu0 %4193, %v4604_v17  }
 0x292   :  { %v5143_v40 = vcvt.s32.f32 %v1084_v19  ;;  %v1020_v19 = vshll.u32 %v1019_v10, 16 }
 0x294   :  { %8542 = vst [vmem:[#allocation27_spill] sm:$0xff] %v5143_v40  ;;  %1087 = vmin.xlane.f32.xlu1 %v5143_v40 }
 0x298   :  { %v987_v1 = vpop.xlane.xlu1 %986 }
 0x299   :  { %v988_v54 = vcvt.f32.s32 %v987_v1  ;;  %400 = vperm.xlu0 %4193, %v4622_v20  }
 0x29b   :  { %v5148_v5 = vadd.s32 %v990_v32, %v988_v54 }
 0x29d   :  { %v1391_v3 = vand.u32 4294967232, %v5148_v5  ;;  %vm1359_vm3 = vcmp.eq.s32.totalorder %v4824_v39, %v5148_v5 }
 0x29f   :  { %4227 = vrcp.f32 %v1391_v3  ;;  %v5195_v3 = vld [vmem:[%s8290_s0 + $0xb0] sm:$0xff] }
 0x2a0   :  { %v5156_v17 = vpop.xlane.xlu1 %1072 }
 0x2a1   :  { %408 = vperm.xlu0 %4193, %v5154_v36  }
 0x2a5   :  { %v5159_v23 = vpop.eup %4227 }
 0x2a6   :  { %8543 = vst [vmem:[#allocation28_spill] sm:$0xff] %v5159_v23  ;;  %v5168_v20 = vsel %vm1359_vm3, %v5159_v23, 0.0 }
 0x2a7   :  { %8544 = vst [vmem:[#allocation29_spill] sm:$0xff] %v5168_v20 }
 0x2a8   :  { %v1017_v4 = vpop.xlane.xlu1 %1016 }
 0x2a9   :  { %v1018_v15 = vcvt.f32.s32 %v1017_v4  ;;  %416 = vperm.xlu0 %4193, %v4630_v22   ;;  %v5190_v22 = vpop.permute.xlu2 %392  ;;  %v1004_v4 = vcvt.f32.s32 %v5027_v16 }
 0x2ab   :  { %v5171_v1 = vadd.s32 %v1020_v19, %v1018_v15  ;;  %v1005_v15 = vshll.u32 %v1004_v4, 16 }
 0x2ad   :  { %8545 = vst [vmem:[#allocation30_spill] sm:$0xff] %v5171_v1  ;;  %v1393_v32 = vand.u32 4294967232, %v5171_v1  ;;  %384 = vperm.xlu1 %4196, %v4609_v18   ;;  %vm1361_vm4 = vcmp.eq.s32.totalorder %v4771_v59, %v5171_v1 }
 0x2af   :  { %4229 = vrcp.f32 %v1393_v32 }
 0x2b1   :  { %4197 = vset.pattern.permute.xlu0 %v8533_v45  ;;  %v5198_v10 = vpop.permute.xlu2 %404 }
 0x2b2   :  { %617 = vperm.xlu0 %4197, %v4469_v13  }
 0x2b5   :  { %v5179_v54 = vpop.eup %4229  ;;  %396 = vperm.xlu1 %4196, %v4920_v55  }
 0x2b6   :  { %8546 = vst [vmem:[#allocation31_spill] sm:$0xff] %v5179_v54  ;;  %v5188_v18 = vsel %vm1361_vm4, %v5179_v54, 0.0  ;;  %v5209_v54 = vsel %vm1356_vm12, 2147483647, %v4749_v47  ;;  %vm1074_vm12 = vcmp.eq.f32.partialorder %v5017_v38, %v5156_v17  ;;  %v1635_v38 = vcvt.f32.s32 %v5101_v56 }
 0x2b7   :  { %8547 = vst [vmem:[#allocation32_spill] sm:$0xff] %v5188_v18  ;;  %v5213_v20 = vsel %vm871_vm0, %v5209_v54, 2147483647 }
 0x2b8   :  { %v1670_v16 = vshra.s32 %v5213_v20, 16 }
 0x2ba   :  { %v5226_v47 = vcvt.s32.f32 %v1670_v16 }
 0x2bd   :  { %412 = vperm.xlu1 %4196, %v5195_v3  }
 0x2c5   :  { %4199 = vset.pattern.permute.xlu1 %v8533_v45 }
 0x2cb   :  { %v1002_v19 = vpop.xlane.xlu2 %1001 }
 0x2cc   :  { %v1003_v32 = vcvt.f32.s32 %v1002_v19  ;;  %v1626_v19 = vcvt.s32.f32 %v1624_v9 }
 0x2ce   :  { %v5202_v13 = vadd.s32 %v1005_v15, %v1003_v32  ;;  %v1631_v15 = vsel %vm1630_vm6, %v1626_v19, inf }
 0x2d0   :  { %v1392_v18 = vand.u32 4294967232, %v5202_v13  ;;  %vm1360_vm5 = vcmp.eq.s32.totalorder %v4840_v31, %v5202_v13 }
 0x2d2   :  { %4231 = vrcp.f32 %v1392_v18  ;;  %v1038_v18 = vand.u32 65535, %v4869_v2  ;;  %v5245_v2 = vld [vmem:[%s8290_s0 + $0xc8] sm:$0xff] }
 0x2d3   :  { %8550 = vst [vmem:[#allocation35_spill] sm:$0xff] %v5245_v2 }
 0x2d4   :  { %v1040_v32 = vcvt.s32.f32 %v1038_v18  ;;  %v275_v18 = vmul.f32 %v243_v28, %v243_v28 }
 0x2d8   :  { %v5216_v23 = vpop.eup %4231 }
 0x2d9   :  { %8548 = vst [vmem:[#allocation33_spill] sm:$0xff] %v5216_v23  ;;  %v5224_v4 = vsel %vm1360_vm5, %v5216_v23, 0.0  ;;  %v1045_v23 = vsel %vm1044_vm7, %v1040_v32, inf }
 0x2da   :  { %8549 = vst [vmem:[#allocation34_spill] sm:$0xff] %v5224_v4 }
 0x2dc   :  { %1673 = vmin.xlane.f32.xlu0 %v5226_v47 }
 0x2e0   :  { %v5235_v4 = vpop.xlane.xlu0 %1027 }
 0x2e1   :  { %vm1029_vm10 = vcmp.eq.f32.partialorder %v5084_v35, %v5235_v4 }
 0x2e4   :  { %1632 = vmin.xlane.f32.xlu0 %v1631_v15 }
 0x2e7   :  { %1046 = vmin.xlane.f32.xlu1 %v1045_v23  ;;  %v693_v23 = vsub.f32 %v5130_v12, %v4689_v49 }
 0x2e8   :  { %v5237_v16 = vpop.xlane.xlu0 %1613 }
 0x2e9   :  { %v725_v15 = vmul.f32 %v693_v23, %v693_v23  ;;  %vm1615_vm8 = vcmp.eq.f32.partialorder %v5103_v53, %v5237_v16 }
 0x2f0   :  { %v5240_v34 = vpop.xlane.xlu0 %1643 }
 0x2f1   :  { %vm1645_vm1 = vcmp.eq.f32.partialorder %v5123_v43, %v5240_v34 }
 0x2f8   :  { %633 = vperm.xlu0 %4197, %v5154_v36  }
 0x300   :  { %649 = vperm.xlu0 %4197, %v5245_v2  }
 0x303   :  { %v389_v57 = vpop.permute.xlu0 %388 }
 0x304   :  { %v468_v9 = vsub.f32 %v389_v57, %v4692_v51 }
 0x306   :  { %v500_v19 = vmul.f32 %v468_v9, %v468_v9 }
 0x307   :  { %v5273_v9 = vpop.xlane.xlu1 %1087 }
 0x308   :  { %v532_v32 = vadd.f32 %v500_v19, %v275_v18  ;;  %4198 = vset.pattern.permute.xlu0 %v8551_v21  ;;  %v696_v19 = vsub.f32 %v5139_v30, %v4689_v49  ;;  %v5293_v30 = vsel %vm1359_vm3, 2147483647, %v4824_v39 }
 0x309   :  { %158 = vperm.xlu0 %4198, %v4920_v55   ;;  %v8555_v55 = vld [vmem:[#allocation6_spill] sm:$0xff] }
 0x30a   :  { %v757_v1 = vadd.f32 %v725_v15, %v532_v32  ;;  %8557 = vst [vmem:[#allocation6_spill] sm:$0xff] %v5293_v30 }
 0x30b   :  { %v401_v59 = vpop.permute.xlu0 %400 }
 0x30c   :  { %v823_v2 = vand.u32 4294967232, %v757_v1  ;;  %v471_v57 = vsub.f32 %v401_v59, %v4692_v51  ;;  %v246_v1 = vsub.f32 %v8555_v55, %v4687_v48  ;;  %v728_v55 = vmul.f32 %v696_v19, %v696_v19 }
 0x30e   :  { %v5256_v40 = vor.u32 %v823_v2, %v4701_v7  ;;  %v1609_v2 = vand.u32 65535, %v5088_v27  ;;  %v503_v18 = vmul.f32 %v471_v57, %v471_v57  ;;  %v1053_v27 = vand.u32 65535, %v4975_v44 }
 0x30f   :  { %v692_v57 = vsub.f32 %v5058_v63, %v4689_v49 }
 0x310   :  { %8552 = vst [vmem:[#allocation36_spill] sm:$0xff] %v5256_v40  ;;  %v5260_v42 = vsel %vm871_vm0, %v5256_v40, 2147483647  ;;  %v1611_v59 = vcvt.s32.f32 %v1609_v2 }
 0x311   :  { %8553 = vst [vmem:[#allocation37_spill] sm:$0xff] %v5260_v42  ;;  %173 = vperm.xlu0 %4198, %v5154_v36   ;;  %v1114_v12 = vshra.s32 %v5260_v42, 16  ;;  %v278_v36 = vmul.f32 %v246_v1, %v246_v1 }
 0x312   :  { %v1616_v32 = vsel %vm1615_vm8, %v1611_v59, inf }
 0x313   :  { %v5264_v28 = vcvt.s32.f32 %v1114_v12  ;;  %v5267_v23 = vpop.permute.xlu0 %408  ;;  %v535_v15 = vadd.f32 %v503_v18, %v278_v36  ;;  %v8556_v12 = vld [vmem:[#allocation5_spill] sm:$0xff]  ;;  %v1055_v18 = vcvt.s32.f32 %v1053_v27  ;;  %v724_v36 = vmul.f32 %v692_v57, %v692_v57  ;;  %v8559_v27 = vld [vmem:[#allocation2_spill] sm:$0xff] }
 0x314   :  { %v242_v40 = vsub.f32 %v8556_v12, %v4687_v48  ;;  %v244_v57 = vsub.f32 %v8559_v27, %v4687_v48 }
 0x315   :  { %8554 = vst [vmem:[#allocation38_spill] sm:$0xff] %v5264_v28  ;;  %1117 = vmin.xlane.f32.xlu1 %v5264_v28  ;;  %v760_v1 = vadd.f32 %v728_v55, %v535_v15  ;;  %v1060_v59 = vsel %vm1059_vm9, %v1055_v18, inf  ;;  %v5297_v15 = vsel %vm871_vm0, %v5293_v30, 2147483647 }
 0x316   :  { %v274_v2 = vmul.f32 %v242_v40, %v242_v40  ;;  %v1715_v46 = vshra.s32 %v5297_v15, 16  ;;  %v469_v40 = vsub.f32 %v5190_v22, %v4692_v51 }
 0x317   :  { %v826_v63 = vand.u32 4294967232, %v760_v1 }
 0x318   :  { %v5308_v55 = vcvt.s32.f32 %v1715_v46  ;;  %v1023_v46 = vand.u32 65535, %v5075_v14 }
 0x319   :  { %v5301_v5 = vor.u32 %v826_v63, %v4701_v7  ;;  %v5330_v63 = vsel %vm1358_vm2, 2147483647, %v4815_v50 }
 0x31a   :  { %8560 = vst [vmem:[#allocation2_spill] sm:$0xff] %v5330_v63  ;;  %v1025_v14 = vcvt.s32.f32 %v1023_v46 }
 0x31b   :  { %v5284_v28 = vpop.permute.xlu0 %416  ;;  %8558 = vst [vmem:[#allocation5_spill] sm:$0xff] %v5301_v5 }
 0x31d   :  { %1617 = vmin.xlane.f32.xlu1 %v1616_v32 }
 0x31f   :  { %v385_v53 = vpop.permute.xlu1 %384 }
 0x320   :  { %v467_v42 = vsub.f32 %v385_v53, %v4692_v51 }
 0x322   :  { %v499_v44 = vmul.f32 %v467_v42, %v467_v42 }
 0x324   :  { %v531_v19 = vadd.f32 %v499_v44, %v274_v2  ;;  %v618_v39 = vpop.permute.xlu0 %617  ;;  %v5319_v2 = vsel %vm871_vm0, %v5301_v5, 2147483647  ;;  %v501_v44 = vmul.f32 %v469_v40, %v469_v40 }
 0x325   :  { %1061 = vmin.xlane.f32.xlu1 %v1060_v59  ;;  %v694_v53 = vsub.f32 %v618_v39, %v4689_v49 }
 0x326   :  { %v756_v32 = vadd.f32 %v724_v36, %v531_v19  ;;  %v1159_v36 = vshra.s32 %v5319_v2, 16  ;;  %v276_v19 = vmul.f32 %v244_v57, %v244_v57  ;;  %v1030_v57 = vsel %vm1029_vm10, %v1025_v14, inf }
 0x327   :  { %v726_v59 = vmul.f32 %v694_v53, %v694_v53  ;;  %v5352_v53 = vsel %vm871_vm0, %v5348_v0, 2147483647  ;;  %v1068_v14 = vand.u32 65535, %v5013_v61 }
 0x328   :  { %v822_v12 = vand.u32 4294967232, %v756_v32  ;;  %v533_v32 = vadd.f32 %v501_v44, %v276_v19  ;;  %v5338_v39 = vcvt.s32.f32 %v1159_v36  ;;  %v1685_v35 = vshra.s32 %v5352_v53, 16  ;;  %v5358_v44 = vpop.xlane.xlu2 %1658 }
 0x329   :  { %vm1660_vm11 = vcmp.eq.f32.partialorder %v5064_v60, %v5358_v44  ;;  %v5372_v19 = vsel %vm1360_vm5, 2147483647, %v4840_v31  ;;  %v397_v31 = vpop.permute.xlu1 %396 }
 0x32a   :  { %v5306_v42 = vor.u32 %v822_v12, %v4701_v7  ;;  %v5336_v12 = vsel %vm871_vm0, %v5330_v63, 2147483647  ;;  %v758_v40 = vadd.f32 %v726_v59, %v533_v32  ;;  %v5364_v36 = vcvt.s32.f32 %v1685_v35  ;;  %8561 = vst [vmem:[#allocation39_spill] sm:$0xff] %v5372_v19 }
 0x32b   :  { %v1700_v50 = vshra.s32 %v5336_v12, 16  ;;  %v1656_v59 = vcvt.s32.f32 %v1654_v8  ;;  %v5381_v24 = vsel %vm871_vm0, %v5372_v19, 2147483647  ;;  %v1070_v35 = vcvt.s32.f32 %v1068_v14 }
 0x32c   :  { %v5315_v1 = vsel %vm871_vm0, %v5306_v42, 2147483647  ;;  %v824_v27 = vand.u32 4294967232, %v758_v40  ;;  %8562 = vst [vmem:[#allocation40_spill] sm:$0xff] %v5381_v24  ;;  %v1730_v40 = vshra.s32 %v5381_v24, 16 }
 0x32d   :  { %1718 = vmin.xlane.f32.xlu1 %v5308_v55  ;;  %v1099_v22 = vshra.s32 %v5315_v1, 16  ;;  %v1661_v46 = vsel %vm1660_vm11, %v1656_v59, inf }
 0x32e   :  { %v5361_v52 = vor.u32 %v824_v27, %v4701_v7  ;;  %v1669_v27 = vand.u32 65535, %v5213_v20  ;;  %v4471_v20 = vld [vmem:[%s8290_s0 + $0xb8] sm:$0xff] }
 0x32f   :  { %v5323_v18 = vcvt.s32.f32 %v1099_v22  ;;  %v5354_v22 = vcvt.s32.f32 %v1700_v50  ;;  %v5388_v50 = vcvt.s32.f32 %v1730_v40  ;;  %v1049_v40 = vcvt.f32.s32 %v4987_v33 }
 0x330   :  { %v5376_v32 = vsel %vm871_vm0, %v5361_v52, 2147483647  ;;  %v1671_v59 = vcvt.s32.f32 %v1669_v27  ;;  %v1636_v27 = vshll.u32 %v1635_v38, 16 }
 0x331   :  { %1102 = vmin.xlane.f32.xlu2 %v5323_v18  ;;  %v1129_v60 = vshra.s32 %v5376_v32, 16  ;;  %8563 = vst [vmem:[#allocation41_spill] sm:$0xff] %v5388_v50 }
 0x333   :  { %v5385_v13 = vcvt.s32.f32 %v1129_v60  ;;  %v5402_v60 = vpop.permute.xlu1 %412 }
 0x335   :  { %1162 = vmin.xlane.f32.xlu1 %v5338_v39 }
 0x339   :  { %1031 = vmin.xlane.f32.xlu2 %v1030_v57  ;;  %v4470_v57 = vld [vmem:[%s8290_s0 + $0xa0] sm:$0xff] }
 0x33b   :  { %1703 = vmin.xlane.f32.xlu0 %v5354_v22 }
 0x341   :  { %1688 = vmin.xlane.f32.xlu2 %v5364_v36 }
 0x343   :  { %1662 = vmin.xlane.f32.xlu0 %v1661_v46  ;;  %v1075_v46 = vsel %vm1074_vm12, %v1070_v35, inf }
 0x349   :  { %1132 = vmin.xlane.f32.xlu2 %v5385_v13 }
 0x34b   :  { %1733 = vmin.xlane.f32.xlu0 %v5388_v50 }
 0x34e   :  { %629 = vperm.xlu1 %4199, %v4470_v57  }
 0x34f   :  { %v5398_v8 = vpop.xlane.xlu0 %1673 }
 0x350   :  { %vm1675_vm13 = vcmp.eq.f32.partialorder %v5226_v47, %v5398_v8 }
 0x351   :  { %1076 = vmin.xlane.f32.xlu2 %v1075_v46  ;;  %v1676_v61 = vsel %vm1675_vm13, %v1671_v59, inf  ;;  %v1050_v46 = vshll.u32 %v1049_v40, 16 }
 0x353   :  { %1677 = vmin.xlane.f32.xlu0 %v1676_v61  ;;  %v5414_v61 = vld [vmem:[%s8290_s0 + $0xd8] sm:$0xff] }
 0x356   :  { %641 = vperm.xlu1 %4199, %v4471_v20   ;;  %v8565_v20 = vld [vmem:[#allocation9_spill] sm:$0xff] }
 0x357   :  { %v1633_v14 = vpop.xlane.xlu0 %1632 }
 0x358   :  { %v1634_v57 = vcvt.f32.s32 %v1633_v14 }
 0x35a   :  { %v5409_v35 = vadd.s32 %v1636_v27, %v1634_v57  ;;  %v1047_v47 = vpop.xlane.xlu1 %1046  ;;  %v8567_v27 = vld [vmem:[#allocation10_spill] sm:$0xff] }
 0x35b   :  { %v1048_v59 = vcvt.f32.s32 %v1047_v47 }
 0x35c   :  { %8564 = vst [vmem:[#allocation42_spill] sm:$0xff] %v5409_v35  ;;  %v2121_v56 = vand.u32 4294967232, %v5409_v35  ;;  %vm2089_vm14 = vcmp.eq.s32.totalorder %v4950_v41, %v5409_v35 }
 0x35d   :  { %v5417_v19 = vadd.s32 %v1050_v46, %v1048_v59  ;;  %v8570_v46 = vld [vmem:[#allocation8_spill] sm:$0xff] }
 0x35e   :  { %4233 = vrcp.f32 %v2121_v56  ;;  %657 = vperm.xlu1 %4199, %v5414_v61  }
 0x35f   :  { %v1395_v33 = vand.u32 4294967232, %v5417_v19  ;;  %vm1363_vm15 = vcmp.eq.s32.totalorder %v8570_v46, %v5417_v19 }
 0x361   :  { %4235 = vrcp.f32 %v1395_v33 }
 0x364   :  { %v4234_v38 = vpop.eup %4233 }
 0x365   :  { %v5424_v40 = vadd.f32 %v4234_v38, %v8565_v20  ;;  %v2249_v14 = vsel %vm2089_vm14, %v4234_v38, 0.0  ;;  %v470_v38 = vsub.f32 %v397_v31, %v4692_v51 }
 0x366   :  { %v5430_v57 = vadd.f32 %v2249_v14, %v8567_v27  ;;  %4201 = vset.pattern.permute.xlu1 %v8551_v21  ;;  %v695_v14 = vsub.f32 %v5067_v25, %v4689_v49 }
 0x367   :  { %8566 = vst [vmem:[#allocation9_spill] sm:$0xff] %v5424_v40  ;;  %v5433_v47 = vpop.eup %4235 }
 0x368   :  { %8568 = vst [vmem:[#allocation10_spill] sm:$0xff] %v5430_v57  ;;  %v5441_v59 = vsel %vm1363_vm15, %v5433_v47, 0.0  ;;  %v502_v57 = vmul.f32 %v470_v38, %v470_v38  ;;  %v727_v63 = vmul.f32 %v695_v14, %v695_v14  ;;  %v1620_v38 = vcvt.f32.s32 %v5237_v16 }
 0x369   :  { %8569 = vst [vmem:[#allocation43_spill] sm:$0xff] %v5433_v47 }
 0x36a   :  { %8571 = vst [vmem:[#allocation8_spill] sm:$0xff] %v5441_v59  ;;  %v634_v56 = vpop.permute.xlu0 %633 }
 0x372   :  { %v5443_v33 = vpop.permute.xlu0 %649 }
 0x373   :  { %8572 = vst [vmem:[#allocation44_spill] sm:$0xff] %v5443_v33 }
 0x37b   :  { %v159_v20 = vpop.permute.xlu0 %158 }
 0x37c   :  { %v245_v27 = vsub.f32 %v159_v20, %v4687_v48 }
 0x37e   :  { %v277_v40 = vmul.f32 %v245_v27, %v245_v27  ;;  %v698_v27 = vsub.f32 %v634_v56, %v4689_v49 }
 0x380   :  { %v534_v30 = vadd.f32 %v502_v57, %v277_v40  ;;  %v1621_v40 = vshll.u32 %v1620_v38, 16  ;;  %v730_v38 = vmul.f32 %v698_v27, %v698_v27 }
 0x382   :  { %v759_v50 = vadd.f32 %v727_v63, %v534_v30  ;;  %v1639_v63 = vand.u32 65535, %v5107_v37 }
 0x383   :  { %v174_v25 = vpop.permute.xlu0 %173 }
 0x384   :  { %v825_v24 = vand.u32 4294967232, %v759_v50  ;;  %v248_v30 = vsub.f32 %v174_v25, %v4687_v48  ;;  %v1064_v25 = vcvt.f32.s32 %v5121_v62 }
 0x386   :  { %v5450_v47 = vor.u32 %v825_v24, %v4701_v7  ;;  %v473_v24 = vsub.f32 %v5267_v23, %v4692_v51  ;;  %v280_v20 = vmul.f32 %v248_v30, %v248_v30 }
 0x388   :  { %8573 = vst [vmem:[#allocation45_spill] sm:$0xff] %v5450_v47  ;;  %v5452_v59 = vpop.xlane.xlu1 %1117  ;;  %v5456_v31 = vsel %vm871_vm0, %v5450_v47, 2147483647  ;;  %v505_v16 = vmul.f32 %v473_v24, %v473_v24 }
 0x389   :  { %v1144_v33 = vshra.s32 %v5456_v31, 16 }
 0x38a   :  { %v537_v23 = vadd.f32 %v505_v16, %v280_v20  ;;  %v1034_v16 = vcvt.f32.s32 %v5235_v4  ;;  %v5524_v4 = vld [vmem:[%s8290_s0 + $0xc0] sm:$0xff] }
 0x38b   :  { %v5459_v5 = vcvt.s32.f32 %v1144_v33  ;;  %v1641_v33 = vcvt.s32.f32 %v1639_v63 }
 0x38c   :  { %v762_v43 = vadd.f32 %v730_v38, %v537_v23 }
 0x38d   :  { %8574 = vst [vmem:[#allocation46_spill] sm:$0xff] %v5459_v5  ;;  %1147 = vmin.xlane.f32.xlu2 %v5459_v5  ;;  %v1646_v47 = vsel %vm1645_vm1, %v1641_v33, inf  ;;  %v1065_v5 = vshll.u32 %v1064_v25, 16 }
 0x38e   :  { %v828_v24 = vand.u32 4294967232, %v762_v43 }
 0x390   :  { %v1618_v50 = vpop.xlane.xlu1 %1617 }
 0x391   :  { %v1619_v57 = vcvt.f32.s32 %v1618_v50 }
 0x393   :  { %v5469_v14 = vadd.s32 %v1621_v40, %v1619_v57 }
 0x395   :  { %8575 = vst [vmem:[#allocation47_spill] sm:$0xff] %v5469_v14  ;;  %v2120_v37 = vand.u32 4294967232, %v5469_v14  ;;  %1647 = vmin.xlane.f32.xlu2 %v1646_v47  ;;  %vm2088_vm2 = vcmp.eq.s32.totalorder %v5082_v6, %v5469_v14 }
 0x397   :  { %4237 = vrcp.f32 %v2120_v37  ;;  %v1035_v37 = vshll.u32 %v1034_v16, 16 }
 0x398   :  { %v1062_v50 = vpop.xlane.xlu1 %1061 }
 0x399   :  { %v1063_v35 = vcvt.f32.s32 %v1062_v50 }
 0x39b   :  { %v5474_v30 = vadd.s32 %v1065_v5, %v1063_v35  ;;  %v1098_v5 = vand.u32 65535, %v5315_v1  ;;  %v5490_v35 = vor.u32 %v828_v24, %v4701_v7 }
 0x39d   :  { %v4238_v63 = vpop.eup %4237  ;;  %v1396_v56 = vand.u32 4294967232, %v5474_v30  ;;  %8578 = vst [vmem:[#allocation50_spill] sm:$0xff] %v5490_v35  ;;  %v1100_v20 = vcvt.s32.f32 %v1098_v5  ;;  %vm1364_vm3 = vcmp.eq.s32.totalorder %v4968_v26, %v5474_v30  ;;  %v5508_v1 = vsel %vm871_vm0, %v5490_v35, 2147483647 }
 0x39e   :  { %v5480_v62 = vadd.f32 %v4238_v63, %v4952_v11  ;;  %v2248_v47 = vsel %vm2088_vm2, %v4238_v63, 0.0  ;;  %8581 = vst [vmem:[#allocation53_spill] sm:$0xff] %v5508_v1  ;;  %v1189_v27 = vshra.s32 %v5508_v1, 16  ;;  %v8583_v63 = vld [vmem:[#allocation22_spill] sm:$0xff] }
 0x39f   :  { %v5486_v40 = vadd.f32 %v2248_v47, %v4960_v29  ;;  %4239 = vrcp.f32 %v1396_v56  ;;  %v1665_v47 = vcvt.f32.s32 %v5358_v44 }
 0x3a0   :  { %8576 = vst [vmem:[#allocation48_spill] sm:$0xff] %v5480_v62  ;;  %v5515_v38 = vpop.xlane.xlu1 %1718  ;;  %v475_v62 = vsub.f32 %v5284_v28, %v4692_v51 }
 0x3a1   :  { %8577 = vst [vmem:[#allocation49_spill] sm:$0xff] %v5486_v40  ;;  %v8590_v40 = vld [vmem:[#allocation21_spill] sm:$0xff] }
 0x3a4   :  { %v5492_v57 = vpop.xlane.xlu2 %1102 }
 0x3a5   :  { %v5494_v33 = vpop.eup %4239  ;;  %vm1104_vm5 = vcmp.eq.f32.partialorder %v5323_v18, %v5492_v57  ;;  %v5513_v18 = vcvt.s32.f32 %v1189_v27 }
 0x3a6   :  { %8579 = vst [vmem:[#allocation51_spill] sm:$0xff] %v5494_v33  ;;  %v5504_v11 = vsel %vm1364_vm3, %v5494_v33, 0.0  ;;  %v1105_v29 = vsel %vm1104_vm5, %v1100_v20, inf }
 0x3a7   :  { %8580 = vst [vmem:[#allocation52_spill] sm:$0xff] %v5504_v11  ;;  %1106 = vmin.xlane.f32.xlu1 %v1105_v29 }
 0x3a8   :  { %8582 = vst [vmem:[#allocation54_spill] sm:$0xff] %v5513_v18 }
 0x3ac   :  { %v1032_v25 = vpop.xlane.xlu2 %1031 }
 0x3ad   :  { %v1033_v23 = vcvt.f32.s32 %v1032_v25  ;;  %637 = vperm.xlu2 %4200, %v5195_v3   ;;  %v1666_v25 = vshll.u32 %v1665_v47, 16 }
 0x3ae   :  { %v5517_v50 = vpop.xlane.xlu0 %1703 }
 0x3af   :  { %v1036_v43 = vadd.s32 %v1035_v37, %v1033_v23  ;;  %1192 = vmin.xlane.f32.xlu1 %v5513_v18  ;;  %v5542_v23 = vpop.xlane.xlu1 %1162  ;;  %v8596_v18 = vld [vmem:[#allocation4_spill] sm:$0xff]  ;;  %vm1705_vm5 = vcmp.eq.f32.partialorder %v5354_v22, %v5517_v50  ;;  %v8630_v22 = vld [vmem:[#allocation26_spill] sm:$0xff] }
 0x3b0   :  { %v250_v1 = vsub.f32 %v8596_v18, %v4687_v48  ;;  %vm1164_vm1 = vcmp.eq.f32.partialorder %v5338_v39, %v5542_v23  ;;  %v5757_v39 = vsel %vm1363_vm15, 2147483647, %v8570_v46  ;;  %vm1720_vm15 = vcmp.eq.f32.partialorder %v5308_v55, %v5515_v38 }
 0x3b1   :  { %vm1362_vm6 = vcmp.eq.s32.totalorder %v8583_v63, %v1036_v43  ;;  %v1394_v56 = vand.u32 4294967232, %v1036_v43  ;;  %v5774_v19 = vsel %vm871_vm0, %v5757_v39, 2147483647 }
 0x3b2   :  { %v5529_v24 = vsel %vm1362_vm6, 2147483647, %v8583_v63  ;;  %v1680_v63 = vcvt.f32.s32 %v5398_v8  ;;  %v8595_v8 = vmov 1  }
 0x3b3   :  { %8584 = vst [vmem:[#allocation22_spill] sm:$0xff] %v5529_v24  ;;  %4241 = vrcp.f32 %v1394_v56  ;;  %v5534_v5 = vsel %vm871_vm0, %v5529_v24, 2147483647 }
 0x3b4   :  { %8585 = vst [vmem:[#allocation55_spill] sm:$0xff] %v5534_v5  ;;  %v5536_v20 = vpop.xlane.xlu2 %1688  ;;  %v1760_v29 = vshra.s32 %v5534_v5, 16  ;;  %v1681_v28 = vshll.u32 %v1680_v63, 16 }
 0x3b5   :  { %645 = vperm.xlu2 %4200, %v5524_v4  }
 0x3b6   :  { %v1663_v16 = vpop.xlane.xlu0 %1662  ;;  %v5540_v27 = vcvt.s32.f32 %v1760_v29  ;;  %v5557_v29 = vld [vmem:[%s8290_s0 + $0xd0] sm:$0xff] }
 0x3b7   :  { %v1664_v37 = vcvt.f32.s32 %v1663_v16 }
 0x3b8   :  { %8586 = vst [vmem:[#allocation56_spill] sm:$0xff] %v5540_v27  ;;  %1763 = vmin.xlane.f32.xlu0 %v5540_v27  ;;  %v8593_v27 = vld [vmem:[#allocation14_spill] sm:$0xff] }
 0x3b9   :  { %v5545_v44 = vpop.eup %4241  ;;  %v5547_v56 = vadd.s32 %v1666_v25, %v1664_v37  ;;  %v1079_v37 = vcvt.f32.s32 %v5156_v17 }
 0x3ba   :  { %8587 = vst [vmem:[#allocation57_spill] sm:$0xff] %v5545_v44  ;;  %v5552_v11 = vsel %vm1362_vm6, %v5545_v44, 0.0 }
 0x3bb   :  { %8588 = vst [vmem:[#allocation58_spill] sm:$0xff] %v5552_v11  ;;  %v2123_v47 = vand.u32 4294967232, %v5547_v56  ;;  %vm2091_vm7 = vcmp.eq.s32.totalorder %v8590_v40, %v5547_v56  ;;  %v8591_v11 = vld [vmem:[#allocation13_spill] sm:$0xff]  ;;  %v1080_v35 = vshll.u32 %v1079_v37, 16 }
 0x3bc   :  { %v5560_v16 = vpop.xlane.xlu2 %1132 }
 0x3bd   :  { %4243 = vrcp.f32 %v2123_v47  ;;  %653 = vperm.xlu2 %4200, %v5557_v29   ;;  %vm1134_vm11 = vcmp.eq.f32.partialorder %v5385_v13, %v5560_v16 }
 0x3be   :  { %v5563_v33 = vpop.xlane.xlu0 %1733 }
 0x3bf   :  { %8589 = vst [vmem:[#allocation59_spill] sm:$0xff] %v5563_v33 }
 0x3c0   :  { %v630_v25 = vpop.permute.xlu1 %629 }
 0x3c3   :  { %v4244_v43 = vpop.eup %4243 }
 0x3c4   :  { %v5572_v44 = vadd.f32 %v4244_v43, %v8591_v11  ;;  %v2251_v47 = vsel %vm2091_vm7, %v4244_v43, 0.0  ;;  %v1077_v24 = vpop.xlane.xlu2 %1076 }
 0x3c5   :  { %v5578_v17 = vadd.f32 %v2251_v47, %v8593_v27  ;;  %v1078_v5 = vcvt.f32.s32 %v1077_v24  ;;  %4202 = vset.pattern.permute.xlu2 %v8595_v8  ;;  %v282_v27 = vmul.f32 %v250_v1, %v250_v1 }
 0x3c6   :  { %8592 = vst [vmem:[#allocation21_spill] sm:$0xff] %v5572_v44  ;;  %v1678_v33 = vpop.xlane.xlu0 %1677  ;;  %v507_v44 = vmul.f32 %v475_v62, %v475_v62 }
 0x3c7   :  { %8594 = vst [vmem:[#allocation13_spill] sm:$0xff] %v5578_v17  ;;  %v5583_v41 = vadd.s32 %v1080_v35, %v1078_v5  ;;  %v1679_v11 = vcvt.f32.s32 %v1678_v33 }
 0x3c8   :  { %v642_v14 = vpop.permute.xlu1 %641  ;;  %178 = vperm.xlu1 %4201, %v5195_v3   ;;  %v539_v18 = vadd.f32 %v507_v44, %v282_v27  ;;  %v8598_v3 = vld [vmem:[#allocation18_spill] sm:$0xff]  ;;  %v8601_v44 = vld [vmem:[#allocation16_spill] sm:$0xff] }
 0x3c9   :  { %v1397_v37 = vand.u32 4294967232, %v5583_v41  ;;  %v5587_v43 = vadd.s32 %v1681_v28, %v1679_v11  ;;  %v700_v24 = vsub.f32 %v642_v14, %v4689_v49  ;;  %vm1365_vm8 = vcmp.eq.s32.totalorder %v8598_v3, %v5583_v41  ;;  %v8603_v11 = vld [vmem:[#allocation17_spill] sm:$0xff] }
 0x3cb   :  { %4245 = vrcp.f32 %v1397_v37  ;;  %v2124_v47 = vand.u32 4294967232, %v5587_v43  ;;  %v732_v17 = vmul.f32 %v700_v24, %v700_v24  ;;  %vm2092_vm9 = vcmp.eq.s32.totalorder %v5209_v54, %v5587_v43  ;;  %v5624_v24 = vld [vmem:[%s8290_s0 + $0xe0] sm:$0xff] }
 0x3cd   :  { %4247 = vrcp.f32 %v2124_v47  ;;  %v764_v35 = vadd.f32 %v732_v17, %v539_v18  ;;  %v472_v47 = vsub.f32 %v5198_v10, %v4692_v51 }
 0x3cf   :  { %v830_v5 = vand.u32 4294967232, %v764_v35  ;;  %v8606_v35 = vld [vmem:[#allocation3_spill] sm:$0xff] }
 0x3d0   :  { %198 = vperm.xlu1 %4201, %v5557_v29  }
 0x3d1   :  { %v5592_v62 = vpop.eup %4245  ;;  %v5603_v33 = vor.u32 %v830_v5, %v4701_v7  ;;  %v247_v5 = vsub.f32 %v8606_v35, %v4687_v48  ;;  %v8608_v35 = vld [vmem:[#allocation7_spill] sm:$0xff] }
 0x3d2   :  { %8597 = vst [vmem:[#allocation14_spill] sm:$0xff] %v5592_v62  ;;  %v5600_v14 = vsel %vm1365_vm8, %v5592_v62, 0.0 }
 0x3d3   :  { %8599 = vst [vmem:[#allocation4_spill] sm:$0xff] %v5600_v14  ;;  %v4248_v1 = vpop.eup %4247  ;;  %v5615_v28 = vsel %vm871_vm0, %v5603_v33, 2147483647 }
 0x3d4   :  { %8600 = vst [vmem:[#allocation18_spill] sm:$0xff] %v5603_v33  ;;  %v5608_v63 = vadd.f32 %v4248_v1, %v8601_v44  ;;  %v2252_v17 = vsel %vm2092_vm9, %v4248_v1, 0.0  ;;  %v1219_v27 = vshra.s32 %v5615_v28, 16  ;;  %v697_v1 = vsub.f32 %v630_v25, %v4689_v49  ;;  %v8607_v25 = vld [vmem:[#allocation27_spill] sm:$0xff] }
 0x3d5   :  { %v5618_v37 = vadd.f32 %v2252_v17, %v8603_v11  ;;  %v504_v44 = vmul.f32 %v472_v47, %v472_v47  ;;  %v279_v17 = vmul.f32 %v247_v5, %v247_v5  ;;  %vm1089_vm10 = vcmp.eq.f32.partialorder %v8607_v25, %v5273_v9 }
 0x3d6   :  { %8602 = vst [vmem:[#allocation16_spill] sm:$0xff] %v5608_v63  ;;  %v5628_v18 = vcvt.s32.f32 %v1219_v27  ;;  %v729_v11 = vmul.f32 %v697_v1, %v697_v1  ;;  %v1083_v27 = vand.u32 65535, %v5137_v58  ;;  %v5649_v5 = vsel %vm1361_vm4, 2147483647, %v8608_v35 }
 0x3d7   :  { %8604 = vst [vmem:[#allocation17_spill] sm:$0xff] %v5618_v37  ;;  %v5638_v37 = vld [vmem:[%s8290_s0 + $0xe8] sm:$0xff]  ;;  %v536_v10 = vadd.f32 %v504_v44, %v279_v17  ;;  %v5653_v58 = vsel %vm871_vm0, %v5649_v5, 2147483647  ;;  %vm1690_vm4 = vcmp.eq.f32.partialorder %v5364_v36, %v5536_v20 }
 0x3d8   :  { %8605 = vst [vmem:[#allocation60_spill] sm:$0xff] %v5628_v18  ;;  %208 = vperm.xlu1 %4201, %v5624_v24   ;;  %1222 = vmin.xlane.f32.xlu0 %v5628_v18  ;;  %v1085_v1 = vcvt.s32.f32 %v1083_v27  ;;  %v1745_v44 = vshra.s32 %v5653_v58, 16  ;;  %v5677_v27 = vld [vmem:[%s8290_s0 + $0xf0] sm:$0xff] }
 0x3d9   :  { %v761_v63 = vadd.f32 %v729_v11, %v536_v10  ;;  %8610 = vst [vmem:[#allocation3_spill] sm:$0xff] %v5649_v5 }
 0x3da   :  { %v1090_v62 = vsel %vm1089_vm10, %v1085_v1, inf  ;;  %v5660_v11 = vcvt.s32.f32 %v1745_v44  ;;  %v1128_v1 = vand.u32 65535, %v5376_v32  ;;  %v1650_v44 = vcvt.f32.s32 %v5240_v34  ;;  %v5694_v34 = vpop.permute.xlu1 %657  ;;  %v5699_v32 = vld [vmem:[%s8290_s0 + $0xf8] sm:$0xff] }
 0x3db   :  { %v827_v14 = vand.u32 4294967232, %v761_v63 }
 0x3dc   :  { %v1130_v36 = vcvt.s32.f32 %v1128_v1  ;;  %v8615_v1 = vld [vmem:[#allocation11_spill] sm:$0xff] }
 0x3dd   :  { %v5657_v17 = vor.u32 %v827_v14, %v4701_v7  ;;  %v1684_v14 = vand.u32 65535, %v5352_v53  ;;  %v8613_v53 = vld [vmem:[#allocation35_spill] sm:$0xff] }
 0x3de   :  { %v1135_v5 = vsel %vm1134_vm11, %v1130_v36, inf }
 0x3df   :  { %8611 = vst [vmem:[#allocation27_spill] sm:$0xff] %v5657_v17  ;;  %v5665_v63 = vsel %vm871_vm0, %v5657_v17, 2147483647  ;;  %v1686_v25 = vcvt.s32.f32 %v1684_v14  ;;  %v1651_v14 = vshll.u32 %v1650_v44, 16  ;;  %v8617_v44 = vld [vmem:[#allocation12_spill] sm:$0xff] }
 0x3e0   :  { %4204 = vset.pattern.permute.xlu1 %v8533_v45  ;;  %v1174_v10 = vshra.s32 %v5665_v63, 16 }
 0x3e1   :  { %665 = vperm.xlu1 %4204, %v5638_v37   ;;  %v1691_v35 = vsel %vm1690_vm4, %v1686_v25, inf }
 0x3e6   :  { %1091 = vmin.xlane.f32.xlu2 %v1090_v62  ;;  %v5669_v62 = vcvt.s32.f32 %v1174_v10 }
 0x3e9   :  { %4206 = vset.pattern.permute.xlu1 %v8595_v8 }
 0x3ec   :  { %188 = vperm.xlu0 %4198, %v5524_v4  }
 0x3ee   :  { %1748 = vmin.xlane.f32.xlu2 %v5660_v11 }
 0x3f4   :  { %213 = vperm.xlu0 %4198, %v5638_v37  }
 0x3f6   :  { %1177 = vmin.xlane.f32.xlu2 %v5669_v62 }
 0x3fc   :  { %218 = vperm.xlu0 %4198, %v5677_v27  }
 0x3fe   :  { %1692 = vmin.xlane.f32.xlu2 %v1691_v35 }
 0x400   :  { %v5682_v47 = vpop.xlane.xlu2 %1147 }
 0x401   :  { %8612 = vst [vmem:[#allocation7_spill] sm:$0xff] %v5682_v47 }
 0x404   :  { %4207 = vset.pattern.permute.xlu0 %v8595_v8  ;;  %v8614_v8 = vld [vmem:[#allocation23_spill] sm:$0xff] }
 0x405   :  { %424 = vperm.xlu0 %4207, %v8613_v53  }
 0x408   :  { %v1648_v10 = vpop.xlane.xlu2 %1647 }
 0x409   :  { %v1649_v33 = vcvt.f32.s32 %v1648_v10 }
 0x40b   :  { %v5690_v25 = vadd.s32 %v1651_v14, %v1649_v33  ;;  %1136 = vmin.xlane.f32.xlu1 %v1135_v5 }
 0x40d   :  { %v2122_v35 = vand.u32 4294967232, %v5690_v25  ;;  %428 = vperm.xlu0 %4207, %v5557_v29   ;;  %vm2090_vm12 = vcmp.eq.s32.totalorder %v8614_v8, %v5690_v25  ;;  %v1109_v29 = vcvt.f32.s32 %v5492_v57 }
 0x40f   :  { %4249 = vrcp.f32 %v2122_v35  ;;  %v1110_v14 = vshll.u32 %v1109_v29, 16  ;;  %v474_v29 = vsub.f32 %v5402_v60, %v4692_v51 }
 0x415   :  { %v4250_v13 = vpop.eup %4249  ;;  %448 = vperm.xlu0 %4207, %v5699_v32  }
 0x416   :  { %v5704_v33 = vadd.f32 %v4250_v13, %v8615_v1  ;;  %v2250_v5 = vsel %vm2090_vm12, %v4250_v13, 0.0  ;;  %436 = vperm.xlu2 %4202, %v5624_v24  }
 0x417   :  { %v5713_v10 = vadd.f32 %v2250_v5, %v8617_v44  ;;  %v638_v44 = vpop.permute.xlu2 %637 }
 0x418   :  { %8616 = vst [vmem:[#allocation30_spill] sm:$0xff] %v5704_v33 }
 0x419   :  { %8618 = vst [vmem:[#allocation35_spill] sm:$0xff] %v5713_v10 }
 0x41a   :  { %v1107_v36 = vpop.xlane.xlu1 %1106 }
 0x41b   :  { %v1108_v35 = vcvt.f32.s32 %v1107_v36 }
 0x41d   :  { %v5715_v17 = vadd.s32 %v1110_v14, %v1108_v35  ;;  %4210 = vset.pattern.permute.xlu0 %v8533_v45  ;;  %v699_v14 = vsub.f32 %v638_v44, %v4689_v49 }
 0x41e   :  { %4203 = vset.pattern.permute.xlu2 %v8533_v45 }
 0x41f   :  { %v1399_v13 = vand.u32 4294967232, %v5715_v17  ;;  %661 = vperm.xlu2 %4203, %v5624_v24   ;;  %vm1367_vm13 = vcmp.eq.s32.totalorder %v5306_v42, %v5715_v17  ;;  %v1158_v24 = vand.u32 65535, %v5319_v2 }
 0x421   :  { %4251 = vrcp.f32 %v1399_v13  ;;  %v506_v13 = vmul.f32 %v474_v29, %v474_v29  ;;  %v1160_v60 = vcvt.s32.f32 %v1158_v24 }
 0x422   :  { %v5732_v5 = vpop.xlane.xlu1 %1192 }
 0x423   :  { %8621 = vst [vmem:[#allocation12_spill] sm:$0xff] %v5732_v5  ;;  %v1165_v10 = vsel %vm1164_vm1, %v1160_v60, inf }
 0x427   :  { %v5721_v1 = vpop.eup %4251  ;;  %4205 = vset.pattern.permute.xlu2 %v8551_v21  ;;  %v5743_v21 = vsel %vm1364_vm3, 2147483647, %v4968_v26 }
 0x428   :  { %8619 = vst [vmem:[#allocation23_spill] sm:$0xff] %v5721_v1  ;;  %v5730_v57 = vsel %vm1367_vm13, %v5721_v1, 0.0  ;;  %v731_v1 = vmul.f32 %v699_v14, %v699_v14  ;;  %v5749_v44 = vsel %vm871_vm0, %v5743_v21, 2147483647  ;;  %v5766_v14 = vpop.permute.xlu2 %645 }
 0x429   :  { %8620 = vst [vmem:[#allocation11_spill] sm:$0xff] %v5730_v57  ;;  %v1790_v26 = vshra.s32 %v5749_v44, 16 }
 0x42a   :  { %8622 = vst [vmem:[#allocation61_spill] sm:$0xff] %v5743_v21 }
 0x42b   :  { %8623 = vst [vmem:[#allocation62_spill] sm:$0xff] %v5749_v44 }
 0x43a   :  { %v179_v36 = vpop.permute.xlu1 %178 }
 0x43b   :  { %v249_v35 = vsub.f32 %v179_v36, %v4687_v48  ;;  %v8624_v36 = vld [vmem:[#allocation37_spill] sm:$0xff] }
 0x43c   :  { %v1113_v33 = vand.u32 65535, %v8624_v36  ;;  %8625 = vst [vmem:[#allocation37_spill] sm:$0xff] %v5757_v39  ;;  %v5789_v36 = vpop.permute.xlu2 %653  ;;  %v8635_v39 = vld [vmem:[#allocation20_spill] sm:$0xff] }
 0x43d   :  { %v281_v57 = vmul.f32 %v249_v35, %v249_v35  ;;  %v1775_v35 = vshra.s32 %v5774_v19, 16 }
 0x43e   :  { %v1115_v29 = vcvt.s32.f32 %v1113_v33 }
 0x43f   :  { %v538_v2 = vadd.f32 %v506_v13, %v281_v57  ;;  %1166 = vmin.xlane.f32.xlu0 %v1165_v10  ;;  %v8626_v57 = vld [vmem:[#allocation38_spill] sm:$0xff]  ;;  %v5764_v10 = vcvt.s32.f32 %v1790_v26  ;;  %v1714_v13 = vand.u32 65535, %v5297_v15  ;;  %v5783_v60 = vcvt.s32.f32 %v1775_v35 }
 0x440   :  { %vm1119_vm3 = vcmp.eq.f32.partialorder %v8626_v57, %v5452_v59  ;;  %v1094_v15 = vcvt.f32.s32 %v5273_v9 }
 0x441   :  { %v763_v18 = vadd.f32 %v731_v1, %v538_v2  ;;  %8628 = vst [vmem:[#allocation63_spill] sm:$0xff] %v5764_v10  ;;  %v1120_v1 = vsel %vm1119_vm3, %v1115_v29, inf  ;;  %v1699_v2 = vand.u32 65535, %v5336_v12  ;;  %v1716_v26 = vcvt.s32.f32 %v1714_v13 }
 0x442   :  { %v5799_v13 = vpop.permute.xlu1 %198 }
 0x443   :  { %v829_v30 = vand.u32 4294967232, %v763_v18  ;;  %v1701_v57 = vcvt.s32.f32 %v1699_v2  ;;  %v5811_v2 = vpop.xlane.xlu0 %1763 }
 0x445   :  { %v5762_v24 = vor.u32 %v829_v30, %v4701_v7  ;;  %v1721_v30 = vsel %vm1720_vm15, %v1716_v26, inf  ;;  %v1706_v29 = vsel %vm1705_vm5, %v1701_v57, inf }
 0x447   :  { %8627 = vst [vmem:[#allocation38_spill] sm:$0xff] %v5762_v24  ;;  %v5770_v18 = vsel %vm871_vm0, %v5762_v24, 2147483647  ;;  %1793 = vmin.xlane.f32.xlu0 %v5764_v10 }
 0x448   :  { %1121 = vmin.xlane.f32.xlu2 %v1120_v1  ;;  %v1204_v46 = vshra.s32 %v5770_v18, 16 }
 0x44a   :  { %v5778_v33 = vcvt.s32.f32 %v1204_v46  ;;  %v1095_v46 = vshll.u32 %v1094_v15, 16  ;;  %v5815_v57 = vpop.permute.xlu1 %208  ;;  %v1695_v15 = vcvt.f32.s32 %v5536_v20  ;;  %v1139_v20 = vcvt.f32.s32 %v5560_v16 }
 0x44c   :  { %1207 = vmin.xlane.f32.xlu1 %v5778_v33 }
 0x450   :  { %1778 = vmin.xlane.f32.xlu2 %v5783_v60 }
 0x454   :  { %1722 = vmin.xlane.f32.xlu1 %v1721_v30 }
 0x458   :  { %1707 = vmin.xlane.f32.xlu2 %v1706_v29  ;;  %v5820_v29 = vpop.xlane.xlu0 %1222 }
 0x459   :  { %v1092_v1 = vpop.xlane.xlu2 %1091  ;;  %8632 = vst [vmem:[#allocation65_spill] sm:$0xff] %v5820_v29 }
 0x45a   :  { %v1093_v35 = vcvt.f32.s32 %v1092_v1 }
 0x45c   :  { %v5794_v21 = vadd.s32 %v1095_v46, %v1093_v35  ;;  %v1696_v46 = vshll.u32 %v1695_v15, 16 }
 0x45e   :  { %v1398_v55 = vand.u32 4294967232, %v5794_v21  ;;  %vm1366_vm6 = vcmp.eq.s32.totalorder %v8630_v22, %v5794_v21 }
 0x460   :  { %4253 = vrcp.f32 %v1398_v55 }
 0x461   :  { %v5797_v12 = vpop.xlane.xlu2 %1748 }
 0x466   :  { %v5801_v26 = vpop.eup %4253 }
 0x467   :  { %8629 = vst [vmem:[#allocation64_spill] sm:$0xff] %v5801_v26  ;;  %v5809_v9 = vsel %vm1366_vm6, %v5801_v26, 0.0 }
 0x468   :  { %8631 = vst [vmem:[#allocation26_spill] sm:$0xff] %v5809_v9  ;;  %v5824_v9 = vpop.permute.xlu1 %665 }
 0x469   :  { %v5813_v30 = vpop.xlane.xlu2 %1177 }
 0x46a   :  { %vm1179_vm5 = vcmp.eq.f32.partialorder %v5669_v62, %v5813_v30 }
 0x46d   :  { %420 = vperm.xlu1 %4206, %v5524_v4   ;;  %v5829_v4 = vpop.permute.xlu0 %188 }
 0x470   :  { %193 = vperm.xlu2 %4205, %v8613_v53  }
 0x471   :  { %v1693_v1 = vpop.xlane.xlu2 %1692 }
 0x472   :  { %v1694_v35 = vcvt.f32.s32 %v1693_v1  ;;  %v1140_v1 = vshll.u32 %v1139_v20, 16 }
 0x474   :  { %v5822_v55 = vadd.s32 %v1696_v46, %v1694_v35  ;;  %v8633_v46 = vld [vmem:[#allocation19_spill] sm:$0xff] }
 0x475   :  { %432 = vperm.xlu1 %4206, %v5414_v61  }
 0x476   :  { %v2125_v26 = vand.u32 4294967232, %v5822_v55  ;;  %vm2093_vm10 = vcmp.eq.s32.totalorder %v5348_v0, %v5822_v55 }
 0x478   :  { %4255 = vrcp.f32 %v2125_v26  ;;  %203 = vperm.xlu2 %4205, %v5414_v61  }
 0x47d   :  { %440 = vperm.xlu1 %4206, %v5638_v37   ;;  %v5847_v37 = vpop.permute.xlu0 %213 }
 0x47e   :  { %v4256_v53 = vpop.eup %4255  ;;  %v1137_v15 = vpop.xlane.xlu1 %1136 }
 0x47f   :  { %v5836_v35 = vadd.f32 %v4256_v53, %v8633_v46  ;;  %v2253_v26 = vsel %vm2093_vm10, %v4256_v53, 0.0  ;;  %v1138_v61 = vcvt.f32.s32 %v1137_v15  ;;  %v5871_v15 = vpop.permute.xlu2 %436  ;;  %v1143_v46 = vand.u32 65535, %v5456_v31 }
 0x480   :  { %v5842_v24 = vadd.f32 %v2253_v26, %v8635_v39  ;;  %223 = vperm.xlu2 %4205, %v5699_v32   ;;  %v1169_v31 = vcvt.f32.s32 %v5542_v23 }
 0x481   :  { %8634 = vst [vmem:[#allocation19_spill] sm:$0xff] %v5836_v35  ;;  %v5845_v16 = vadd.s32 %v1140_v1, %v1138_v61  ;;  %v5880_v61 = vsel %vm2088_vm2, 2147483647, %v5082_v6 }
 0x482   :  { %8636 = vst [vmem:[#allocation20_spill] sm:$0xff] %v5842_v24  ;;  %v1145_v24 = vcvt.s32.f32 %v1143_v46  ;;  %v5892_v35 = vsel %vm871_vm0, %v5880_v61, 2147483647  ;;  %v1170_v44 = vshll.u32 %v1169_v31, 16 }
 0x483   :  { %v1401_v10 = vand.u32 4294967232, %v5845_v16  ;;  %vm1369_vm4 = vcmp.eq.s32.totalorder %v5361_v52, %v5845_v16  ;;  %8641 = vst [vmem:[#allocation47_spill] sm:$0xff] %v5880_v61  ;;  %v2346_v26 = vshra.s32 %v5892_v35, 16  ;;  %v1124_v61 = vcvt.f32.s32 %v5452_v59 }
 0x484   :  { %8646 = vst [vmem:[#allocation42_spill] sm:$0xff] %v5892_v35  ;;  %v1710_v35 = vcvt.f32.s32 %v5517_v50 }
 0x485   :  { %4257 = vrcp.f32 %v1401_v10  ;;  %444 = vperm.xlu1 %4206, %v5677_v27   ;;  %v5863_v53 = vpop.permute.xlu0 %218 }
 0x486   :  { %v1711_v50 = vshll.u32 %v1710_v35, 16 }
 0x488   :  { %4208 = vset.pattern.permute.xlu2 %v8533_v45 }
 0x489   :  { %669 = vperm.xlu2 %4208, %v5677_v27  }
 0x48b   :  { %v5853_v20 = vpop.eup %4257 }
 0x48c   :  { %8637 = vst [vmem:[#allocation66_spill] sm:$0xff] %v5853_v20  ;;  %v5861_v39 = vsel %vm1369_vm4, %v5853_v20, 0.0  ;;  %v8645_v20 = vld [vmem:[#allocation46_spill] sm:$0xff] }
 0x48d   :  { %8638 = vst [vmem:[#allocation67_spill] sm:$0xff] %v5861_v39  ;;  %4209 = vset.pattern.permute.xlu1 %v8533_v45  ;;  %v5867_v10 = vpop.permute.xlu0 %424  ;;  %v8642_v39 = vld [vmem:[#allocation15_spill] sm:$0xff]  ;;  %vm1149_vm11 = vcmp.eq.f32.partialorder %v8645_v20, %v5682_v47  ;;  %v5906_v20 = vsel %vm1365_vm8, 2147483647, %v8598_v3 }
 0x48e   :  { %673 = vperm.xlu1 %4209, %v5699_v32   ;;  %v5886_v32 = vsel %vm2089_vm14, 2147483647, %v8642_v39  ;;  %v5900_v39 = vpop.permute.xlu2 %661  ;;  %8648 = vst [vmem:[#allocation69_spill] sm:$0xff] %v5906_v20  ;;  %v477_v21 = vsub.f32 %v5867_v10, %v4692_v51 }
 0x48f   :  { %8644 = vst [vmem:[#allocation15_spill] sm:$0xff] %v5886_v32  ;;  %v5897_v6 = vsel %vm871_vm0, %v5886_v32, 2147483647  ;;  %v5911_v32 = vcvt.s32.f32 %v2346_v26  ;;  %v1125_v26 = vshll.u32 %v1124_v61, 16 }
 0x490   :  { %8647 = vst [vmem:[#allocation46_spill] sm:$0xff] %v5897_v6  ;;  %v2361_v23 = vshra.s32 %v5897_v6, 16 }
 0x491   :  { %8650 = vst [vmem:[#allocation71_spill] sm:$0xff] %v5911_v32 }
 0x492   :  { %v5920_v41 = vcvt.s32.f32 %v2361_v23 }
 0x494   :  { %8652 = vst [vmem:[#allocation73_spill] sm:$0xff] %v5920_v41 }
 0x495   :  { %v5869_v27 = vpop.permute.xlu0 %428 }
 0x49d   :  { %v5873_v1 = vpop.permute.xlu0 %448 }
 0x49e   :  { %8639 = vst [vmem:[#allocation68_spill] sm:$0xff] %v5873_v1  ;;  %v1150_v1 = vsel %vm1149_vm11, %v1145_v24, inf }
 0x4b2   :  { %1151 = vmin.xlane.f32.xlu2 %v1150_v1  ;;  %v1167_v45 = vpop.xlane.xlu0 %1166  ;;  %v5915_v1 = vsel %vm871_vm0, %v5906_v20, 2147483647 }
 0x4b3   :  { %v1168_v46 = vcvt.f32.s32 %v1167_v45  ;;  %8651 = vst [vmem:[#allocation72_spill] sm:$0xff] %v5915_v1  ;;  %v1805_v3 = vshra.s32 %v5915_v1, 16 }
 0x4b5   :  { %v5909_v24 = vadd.s32 %v1170_v44, %v1168_v46  ;;  %v5926_v20 = vcvt.s32.f32 %v1805_v3 }
 0x4b7   :  { %8649 = vst [vmem:[#allocation70_spill] sm:$0xff] %v5909_v24  ;;  %v1403_v31 = vand.u32 4294967232, %v5909_v24 }
 0x4b8   :  { %2349 = vmin.xlane.f32.xlu1 %v5911_v32  ;;  %8653 = vst [vmem:[#allocation74_spill] sm:$0xff] %v5926_v20  ;;  %v8655_v32 = vld [vmem:[#allocation5_spill] sm:$0xff] }
 0x4b9   :  { %4259 = vrcp.f32 %v1403_v31  ;;  %vm1371_vm14 = vcmp.eq.s32.totalorder %v8655_v32, %v5909_v24  ;;  %v8656_v31 = vld [vmem:[#allocation40_spill] sm:$0xff]  ;;  %v8675_v32 = vld [vmem:[#allocation2_spill] sm:$0xff] }
 0x4ba   :  { %2364 = vmin.xlane.f32.xlu2 %v5920_v41  ;;  %v1729_v1 = vand.u32 65535, %v8656_v31  ;;  %v8661_v24 = vld [vmem:[#allocation36_spill] sm:$0xff] }
 0x4bb   :  { %v1122_v44 = vpop.xlane.xlu2 %1121 }
 0x4bc   :  { %v1123_v45 = vcvt.f32.s32 %v1122_v44  ;;  %v1725_v44 = vcvt.f32.s32 %v5515_v38  ;;  %v1731_v41 = vcvt.s32.f32 %v1729_v1 }
 0x4be   :  { %v5924_v46 = vadd.s32 %v1125_v26, %v1123_v45  ;;  %v8658_v26 = vld [vmem:[#allocation59_spill] sm:$0xff]  ;;  %v8659_v45 = vld [vmem:[#allocation41_spill] sm:$0xff]  ;;  %v1726_v29 = vshll.u32 %v1725_v44, 16  ;;  %v5966_v44 = vsel %vm1366_vm6, 2147483647, %v8630_v22 }
 0x4bf   :  { %v5928_v6 = vpop.xlane.xlu1 %1207  ;;  %v5930_v59 = vpop.eup %4259  ;;  %vm1735_vm2 = vcmp.eq.f32.partialorder %v8659_v45, %v8658_v26  ;;  %8665 = vst [vmem:[#allocation76_spill] sm:$0xff] %v5966_v44  ;;  %v8666_v45 = vld [vmem:[#allocation54_spill] sm:$0xff]  ;;  %v5975_v35 = vsel %vm871_vm0, %v5966_v44, 2147483647 }
 0x4c0   :  { %8654 = vst [vmem:[#allocation75_spill] sm:$0xff] %v5930_v59  ;;  %v1400_v23 = vand.u32 4294967232, %v5924_v46  ;;  %1808 = vmin.xlane.f32.xlu1 %v5926_v20  ;;  %v5941_v61 = vsel %vm1371_vm14, %v5930_v59, 0.0  ;;  %v1736_v47 = vsel %vm1735_vm2, %v1731_v41, inf  ;;  %vm1368_vm8 = vcmp.eq.s32.totalorder %v8661_v24, %v5924_v46 }
 0x4c1   :  { %8657 = vst [vmem:[#allocation40_spill] sm:$0xff] %v5941_v61  ;;  %vm1194_vm1 = vcmp.eq.f32.partialorder %v8666_v45, %v5732_v5 }
 0x4c2   :  { %4261 = vrcp.f32 %v1400_v23  ;;  %v8662_v23 = vld [vmem:[#allocation53_spill] sm:$0xff]  ;;  %8667 = vst [vmem:[#allocation54_spill] sm:$0xff] %v5975_v35 }
 0x4c3   :  { %v5943_v3 = vpop.xlane.xlu2 %1778  ;;  %v1188_v59 = vand.u32 65535, %v8662_v23 }
 0x4c5   :  { %v1190_v23 = vcvt.s32.f32 %v1188_v59  ;;  %v8668_v59 = vld [vmem:[#allocation44_spill] sm:$0xff] }
 0x4c7   :  { %v1723_v20 = vpop.xlane.xlu1 %1722 }
 0x4c8   :  { %v5949_v31 = vpop.eup %4261  ;;  %v1724_v61 = vcvt.f32.s32 %v1723_v20  ;;  %1737 = vmin.xlane.f32.xlu1 %v1736_v47 }
 0x4c9   :  { %8660 = vst [vmem:[#allocation41_spill] sm:$0xff] %v5949_v31  ;;  %v5958_v38 = vsel %vm1368_vm8, %v5949_v31, 0.0 }
 0x4ca   :  { %8663 = vst [vmem:[#allocation36_spill] sm:$0xff] %v5958_v38  ;;  %v5960_v1 = vadd.s32 %v1726_v29, %v1724_v61  ;;  %v1195_v29 = vsel %vm1194_vm1, %v1190_v23, inf  ;;  %v1820_v61 = vshra.s32 %v5975_v35, 16  ;;  %v8670_v38 = vld [vmem:[#allocation28_spill] sm:$0xff] }
 0x4cb   :  { %v1708_v41 = vpop.xlane.xlu2 %1707 }
 0x4cc   :  { %8664 = vst [vmem:[#allocation53_spill] sm:$0xff] %v5960_v1  ;;  %v2127_v47 = vand.u32 4294967232, %v5960_v1  ;;  %v1709_v20 = vcvt.f32.s32 %v1708_v41  ;;  %v5995_v5 = vcvt.s32.f32 %v1820_v61 }
 0x4ce   :  { %4263 = vrcp.f32 %v2127_v47  ;;  %v5971_v31 = vadd.s32 %v1711_v50, %v1709_v20  ;;  %v702_v50 = vsub.f32 %v8668_v59, %v4689_v49  ;;  %v509_v47 = vmul.f32 %v477_v21, %v477_v21  ;;  %v8669_v20 = vld [vmem:[#allocation6_spill] sm:$0xff]  ;;  %8674 = vst [vmem:[#allocation28_spill] sm:$0xff] %v5995_v5 }
 0x4cf   :  { %vm2095_vm3 = vcmp.eq.s32.totalorder %v8669_v20, %v5960_v1  ;;  %v704_v1 = vsub.f32 %v5694_v34, %v4689_v49 }
 0x4d0   :  { %v2126_v22 = vand.u32 4294967232, %v5971_v31  ;;  %1196 = vmin.xlane.f32.xlu1 %v1195_v29  ;;  %v8672_v29 = vld [vmem:[#allocation29_spill] sm:$0xff]  ;;  %v734_v21 = vmul.f32 %v702_v50, %v702_v50  ;;  %vm2094_vm15 = vcmp.eq.s32.totalorder %v8675_v32, %v5971_v31  ;;  %v478_v50 = vsub.f32 %v5869_v27, %v4692_v51  ;;  %v8710_v31 = vld [vmem:[#allocation59_spill] sm:$0xff] }
 0x4d2   :  { %4265 = vrcp.f32 %v2126_v22 }
 0x4d3   :  { %v194_v41 = vpop.permute.xlu2 %193 }
 0x4d4   :  { %v4264_v45 = vpop.eup %4263  ;;  %v252_v23 = vsub.f32 %v194_v41, %v4687_v48 }
 0x4d5   :  { %v5987_v44 = vadd.f32 %v4264_v45, %v8670_v38  ;;  %v2255_v10 = vsel %vm2095_vm3, %v4264_v45, 0.0  ;;  %v8676_v38 = vld [vmem:[#allocation24_spill] sm:$0xff] }
 0x4d6   :  { %v5993_v22 = vadd.f32 %v2255_v10, %v8672_v29  ;;  %v284_v35 = vmul.f32 %v252_v23, %v252_v23  ;;  %v8678_v10 = vld [vmem:[#allocation25_spill] sm:$0xff] }
 0x4d7   :  { %8671 = vst [vmem:[#allocation44_spill] sm:$0xff] %v5987_v44 }
 0x4d8   :  { %8673 = vst [vmem:[#allocation6_spill] sm:$0xff] %v5993_v22  ;;  %v4266_v59 = vpop.eup %4265  ;;  %v541_v26 = vadd.f32 %v509_v47, %v284_v35  ;;  %1823 = vmin.xlane.f32.xlu1 %v5995_v5  ;;  %v253_v35 = vsub.f32 %v5799_v13, %v4687_v48  ;;  %v251_v47 = vsub.f32 %v5829_v4, %v4687_v48 }
 0x4d9   :  { %v6001_v41 = vadd.f32 %v4266_v59, %v8676_v38  ;;  %v2254_v45 = vsel %vm2094_vm15, %v4266_v59, 0.0  ;;  %v701_v59 = vsub.f32 %v5766_v14, %v4689_v49  ;;  %v703_v4 = vsub.f32 %v5789_v36, %v4689_v49 }
 0x4da   :  { %v6007_v29 = vadd.f32 %v2254_v45, %v8678_v10  ;;  %v766_v61 = vadd.f32 %v734_v21, %v541_v26  ;;  %v510_v45 = vmul.f32 %v478_v50, %v478_v50  ;;  %v285_v10 = vmul.f32 %v253_v35, %v253_v35 }
 0x4db   :  { %8677 = vst [vmem:[#allocation29_spill] sm:$0xff] %v6001_v41  ;;  %v204_v21 = vpop.permute.xlu2 %203  ;;  %v735_v41 = vmul.f32 %v703_v4, %v703_v4  ;;  %v6039_v35 = vsel %vm2091_vm7, 2147483647, %v8590_v40  ;;  %vm1750_vm7 = vcmp.eq.f32.partialorder %v5660_v11, %v5797_v12 }
 0x4dc   :  { %8679 = vst [vmem:[#allocation2_spill] sm:$0xff] %v6007_v29  ;;  %v832_v23 = vand.u32 4294967232, %v766_v61  ;;  %v283_v61 = vmul.f32 %v251_v47, %v251_v47  ;;  %v733_v29 = vmul.f32 %v701_v59, %v701_v59  ;;  %v542_v14 = vadd.f32 %v510_v45, %v285_v10 }
 0x4dd   :  { %8681 = vst [vmem:[#allocation25_spill] sm:$0xff] %v6039_v35  ;;  %v6051_v40 = vsel %vm871_vm0, %v6039_v35, 2147483647 }
 0x4de   :  { %v6016_v38 = vor.u32 %v832_v23, %v4701_v7  ;;  %v767_v47 = vadd.f32 %v735_v41, %v542_v14 }
 0x4df   :  { %v421_v22 = vpop.permute.xlu1 %420 }
 0x4e0   :  { %8680 = vst [vmem:[#allocation24_spill] sm:$0xff] %v6016_v38  ;;  %v476_v26 = vsub.f32 %v421_v22, %v4692_v51  ;;  %v6023_v27 = vsel %vm871_vm0, %v6016_v38, 2147483647  ;;  %v1173_v22 = vand.u32 65535, %v5665_v63  ;;  %v254_v38 = vsub.f32 %v204_v21, %v4687_v48 }
 0x4e1   :  { %v1249_v13 = vshra.s32 %v6023_v27, 16  ;;  %v736_v21 = vmul.f32 %v704_v1, %v704_v1  ;;  %v833_v56 = vand.u32 4294967232, %v767_v47  ;;  %v6077_v47 = vsel %vm2090_vm12, 2147483647, %v8614_v8 }
 0x4e2   :  { %v508_v23 = vmul.f32 %v476_v26, %v476_v26  ;;  %v286_v63 = vmul.f32 %v254_v38, %v254_v38  ;;  %v1175_v34 = vcvt.s32.f32 %v1173_v22  ;;  %v480_v22 = vsub.f32 %v5871_v15, %v4692_v51  ;;  %8685 = vst [vmem:[#allocation80_spill] sm:$0xff] %v6077_v47 }
 0x4e3   :  { %v6028_v44 = vcvt.s32.f32 %v1249_v13  ;;  %v6047_v13 = vpop.permute.xlu2 %223  ;;  %v257_v8 = vsub.f32 %v5863_v53, %v4687_v48  ;;  %v1203_v53 = vand.u32 65535, %v5770_v18  ;;  %v6123_v18 = vsel %vm2093_vm10, 2147483647, %v5348_v0 }
 0x4e4   :  { %v540_v50 = vadd.f32 %v508_v23, %v283_v61  ;;  %v1180_v41 = vsel %vm1179_vm5, %v1175_v34, inf  ;;  %v2391_v61 = vshra.s32 %v6051_v40, 16  ;;  %v6064_v23 = vor.u32 %v833_v56, %v4701_v7  ;;  %8687 = vst [vmem:[#allocation82_spill] sm:$0xff] %v6123_v18 }
 0x4e5   :  { %1252 = vmin.xlane.f32.xlu0 %v6028_v44  ;;  %vm1209_vm12 = vcmp.eq.f32.partialorder %v5778_v33, %v5928_v6  ;;  %v6145_v33 = vsel %vm2092_vm9, 2147483647, %v5209_v54 }
 0x4e6   :  { %v765_v5 = vadd.f32 %v733_v29, %v540_v50  ;;  %8683 = vst [vmem:[#allocation78_spill] sm:$0xff] %v6064_v23  ;;  %v1744_v50 = vand.u32 65535, %v5653_v58  ;;  %v705_v58 = vsub.f32 %v5900_v39, %v4689_v49  ;;  %v6157_v43 = vsel %vm871_vm0, %v6145_v33, 2147483647 }
 0x4e7   :  { %v433_v36 = vpop.permute.xlu1 %432  ;;  %8688 = vst [vmem:[#allocation83_spill] sm:$0xff] %v6145_v33 }
 0x4e8   :  { %v831_v59 = vand.u32 4294967232, %v765_v5  ;;  %v479_v45 = vsub.f32 %v433_v36, %v4692_v51  ;;  %v1746_v34 = vcvt.s32.f32 %v1744_v50 }
 0x4ea   :  { %v6045_v29 = vor.u32 %v831_v59, %v4701_v7  ;;  %v511_v26 = vmul.f32 %v479_v45, %v479_v45  ;;  %v6079_v59 = vcvt.s32.f32 %v2391_v61  ;;  %v1751_v61 = vsel %vm1750_vm7, %v1746_v34, inf }
 0x4eb   :  { %v670_v45 = vpop.permute.xlu2 %669  ;;  %v6135_v34 = vsel %vm871_vm0, %v6123_v18, 2147483647 }
 0x4ec   :  { %8682 = vst [vmem:[#allocation77_spill] sm:$0xff] %v6045_v29  ;;  %v543_v5 = vadd.f32 %v511_v26, %v286_v63  ;;  %v6055_v4 = vsel %vm871_vm0, %v6045_v29, 2147483647  ;;  %v255_v63 = vsub.f32 %v5815_v57, %v4687_v48  ;;  %v6091_v26 = vsel %vm871_vm0, %v6064_v23, 2147483647 }
 0x4ed   :  { %1181 = vmin.xlane.f32.xlu0 %v1180_v41  ;;  %v1234_v62 = vshra.s32 %v6055_v4, 16  ;;  %v512_v57 = vmul.f32 %v480_v22, %v480_v22  ;;  %v707_v39 = vsub.f32 %v670_v45, %v4689_v49  ;;  %v6105_v41 = vsel %vm871_vm0, %v6077_v47, 2147483647 }
 0x4ee   :  { %v768_v38 = vadd.f32 %v736_v21, %v543_v5  ;;  %v1264_v5 = vshra.s32 %v6091_v26, 16  ;;  %v2376_v23 = vshra.s32 %v6105_v41, 16  ;;  %v2421_v55 = vshra.s32 %v6135_v34, 16 }
 0x4ef   :  { %v6058_v10 = vpop.permute.xlu1 %440  ;;  %v6060_v1 = vcvt.s32.f32 %v1234_v62  ;;  %v287_v62 = vmul.f32 %v255_v63, %v255_v63  ;;  %v739_v45 = vmul.f32 %v707_v39, %v707_v39  ;;  %v6117_v63 = vsel %vm1367_vm13, 2147483647, %v5306_v42 }
 0x4f0   :  { %v834_v14 = vand.u32 4294967232, %v768_v38  ;;  %v737_v38 = vmul.f32 %v705_v58, %v705_v58  ;;  %8686 = vst [vmem:[#allocation81_spill] sm:$0xff] %v6117_v63  ;;  %v6131_v39 = vcvt.s32.f32 %v2376_v23  ;;  %v6139_v0 = vsel %vm871_vm0, %v6117_v63, 2147483647 }
 0x4f1   :  { %1237 = vmin.xlane.f32.xlu2 %v6060_v1  ;;  %v544_v50 = vadd.f32 %v512_v57, %v287_v62  ;;  %v1774_v57 = vand.u32 65535, %v5774_v19  ;;  %vm1780_vm13 = vcmp.eq.f32.partialorder %v5783_v60, %v5943_v3  ;;  %v6159_v54 = vcvt.s32.f32 %v2421_v55 }
 0x4f2   :  { %v6071_v36 = vor.u32 %v834_v14, %v4701_v7  ;;  %v289_v14 = vmul.f32 %v257_v8, %v257_v8  ;;  %v1205_v8 = vcvt.s32.f32 %v1203_v53  ;;  %v2406_v60 = vshra.s32 %v6157_v43, 16 }
 0x4f3   :  { %v769_v35 = vadd.f32 %v737_v38, %v544_v50  ;;  %v1776_v19 = vcvt.s32.f32 %v1774_v57  ;;  %v6174_v38 = vsel %vm1369_vm4, 2147483647, %v5361_v52  ;;  %v256_v53 = vsub.f32 %v5847_v37, %v4687_v48  ;;  %v8692_v52 = vld [vmem:[#allocation56_spill] sm:$0xff] }
 0x4f4   :  { %8684 = vst [vmem:[#allocation79_spill] sm:$0xff] %v6071_v36  ;;  %v6087_v15 = vsel %vm871_vm0, %v6071_v36, 2147483647  ;;  %v1210_v17 = vsel %vm1209_vm12, %v1205_v8, inf  ;;  %vm1765_vm9 = vcmp.eq.f32.partialorder %v8692_v52, %v5811_v2  ;;  %v8697_v52 = vld [vmem:[#allocation7_spill] sm:$0xff] }
 0x4f5   :  { %2394 = vmin.xlane.f32.xlu0 %v6079_v59  ;;  %v1279_v25 = vshra.s32 %v6087_v15, 16  ;;  %v835_v42 = vand.u32 4294967232, %v769_v35  ;;  %v1835_v35 = vshra.s32 %v6139_v0, 16  ;;  %8690 = vst [vmem:[#allocation85_spill] sm:$0xff] %v6174_v38  ;;  %v288_v16 = vmul.f32 %v256_v53, %v256_v53 }
 0x4f7   :  { %v445_v21 = vpop.permute.xlu1 %444  ;;  %v6100_v56 = vcvt.s32.f32 %v1279_v25  ;;  %v6110_v25 = vcvt.s32.f32 %v1264_v5  ;;  %v6153_v23 = vor.u32 %v835_v42, %v4701_v7  ;;  %v481_v5 = vsub.f32 %v6058_v10, %v4692_v51 }
 0x4f8   :  { %v482_v11 = vsub.f32 %v445_v21, %v4692_v51  ;;  %v6161_v21 = vcvt.s32.f32 %v1835_v35  ;;  %v6181_v10 = vcvt.s32.f32 %v2406_v60  ;;  %v8694_v60 = vld [vmem:[#allocation65_spill] sm:$0xff] }
 0x4f9   :  { %1282 = vmin.xlane.f32.xlu1 %v6100_v56  ;;  %1752 = vmin.xlane.f32.xlu2 %v1751_v61  ;;  %8689 = vst [vmem:[#allocation84_spill] sm:$0xff] %v6153_v23  ;;  %v6168_v62 = vsel %vm871_vm0, %v6153_v23, 2147483647  ;;  %v513_v50 = vmul.f32 %v481_v5, %v481_v5  ;;  %v8695_v5 = vld [vmem:[#allocation60_spill] sm:$0xff] }
 0x4fa   :  { %v514_v22 = vmul.f32 %v482_v11, %v482_v11  ;;  %v8691_v11 = vld [vmem:[#allocation55_spill] sm:$0xff]  ;;  %vm1224_vm6 = vcmp.eq.f32.partialorder %v8695_v5, %v8694_v60  ;;  %v8704_v23 = vld [vmem:[#allocation72_spill] sm:$0xff] }
 0x4fb   :  { %v1759_v61 = vand.u32 65535, %v8691_v11  ;;  %v545_v42 = vadd.f32 %v513_v50, %v288_v16  ;;  %v1154_v16 = vcvt.f32.s32 %v8697_v52  ;;  %v8700_v52 = vld [vmem:[#allocation62_spill] sm:$0xff] }
 0x4fc   :  { %v546_v36 = vadd.f32 %v514_v22, %v289_v14  ;;  %v1294_v14 = vshra.s32 %v6168_v62, 16  ;;  %v6186_v22 = vsel %vm871_vm0, %v6174_v38, 2147483647 }
 0x4fd   :  { %1267 = vmin.xlane.f32.xlu0 %v6110_v25  ;;  %v1761_v8 = vcvt.s32.f32 %v1759_v61  ;;  %v1865_v57 = vshra.s32 %v6186_v22, 16 }
 0x4fe   :  { %v6128_v58 = vadd.f32 %v739_v45, %v546_v36  ;;  %v1781_v36 = vsel %vm1780_vm13, %v1776_v19, inf  ;;  %v706_v45 = vsub.f32 %v5824_v9, %v4689_v49  ;;  %v6193_v37 = vcvt.s32.f32 %v1294_v14 }
 0x4ff   :  { %v1218_v19 = vand.u32 65535, %v5615_v28  ;;  %v6198_v35 = vcvt.s32.f32 %v1865_v57  ;;  %v6204_v9 = vsel %vm1368_vm8, 2147483647, %v8661_v24 }
 0x500   :  { %v738_v55 = vmul.f32 %v706_v45, %v706_v45  ;;  %8693 = vst [vmem:[#allocation55_spill] sm:$0xff] %v6204_v9  ;;  %v6211_v28 = vsel %vm871_vm0, %v6204_v9, 2147483647  ;;  %v6225_v45 = vpop.permute.xlu1 %673  ;;  %v1804_v9 = vand.u32 65535, %v8704_v23 }
 0x501   :  { %1211 = vmin.xlane.f32.xlu1 %v1210_v17  ;;  %2379 = vmin.xlane.f32.xlu2 %v6131_v39  ;;  %v1766_v17 = vsel %vm1765_vm9, %v1761_v8, inf  ;;  %v1220_v11 = vcvt.s32.f32 %v1218_v19  ;;  %v1850_v14 = vshra.s32 %v6211_v28, 16  ;;  %v708_v29 = vsub.f32 %v6225_v45, %v4689_v49 }
 0x503   :  { %v1225_v53 = vsel %vm1224_vm6, %v1220_v11, inf  ;;  %v6217_v24 = vcvt.s32.f32 %v1850_v14  ;;  %v8699_v11 = vld [vmem:[#allocation46_spill] sm:$0xff] }
 0x505   :  { %1782 = vmin.xlane.f32.xlu0 %v1781_v36  ;;  %v770_v36 = vadd.f32 %v738_v55, %v545_v42  ;;  %v1155_v42 = vshll.u32 %v1154_v16, 16  ;;  %v8698_v55 = vld [vmem:[#allocation42_spill] sm:$0xff] }
 0x507   :  { %v836_v61 = vand.u32 4294967232, %v770_v36  ;;  %v2345_v36 = vand.u32 65535, %v8698_v55 }
 0x509   :  { %2424 = vmin.xlane.f32.xlu1 %v6159_v54  ;;  %1838 = vmin.xlane.f32.xlu2 %v6161_v21  ;;  %v6215_v50 = vor.u32 %v836_v61, %v4701_v7  ;;  %v2360_v61 = vand.u32 65535, %v8699_v11  ;;  %v2347_v16 = vcvt.s32.f32 %v2345_v36  ;;  %v8703_v11 = vld [vmem:[#allocation73_spill] sm:$0xff] }
 0x50b   :  { %8696 = vst [vmem:[#allocation56_spill] sm:$0xff] %v6215_v50  ;;  %v6221_v46 = vsel %vm871_vm0, %v6215_v50, 2147483647  ;;  %v1789_v50 = vand.u32 65535, %v8700_v52  ;;  %v2362_v55 = vcvt.s32.f32 %v2360_v61  ;;  %v8707_v61 = vld [vmem:[#allocation45_spill] sm:$0xff] }
 0x50c   :  { %v1309_v8 = vshra.s32 %v6221_v46, 16 }
 0x50d   :  { %2409 = vmin.xlane.f32.xlu0 %v6181_v10  ;;  %v1791_v33 = vcvt.s32.f32 %v1789_v50 }
 0x50e   :  { %v6228_v19 = vcvt.s32.f32 %v1309_v8  ;;  %v8701_v8 = vld [vmem:[#allocation71_spill] sm:$0xff] }
 0x511   :  { %1297 = vmin.xlane.f32.xlu1 %v6193_v37  ;;  %1767 = vmin.xlane.f32.xlu2 %v1766_v17 }
 0x515   :  { %1868 = vmin.xlane.f32.xlu0 %v6198_v35 }
 0x519   :  { %1226 = vmin.xlane.f32.xlu2 %v1225_v53  ;;  %v6235_v53 = vpop.xlane.xlu0 %1793 }
 0x521   :  { %1853 = vmin.xlane.f32.xlu2 %v6217_v24 }
 0x525   :  { %v1152_v57 = vpop.xlane.xlu2 %1151 }
 0x526   :  { %v1153_v17 = vcvt.f32.s32 %v1152_v57  ;;  %v8702_v57 = vld [vmem:[#allocation63_spill] sm:$0xff] }
 0x527   :  { %vm1795_vm4 = vcmp.eq.f32.partialorder %v8702_v57, %v6235_v53 }
 0x528   :  { %v6231_v5 = vadd.s32 %v1155_v42, %v1153_v17  ;;  %v1796_v36 = vsel %vm1795_vm4, %v1791_v33, inf  ;;  %v1806_v33 = vcvt.s32.f32 %v1804_v9 }
 0x529   :  { %1312 = vmin.xlane.f32.xlu2 %v6228_v19 }
 0x52a   :  { %v1402_v14 = vand.u32 4294967232, %v6231_v5  ;;  %vm1370_vm2 = vcmp.eq.s32.totalorder %v8707_v61, %v6231_v5 }
 0x52b   :  { %v6239_v38 = vpop.xlane.xlu1 %2349  ;;  %v6332_v49 = vsel %vm1370_vm2, 2147483647, %v8707_v61 }
 0x52c   :  { %4267 = vrcp.f32 %v1402_v14  ;;  %vm2351_vm10 = vcmp.eq.f32.partialorder %v8701_v8, %v6239_v38  ;;  %v6256_v8 = vsel %vm2094_vm15, 2147483647, %v8675_v32  ;;  %8725 = vst [vmem:[#allocation72_spill] sm:$0xff] %v6332_v49 }
 0x52d   :  { %v6245_v42 = vpop.xlane.xlu2 %2364  ;;  %v2352_v17 = vsel %vm2351_vm10, %v2347_v16, inf  ;;  %8706 = vst [vmem:[#allocation60_spill] sm:$0xff] %v6256_v8  ;;  %v8709_v16 = vld [vmem:[#allocation74_spill] sm:$0xff]  ;;  %v6272_v32 = vsel %vm871_vm0, %v6256_v8, 2147483647 }
 0x52e   :  { %vm2366_vm11 = vcmp.eq.f32.partialorder %v8703_v11, %v6245_v42  ;;  %2353 = vmin.xlane.f32.xlu0 %v2352_v17  ;;  %v1740_v17 = vcvt.f32.s32 %v8710_v31  ;;  %v8711_v11 = vld [vmem:[#allocation5_spill] sm:$0xff]  ;;  %v8714_v31 = vld [vmem:[#allocation12_spill] sm:$0xff] }
 0x52f   :  { %v2367_v52 = vsel %vm2366_vm11, %v2362_v55, inf  ;;  %v2436_v55 = vshra.s32 %v6272_v32, 16  ;;  %v1199_v8 = vcvt.f32.s32 %v8714_v31 }
 0x530   :  { %2368 = vmin.xlane.f32.xlu1 %v2367_v52 }
 0x531   :  { %1797 = vmin.xlane.f32.xlu2 %v1796_v36  ;;  %v6280_v36 = vsel %vm1371_vm14, 2147483647, %v8711_v11 }
 0x532   :  { %v6250_v14 = vpop.eup %4267  ;;  %8713 = vst [vmem:[#allocation42_spill] sm:$0xff] %v6280_v36 }
 0x533   :  { %8705 = vst [vmem:[#allocation65_spill] sm:$0xff] %v6250_v14  ;;  %v6264_v50 = vsel %vm1370_vm2, %v6250_v14, 0.0  ;;  %v6266_v23 = vpop.xlane.xlu1 %1808 }
 0x534   :  { %8708 = vst [vmem:[#allocation7_spill] sm:$0xff] %v6264_v50  ;;  %vm1810_vm8 = vcmp.eq.f32.partialorder %v8709_v16, %v6266_v23  ;;  %v1741_v50 = vshll.u32 %v1740_v17, 16  ;;  %v6282_v16 = vcvt.s32.f32 %v2436_v55  ;;  %v1200_v17 = vshll.u32 %v1199_v8, 16  ;;  %v8719_v8 = vld [vmem:[#allocation34_spill] sm:$0xff] }
 0x535   :  { %v1811_v57 = vsel %vm1810_vm8, %v1806_v33, inf  ;;  %v6286_v33 = vsel %vm871_vm0, %v6280_v36, 2147483647  ;;  %v8717_v36 = vld [vmem:[#allocation33_spill] sm:$0xff] }
 0x536   :  { %1812 = vmin.xlane.f32.xlu0 %v1811_v57  ;;  %v1895_v11 = vshra.s32 %v6286_v33, 16 }
 0x538   :  { %v6294_v55 = vcvt.s32.f32 %v1895_v11 }
 0x53a   :  { %8715 = vst [vmem:[#allocation46_spill] sm:$0xff] %v6294_v55 }
 0x53b   :  { %v1738_v9 = vpop.xlane.xlu1 %1737 }
 0x53c   :  { %v1739_v14 = vcvt.f32.s32 %v1738_v9 }
 0x53e   :  { %v6288_v57 = vadd.s32 %v1741_v50, %v1739_v14  ;;  %2439 = vmin.xlane.f32.xlu0 %v6282_v16  ;;  %v8716_v50 = vld [vmem:[#allocation39_spill] sm:$0xff] }
 0x540   :  { %v2128_v18 = vand.u32 4294967232, %v6288_v57  ;;  %vm2096_vm14 = vcmp.eq.s32.totalorder %v8716_v50, %v6288_v57 }
 0x542   :  { %4269 = vrcp.f32 %v2128_v18 }
 0x543   :  { %v1197_v52 = vpop.xlane.xlu1 %1196 }
 0x544   :  { %v1198_v9 = vcvt.f32.s32 %v1197_v52  ;;  %v258_v52 = vsub.f32 %v6047_v13, %v4687_v48  ;;  %v740_v48 = vmul.f32 %v708_v29, %v708_v29  ;;  %v6340_v29 = vsel %vm871_vm0, %v6332_v49, 2147483647 }
 0x546   :  { %v6296_v63 = vadd.s32 %v1200_v17, %v1198_v9  ;;  %1898 = vmin.xlane.f32.xlu0 %v6294_v55  ;;  %v8721_v17 = vld [vmem:[#allocation68_spill] sm:$0xff] }
 0x547   :  { %v483_v9 = vsub.f32 %v8721_v17, %v4692_v51  ;;  %v1248_v51 = vand.u32 65535, %v6023_v27  ;;  %v1184_v27 = vcvt.f32.s32 %v5813_v30  ;;  %v6358_v30 = vsel %vm2095_vm3, 2147483647, %v8669_v20 }
 0x548   :  { %v4270_v14 = vpop.eup %4269  ;;  %v1405_v31 = vand.u32 4294967232, %v6296_v63  ;;  %8728 = vst [vmem:[#allocation74_spill] sm:$0xff] %v6358_v30  ;;  %v6371_v20 = vsel %vm871_vm0, %v6358_v30, 2147483647  ;;  %v8736_v30 = vld [vmem:[#allocation28_spill] sm:$0xff] }
 0x549   :  { %v6303_v47 = vadd.f32 %v4270_v14, %v8717_v36  ;;  %v2256_v18 = vsel %vm2096_vm14, %v4270_v14, 0.0  ;;  %v290_v36 = vmul.f32 %v258_v52, %v258_v52 }
 0x54a   :  { %v6309_v11 = vadd.f32 %v2256_v18, %v8719_v8  ;;  %4271 = vrcp.f32 %v1405_v31  ;;  %v515_v31 = vmul.f32 %v483_v9, %v483_v9  ;;  %v1250_v8 = vcvt.s32.f32 %v1248_v51 }
 0x54b   :  { %8718 = vst [vmem:[#allocation62_spill] sm:$0xff] %v6303_v47  ;;  %v8723_v47 = vld [vmem:[#allocation50_spill] sm:$0xff]  ;;  %v1880_v9 = vshra.s32 %v6340_v29, 16  ;;  %v2451_v51 = vshra.s32 %v6371_v20, 16 }
 0x54c   :  { %8720 = vst [vmem:[#allocation71_spill] sm:$0xff] %v6309_v11  ;;  %vm1373_vm1 = vcmp.eq.s32.totalorder %v8723_v47, %v6296_v63  ;;  %v547_v13 = vadd.f32 %v515_v31, %v290_v36  ;;  %v1233_v36 = vand.u32 65535, %v6055_v4  ;;  %v1185_v31 = vshll.u32 %v1184_v27, 16  ;;  %v8733_v11 = vld [vmem:[#allocation27_spill] sm:$0xff] }
 0x54e   :  { %v772_v18 = vadd.f32 %v740_v48, %v547_v13 }
 0x550   :  { %v6317_v55 = vpop.eup %4271  ;;  %v838_v52 = vand.u32 4294967232, %v772_v18 }
 0x551   :  { %8722 = vst [vmem:[#allocation63_spill] sm:$0xff] %v6317_v55  ;;  %v6325_v14 = vsel %vm1373_vm1, %v6317_v55, 0.0 }
 0x552   :  { %8724 = vst [vmem:[#allocation73_spill] sm:$0xff] %v6325_v14  ;;  %v6345_v5 = vor.u32 %v838_v52, %v4701_v7  ;;  %v1235_v52 = vcvt.s32.f32 %v1233_v36  ;;  %v8731_v14 = vld [vmem:[#allocation54_spill] sm:$0xff] }
 0x553   :  { %v1819_v55 = vand.u32 65535, %v8731_v14 }
 0x554   :  { %8726 = vst [vmem:[#allocation45_spill] sm:$0xff] %v6345_v5  ;;  %v6352_v13 = vsel %vm871_vm0, %v6345_v5, 2147483647  ;;  %v1214_v5 = vcvt.f32.s32 %v5928_v6 }
 0x555   :  { %v1339_v27 = vshra.s32 %v6352_v13, 16 }
 0x557   :  { %v6376_v36 = vcvt.s32.f32 %v1339_v27  ;;  %v6389_v27 = vcvt.s32.f32 %v2451_v51  ;;  %v1821_v51 = vcvt.s32.f32 %v1819_v55  ;;  %v1215_v55 = vshll.u32 %v1214_v5, 16 }
 0x558   :  { %v6334_v45 = vpop.xlane.xlu0 %1252 }
 0x559   :  { %vm1254_vm15 = vcmp.eq.f32.partialorder %v6028_v44, %v6334_v45  ;;  %v6348_v44 = vcvt.s32.f32 %v1880_v9  ;;  %v837_v9 = vand.u32 4294967232, %v6128_v58  ;;  %8734 = vst [vmem:[#allocation12_spill] sm:$0xff] %v6389_v27 }
 0x55a   :  { %v1255_v17 = vsel %vm1254_vm15, %v1250_v8, inf  ;;  %v6361_v8 = vpop.xlane.xlu1 %1823 }
 0x55b   :  { %1256 = vmin.xlane.f32.xlu2 %v1255_v17  ;;  %8729 = vst [vmem:[#allocation59_spill] sm:$0xff] %v6361_v8  ;;  %vm1825_vm7 = vcmp.eq.f32.partialorder %v8736_v30, %v6361_v8  ;;  %v1785_v30 = vcvt.f32.s32 %v5943_v3 }
 0x560   :  { %v1182_v61 = vpop.xlane.xlu0 %1181 }
 0x561   :  { %v1183_v48 = vcvt.f32.s32 %v1182_v61 }
 0x563   :  { %v1186_v18 = vadd.s32 %v1185_v31, %v1183_v48  ;;  %1883 = vmin.xlane.f32.xlu2 %v6348_v44  ;;  %v1755_v48 = vcvt.f32.s32 %v5797_v12 }
 0x564   :  { %v6363_v4 = vpop.xlane.xlu2 %1237 }
 0x565   :  { %v1404_v17 = vand.u32 4294967232, %v1186_v18  ;;  %vm1239_vm5 = vcmp.eq.f32.partialorder %v6060_v1, %v6363_v4  ;;  %v6380_v1 = vor.u32 %v837_v9, %v4701_v7  ;;  %vm1372_vm3 = vcmp.eq.s32.totalorder %v8733_v11, %v1186_v18  ;;  %v8738_v18 = vld [vmem:[#allocation3_spill] sm:$0xff] }
 0x566   :  { %v1240_v61 = vsel %vm1239_vm5, %v1235_v52, inf }
 0x567   :  { %4273 = vrcp.f32 %v1404_v17  ;;  %1241 = vmin.xlane.f32.xlu1 %v1240_v61  ;;  %8730 = vst [vmem:[#allocation5_spill] sm:$0xff] %v6380_v1  ;;  %v1756_v61 = vshll.u32 %v1755_v48, 16  ;;  %v6398_v9 = vsel %vm871_vm0, %v6380_v1, 2147483647  ;;  %v1826_v1 = vsel %vm1825_vm7, %v1821_v51, inf }
 0x568   :  { %v6373_v31 = vpop.xlane.xlu0 %2394 }
 0x569   :  { %vm2396_vm6 = vcmp.eq.f32.partialorder %v6079_v59, %v6373_v31 }
 0x56b   :  { %1342 = vmin.xlane.f32.xlu2 %v6376_v36 }
 0x56c   :  { %v6383_v58 = vpop.xlane.xlu1 %1282  ;;  %v1753_v52 = vpop.xlane.xlu2 %1752 }
 0x56d   :  { %v6386_v17 = vpop.eup %4273  ;;  %v1754_v12 = vcvt.f32.s32 %v1753_v52  ;;  %v2375_v52 = vand.u32 65535, %v6105_v41  ;;  %vm1284_vm13 = vcmp.eq.f32.partialorder %v6100_v56, %v6383_v58 }
 0x56e   :  { %8732 = vst [vmem:[#allocation70_spill] sm:$0xff] %v6386_v17  ;;  %v6394_v7 = vsel %vm1372_vm3, %v6386_v17, 0.0  ;;  %v1324_v17 = vshra.s32 %v6398_v9, 16 }
 0x56f   :  { %8735 = vst [vmem:[#allocation39_spill] sm:$0xff] %v6394_v7  ;;  %v6402_v14 = vadd.s32 %v1756_v61, %v1754_v12  ;;  %2454 = vmin.xlane.f32.xlu1 %v6389_v27  ;;  %v2377_v49 = vcvt.s32.f32 %v2375_v52  ;;  %v1278_v27 = vand.u32 65535, %v6087_v15  ;;  %v1786_v15 = vshll.u32 %v1785_v30, 16  ;;  %v8739_v52 = vld [vmem:[#allocation31_spill] sm:$0xff] }
 0x570   :  { %v6405_v48 = vpop.xlane.xlu0 %1267  ;;  %v6417_v6 = vcvt.s32.f32 %v1324_v17 }
 0x571   :  { %v2129_v7 = vand.u32 4294967232, %v6402_v14  ;;  %vm2097_vm9 = vcmp.eq.s32.totalorder %v8738_v18, %v6402_v14  ;;  %vm1269_vm11 = vcmp.eq.f32.partialorder %v6110_v25, %v6405_v48  ;;  %v8748_v14 = vld [vmem:[#allocation37_spill] sm:$0xff]  ;;  %v8749_v25 = vld [vmem:[#allocation43_spill] sm:$0xff] }
 0x573   :  { %4275 = vrcp.f32 %v2129_v7  ;;  %1827 = vmin.xlane.f32.xlu2 %v1826_v1  ;;  %v6422_v1 = vsel %vm1372_vm3, 2147483647, %v8733_v11  ;;  %v1280_v7 = vcvt.s32.f32 %v1278_v27  ;;  %v6435_v11 = vsel %vm2096_vm14, 2147483647, %v8716_v50  ;;  %v8741_v50 = vld [vmem:[#allocation32_spill] sm:$0xff] }
 0x574   :  { %v1212_v61 = vpop.xlane.xlu1 %1211  ;;  %v6412_v12 = vpop.xlane.xlu2 %2379  ;;  %8737 = vst [vmem:[#allocation33_spill] sm:$0xff] %v6435_v11  ;;  %v6451_v57 = vsel %vm871_vm0, %v6422_v1, 2147483647  ;;  %v6465_v59 = vsel %vm871_vm0, %v6435_v11, 2147483647 }
 0x575   :  { %v1213_v8 = vcvt.f32.s32 %v1212_v61  ;;  %vm2381_vm12 = vcmp.eq.f32.partialorder %v6131_v39, %v6412_v12  ;;  %v1834_v39 = vand.u32 65535, %v6139_v0  ;;  %v1285_v0 = vsel %vm1284_vm13, %v1280_v7, inf }
 0x576   :  { %v2382_v41 = vsel %vm2381_vm12, %v2377_v49, inf  ;;  %v2390_v49 = vand.u32 65535, %v6051_v40  ;;  %v1910_v56 = vshra.s32 %v6451_v57, 16 }
 0x577   :  { %v6426_v3 = vadd.s32 %v1215_v55, %v1213_v8  ;;  %1327 = vmin.xlane.f32.xlu1 %v6417_v6  ;;  %2383 = vmin.xlane.f32.xlu0 %v2382_v41 }
 0x578   :  { %v1783_v5 = vpop.xlane.xlu0 %1782  ;;  %v2392_v41 = vcvt.s32.f32 %v2390_v49  ;;  %v8744_v49 = vld [vmem:[#allocation38_spill] sm:$0xff] }
 0x579   :  { %v4276_v17 = vpop.eup %4275  ;;  %v1406_v8 = vand.u32 4294967232, %v6426_v3  ;;  %v1784_v51 = vcvt.f32.s32 %v1783_v5  ;;  %vm1374_vm4 = vcmp.eq.s32.totalorder %v8744_v49, %v6426_v3  ;;  %v2356_v3 = vcvt.f32.s32 %v6239_v38 }
 0x57a   :  { %v6441_v30 = vadd.f32 %v4276_v17, %v8739_v52  ;;  %v2257_v40 = vsel %vm2097_vm9, %v4276_v17, 0.0  ;;  %v1836_v17 = vcvt.s32.f32 %v1834_v39  ;;  %v2397_v7 = vsel %vm2396_vm6, %v2392_v41, inf }
 0x57b   :  { %v6456_v27 = vadd.f32 %v2257_v40, %v8741_v50  ;;  %4277 = vrcp.f32 %v1406_v8  ;;  %v1787_v61 = vadd.s32 %v1786_v15, %v1784_v51  ;;  %1286 = vmin.xlane.f32.xlu2 %v1285_v0  ;;  %v1263_v15 = vand.u32 65535, %v6091_v26 }
 0x57c   :  { %8740 = vst [vmem:[#allocation34_spill] sm:$0xff] %v6441_v30  ;;  %v6458_v55 = vpop.xlane.xlu2 %1838  ;;  %v1770_v39 = vcvt.f32.s32 %v5811_v2  ;;  %v6473_v51 = vcvt.s32.f32 %v1910_v56  ;;  %v6482_v0 = vpop.xlane.xlu1 %2424  ;;  %v6488_v2 = vsel %vm2097_vm9, 2147483647, %v8738_v18  ;;  %v6497_v26 = vsel %vm1373_vm1, 2147483647, %v8723_v47 }
 0x57d   :  { %8742 = vst [vmem:[#allocation68_spill] sm:$0xff] %v6456_v27  ;;  %v2131_v5 = vand.u32 4294967232, %v1787_v61  ;;  %vm1840_vm10 = vcmp.eq.f32.partialorder %v6161_v21, %v6458_v55  ;;  %v2466_v21 = vshra.s32 %v6465_v59, 16  ;;  %v1265_v41 = vcvt.s32.f32 %v1263_v15  ;;  %v8751_v15 = vld [vmem:[#allocation8_spill] sm:$0xff] }
 0x57e   :  { %v1841_v52 = vsel %vm1840_vm10, %v1836_v17, inf  ;;  %8746 = vst [vmem:[#allocation54_spill] sm:$0xff] %v6488_v2  ;;  %v1771_v56 = vshll.u32 %v1770_v39, 16  ;;  %vm2099_vm2 = vcmp.eq.s32.totalorder %v8748_v14, %v1787_v61  ;;  %v6510_v47 = vsel %vm871_vm0, %v6488_v2, 2147483647  ;;  %v8772_v2 = vld [vmem:[#allocation51_spill] sm:$0xff] }
 0x57f   :  { %4279 = vrcp.f32 %v2131_v5  ;;  %2398 = vmin.xlane.f32.xlu1 %v2397_v7  ;;  %1842 = vmin.xlane.f32.xlu0 %v1841_v52  ;;  %8747 = vst [vmem:[#allocation27_spill] sm:$0xff] %v6497_v26  ;;  %v2420_v5 = vand.u32 65535, %v6135_v34  ;;  %v6501_v7 = vcvt.s32.f32 %v2466_v21  ;;  %v1270_v63 = vsel %vm1269_vm11, %v1265_v41, inf }
 0x580   :  { %vm2426_vm8 = vcmp.eq.f32.partialorder %v6159_v54, %v6482_v0  ;;  %v6521_v21 = vsel %vm871_vm0, %v6497_v26, 2147483647  ;;  %v1229_v41 = vcvt.f32.s32 %v8694_v60  ;;  %v2357_v38 = vshll.u32 %v2356_v3, 16 }
 0x581   :  { %v6468_v8 = vpop.eup %4277 }
 0x582   :  { %8743 = vst [vmem:[#allocation50_spill] sm:$0xff] %v6468_v8  ;;  %v6480_v40 = vsel %vm1374_vm4, %v6468_v8, 0.0 }
 0x583   :  { %8745 = vst [vmem:[#allocation53_spill] sm:$0xff] %v6480_v40  ;;  %1913 = vmin.xlane.f32.xlu2 %v6473_v51 }
 0x584   :  { %v1768_v50 = vpop.xlane.xlu2 %1767  ;;  %v6528_v54 = vpop.xlane.xlu1 %1297 }
 0x585   :  { %v4280_v17 = vpop.eup %4279  ;;  %v1769_v18 = vcvt.f32.s32 %v1768_v50  ;;  %v2422_v50 = vcvt.s32.f32 %v2420_v5  ;;  %v6533_v5 = vpop.xlane.xlu0 %2409  ;;  %vm1299_vm14 = vcmp.eq.f32.partialorder %v6193_v37, %v6528_v54 }
 0x586   :  { %v6504_v52 = vadd.f32 %v4280_v17, %v8749_v25  ;;  %v2259_v40 = vsel %vm2099_vm2, %v4280_v17, 0.0  ;;  %vm2411_vm15 = vcmp.eq.f32.partialorder %v6181_v10, %v6533_v5  ;;  %v3276_v10 = vld [vmem:[%s8292_s3 + $0x20] sm:$0xff] }
 0x587   :  { %v6513_v34 = vadd.f32 %v2259_v40, %v8751_v15  ;;  %v6517_v39 = vadd.s32 %v1771_v56, %v1769_v18  ;;  %1271 = vmin.xlane.f32.xlu1 %v1270_v63  ;;  %2469 = vmin.xlane.f32.xlu0 %v6501_v7  ;;  %v2481_v40 = vshra.s32 %v6510_v47, 16  ;;  %v2427_v25 = vsel %vm2426_vm8, %v2422_v50, inf }
 0x588   :  { %8750 = vst [vmem:[#allocation28_spill] sm:$0xff] %v6504_v52  ;;  %v1925_v15 = vshra.s32 %v6521_v21, 16  ;;  %v1293_v18 = vand.u32 65535, %v6168_v62  ;;  %v1230_v63 = vshll.u32 %v1229_v41, 16  ;;  %v6540_v50 = vsel %vm2099_vm2, 2147483647, %v8748_v14 }
 0x589   :  { %8752 = vst [vmem:[#allocation3_spill] sm:$0xff] %v6513_v34  ;;  %v2130_v17 = vand.u32 4294967232, %v6517_v39  ;;  %v6531_v34 = vcvt.s32.f32 %v2481_v40  ;;  %v1849_v41 = vand.u32 65535, %v6211_v28  ;;  %v2405_v40 = vand.u32 65535, %v6157_v43  ;;  %v8755_v14 = vld [vmem:[#allocation57_spill] sm:$0xff]  ;;  %v3278_v43 = vld [vmem:[%s8292_s3 + $0x30] sm:$0xff] }
 0x58a   :  { %v6535_v60 = vcvt.s32.f32 %v1925_v15  ;;  %8753 = vst [vmem:[#allocation31_spill] sm:$0xff] %v6540_v50  ;;  %v1295_v62 = vcvt.s32.f32 %v1293_v18  ;;  %v8754_v15 = vld [vmem:[#allocation22_spill] sm:$0xff]  ;;  %v6561_v18 = vsel %vm871_vm0, %v6540_v50, 2147483647  ;;  %v3279_v28 = vld [vmem:[%s8292_s3 + $0x38] sm:$0xff] }
 0x58b   :  { %4281 = vrcp.f32 %v2130_v17  ;;  %2428 = vmin.xlane.f32.xlu2 %v2427_v25  ;;  %vm2098_vm1 = vcmp.eq.s32.totalorder %v8754_v15, %v6517_v39  ;;  %v2407_v52 = vcvt.s32.f32 %v2405_v40  ;;  %v2511_v50 = vshra.s32 %v6561_v18, 16  ;;  %v3272_v39 = vld [vmem:[%s8292_s3] sm:$0xff] }
 0x58c   :  { %v1227_v56 = vpop.xlane.xlu2 %1226  ;;  %v1864_v40 = vand.u32 65535, %v6186_v22  ;;  %v3275_v22 = vld [vmem:[%s8292_s3 + $0x18] sm:$0xff] }
 0x58d   :  { %v1228_v8 = vcvt.f32.s32 %v1227_v56  ;;  %v2412_v30 = vsel %vm2411_vm15, %v2407_v52, inf  ;;  %v8760_v52 = vld [vmem:[#allocation18_spill] sm:$0xff] }
 0x58f   :  { %v6544_v17 = vadd.s32 %v1230_v63, %v1228_v8  ;;  %2484 = vmin.xlane.f32.xlu1 %v6531_v34  ;;  %1928 = vmin.xlane.f32.xlu0 %v6535_v60  ;;  %v1300_v8 = vsel %vm1299_vm14, %v1295_v62, inf  ;;  %v8757_v63 = vld [vmem:[#allocation58_spill] sm:$0xff]  ;;  %v3283_v62 = vpack.c.bf16 %v3279_v28, %v3278_v43  ;;  %v6620_v43 = vsel %vm1374_vm4, 2147483647, %v8744_v49 }
 0x590   :  { %8763 = vst [vmem:[#allocation22_spill] sm:$0xff] %v6620_v43 }
 0x591   :  { %v4282_v25 = vpop.eup %4281  ;;  %v1407_v61 = vand.u32 4294967232, %v6544_v17  ;;  %3352 = vmatpush.bf16.msra.mxu0 %v3283_v62  ;;  %vm1375_vm3 = vcmp.eq.s32.totalorder %v8760_v52, %v6544_v17  ;;  %v1866_v62 = vcvt.s32.f32 %v1864_v40 }
 0x592   :  { %v6554_v56 = vadd.f32 %v4282_v25, %v8755_v14  ;;  %v2258_v37 = vsel %vm2098_vm1, %v4282_v25, 0.0 }
 0x593   :  { %v6572_v14 = vadd.f32 %v2258_v37, %v8757_v63  ;;  %4283 = vrcp.f32 %v1407_v61  ;;  %1301 = vmin.xlane.f32.xlu2 %v1300_v8  ;;  %v3277_v61 = vld [vmem:[%s8292_s3 + $0x28] sm:$0xff] }
 0x594   :  { %8756 = vst [vmem:[#allocation32_spill] sm:$0xff] %v6554_v56  ;;  %v6574_v25 = vpop.xlane.xlu2 %1853  ;;  %v1851_v56 = vcvt.s32.f32 %v1849_v41  ;;  %v3282_v37 = vpack.c.bf16 %v3277_v61, %v3276_v10  ;;  %v6585_v41 = vpop.xlane.xlu0 %1868 }
 0x595   :  { %8758 = vst [vmem:[#allocation38_spill] sm:$0xff] %v6572_v14  ;;  %vm1855_vm5 = vcmp.eq.f32.partialorder %v6217_v24, %v6574_v25  ;;  %v1308_v24 = vand.u32 65535, %v6221_v46  ;;  %v3274_v46 = vld [vmem:[%s8292_s3 + $0x10] sm:$0xff]  ;;  %vm1870_vm7 = vcmp.eq.f32.partialorder %v6198_v35, %v6585_v41  ;;  %v3273_v35 = vld [vmem:[%s8292_s3 + $0x8] sm:$0xff] }
 0x596   :  { %v1856_v27 = vsel %vm1855_vm5, %v1851_v56, inf  ;;  %v6593_v56 = vcvt.s32.f32 %v2511_v50  ;;  %3353 = vmatpush.bf16.msra.mxu0 %v3282_v37  ;;  %v3281_v50 = vpack.c.bf16 %v3275_v22, %v3274_v46  ;;  %v1871_v10 = vsel %vm1870_vm7, %v1866_v62, inf }
 0x597   :  { %2413 = vmin.xlane.f32.xlu1 %v2412_v30  ;;  %1857 = vmin.xlane.f32.xlu0 %v1856_v27  ;;  %v6611_v27 = vsel %vm2098_vm1, 2147483647, %v8754_v15  ;;  %v1310_v63 = vcvt.s32.f32 %v1308_v24  ;;  %v3280_v15 = vpack.c.bf16 %v3273_v35, %v3272_v39  ;;  %v6639_v37 = vsel %vm871_vm0, %v6620_v43, 2147483647 }
 0x598   :  { %8762 = vst [vmem:[#allocation8_spill] sm:$0xff] %v6611_v27  ;;  %v6635_v61 = vsel %vm871_vm0, %v6611_v27, 2147483647  ;;  %v2371_v24 = vcvt.f32.s32 %v6245_v42 }
 0x599   :  { %v6589_v8 = vpop.eup %4283  ;;  %v2496_v46 = vshra.s32 %v6635_v61, 16 }
 0x59a   :  { %8759 = vst [vmem:[#allocation37_spill] sm:$0xff] %v6589_v8  ;;  %v6599_v30 = vsel %vm1375_vm3, %v6589_v8, 0.0  ;;  %3354 = vmatpush.bf16.msra.mxu0 %v3281_v50  ;;  %v1940_v50 = vshra.s32 %v6639_v37, 16  ;;  %v2372_v39 = vshll.u32 %v2371_v24, 16 }
 0x59b   :  { %8761 = vst [vmem:[#allocation43_spill] sm:$0xff] %v6599_v30  ;;  %2514 = vmin.xlane.f32.xlu2 %v6593_v56 }
 0x59c   :  { %v6622_v28 = vpop.xlane.xlu2 %1312  ;;  %v6654_v8 = vcvt.s32.f32 %v1940_v50 }
 0x59d   :  { %vm1314_vm12 = vcmp.eq.f32.partialorder %v6228_v19, %v6622_v28  ;;  %v1800_v19 = vcvt.f32.s32 %v6235_v53 }
 0x59e   :  { %v1315_v49 = vsel %vm1314_vm12, %v1310_v63, inf  ;;  %3355 = vmatpush.bf16.msra.mxu0 %v3280_v15  ;;  %v6649_v63 = vsel %vm1375_vm3, 2147483647, %v8760_v52  ;;  %v6652_v15 = vcvt.s32.f32 %v2496_v46 }
 0x59f   :  { %1872 = vmin.xlane.f32.xlu1 %v1871_v10  ;;  %1316 = vmin.xlane.f32.xlu0 %v1315_v49  ;;  %8764 = vst [vmem:[#allocation57_spill] sm:$0xff] %v6649_v63  ;;  %v1801_v53 = vshll.u32 %v1800_v19, 16  ;;  %v1815_v10 = vcvt.f32.s32 %v6266_v23  ;;  %v6658_v17 = vsel %vm871_vm0, %v6649_v63, 2147483647 }
 0x5a0   :  { %v1955_v46 = vshra.s32 %v6658_v17, 16 }
 0x5a1   :  { %v2354_v40 = vpop.xlane.xlu0 %2353 }
 0x5a2   :  { %v2355_v22 = vcvt.f32.s32 %v2354_v40 }
 0x5a3   :  { %v2369_v62 = vpop.xlane.xlu1 %2368 }
 0x5a4   :  { %v2358_v42 = vadd.s32 %v2357_v38, %v2355_v22  ;;  %v2370_v35 = vcvt.f32.s32 %v2369_v62  ;;  %v1798_v49 = vpop.xlane.xlu2 %1797  ;;  %v1816_v38 = vshll.u32 %v1815_v10, 16  ;;  %v2435_v62 = vand.u32 65535, %v6272_v32 }
 0x5a5   :  { %v1799_v30 = vcvt.f32.s32 %v1798_v49 }
 0x5a6   :  { %v2856_v3 = vand.u32 4294967232, %v2358_v42  ;;  %v2373_v40 = vadd.s32 %v2372_v39, %v2370_v35  ;;  %v6666_v39 = vcvt.s32.f32 %v1955_v46  ;;  %v8765_v35 = vld [vmem:[#allocation47_spill] sm:$0xff]  ;;  %v2437_v32 = vcvt.s32.f32 %v2435_v62  ;;  %v8774_v62 = vld [vmem:[#allocation52_spill] sm:$0xff] }
 0x5a7   :  { %v1802_v52 = vadd.s32 %v1801_v53, %v1799_v30  ;;  %2499 = vmin.xlane.f32.xlu1 %v6652_v15  ;;  %1943 = vmin.xlane.f32.xlu0 %v6654_v8  ;;  %vm2824_vm13 = vcmp.eq.s32.totalorder %v8765_v35, %v2358_v42  ;;  %v8766_v53 = vld [vmem:[#allocation48_spill] sm:$0xff]  ;;  %v8782_v42 = vld [vmem:[#allocation46_spill] sm:$0xff] }
 0x5a8   :  { %4285 = vrcp.f32 %v2856_v3  ;;  %v2857_v24 = vand.u32 4294967232, %v2373_v40 }
 0x5a9   :  { %v2132_v19 = vand.u32 4294967232, %v1802_v52  ;;  %v1813_v23 = vpop.xlane.xlu0 %1812 }
 0x5aa   :  { %4287 = vrcp.f32 %v2857_v24  ;;  %v1814_v22 = vcvt.f32.s32 %v1813_v23  ;;  %v8767_v24 = vld [vmem:[#allocation49_spill] sm:$0xff]  ;;  %v8768_v23 = vld [vmem:[#allocation15_spill] sm:$0xff] }
 0x5ab   :  { %4289 = vrcp.f32 %v2132_v19  ;;  %vm2825_vm9 = vcmp.eq.s32.totalorder %v8768_v23, %v2373_v40 }
 0x5ac   :  { %v6663_v50 = vadd.s32 %v1816_v38, %v1814_v22  ;;  %v8769_v38 = vld [vmem:[#allocation9_spill] sm:$0xff] }
 0x5ae   :  { %v4286_v30 = vpop.eup %4285  ;;  %v2133_v49 = vand.u32 4294967232, %v6663_v50 }
 0x5af   :  { %v2952_v3 = vadd.f32 %v4286_v30, %v8766_v53  ;;  %v2984_v14 = vsel %vm2824_vm13, %v4286_v30, 0.0  ;;  %1958 = vmin.xlane.f32.xlu1 %v6666_v39  ;;  %v8770_v53 = vld [vmem:[#allocation61_spill] sm:$0xff]  ;;  %v8771_v30 = vld [vmem:[#allocation10_spill] sm:$0xff] }
 0x5b0   :  { %v4288_v10 = vpop.eup %4287  ;;  %v3016_v19 = vadd.f32 %v2984_v14, %v8767_v24  ;;  %4291 = vrcp.f32 %v2133_v49  ;;  %vm2100_vm6 = vcmp.eq.s32.totalorder %v8770_v53, %v1802_v52 }
 0x5b1   :  { %v4290_v46 = vpop.eup %4289  ;;  %4293 = vrcp.f32 %v2952_v3  ;;  %v2953_v22 = vadd.f32 %v4288_v10, %v8769_v38  ;;  %v2985_v63 = vsel %vm2825_vm9, %v4288_v10, 0.0  ;;  %v6680_v27 = vpop.xlane.xlu0 %2439  ;;  %v1894_v10 = vand.u32 65535, %v6286_v33  ;;  %v8777_v38 = vld [vmem:[#allocation14_spill] sm:$0xff] }
 0x5b2   :  { %v3017_v43 = vadd.f32 %v2985_v63, %v8771_v30  ;;  %v6684_v26 = vadd.f32 %v4290_v46, %v8772_v2  ;;  %v2260_v14 = vsel %vm2100_vm6, %v4290_v46, 0.0  ;;  %vm2441_vm10 = vcmp.eq.f32.partialorder %v6282_v16, %v6680_v27  ;;  %v8776_v63 = vld [vmem:[#allocation69_spill] sm:$0xff] }
 0x5b3   :  { %4295 = vrcp.f32 %v2953_v22  ;;  %v6691_v49 = vadd.f32 %v2260_v14, %v8774_v62  ;;  %v2442_v3 = vsel %vm2441_vm10, %v2437_v32, inf  ;;  %vm2101_vm4 = vcmp.eq.s32.totalorder %v8776_v63, %v6663_v50  ;;  %v8780_v32 = vld [vmem:[#allocation4_spill] sm:$0xff] }
 0x5b4   :  { %8773 = vst [vmem:[#allocation58_spill] sm:$0xff] %v6684_v26  ;;  %2443 = vmin.xlane.f32.xlu2 %v2442_v3  ;;  %v3048_v46 = vsel %vm2824_vm13, 2147483647, %v8765_v35  ;;  %v6708_v33 = vsel %vm2100_vm6, 2147483647, %v8770_v53  ;;  %v8808_v26 = vld [vmem:[#allocation78_spill] sm:$0xff] }
 0x5b5   :  { %8775 = vst [vmem:[#allocation18_spill] sm:$0xff] %v6691_v49  ;;  %vm3080_vm8 = vcmp.eq.s32.totalorder %v3048_v46, 2147483647  ;;  %v1259_v46 = vcvt.f32.s32 %v6334_v45 }
 0x5b6   :  { %v4292_v24 = vpop.eup %4291  ;;  %8779 = vst [vmem:[#allocation48_spill] sm:$0xff] %v6708_v33 }
 0x5b7   :  { %v4294_v2 = vpop.eup %4293  ;;  %v6697_v30 = vadd.f32 %v4292_v24, %v8777_v38  ;;  %v2261_v16 = vsel %vm2101_vm4, %v4292_v24, 0.0  ;;  %v1896_v38 = vcvt.s32.f32 %v1894_v10  ;;  %v3049_v24 = vsel %vm2825_vm9, 2147483647, %v8768_v23 }
 0x5b8   :  { %v6711_v22 = vadd.f32 %v2261_v16, %v8780_v32  ;;  %v3144_v14 = vmul.f32 %v4294_v2, %v3016_v19  ;;  %v6722_v16 = vsel %vm871_vm0, %v6708_v33, 2147483647  ;;  %vm3081_vm1 = vcmp.eq.s32.totalorder %v3049_v24, 2147483647  ;;  %v8783_v24 = vld [vmem:[#allocation24_spill] sm:$0xff] }
 0x5b9   :  { %8778 = vst [vmem:[#allocation47_spill] sm:$0xff] %v6697_v30  ;;  %v4296_v62 = vpop.eup %4295  ;;  %v6713_v3 = vpop.xlane.xlu0 %1898  ;;  %v2526_v40 = vshra.s32 %v6722_v16, 16 }
 0x5ba   :  { %8781 = vst [vmem:[#allocation49_spill] sm:$0xff] %v6711_v22  ;;  %vm1900_vm11 = vcmp.eq.f32.partialorder %v8782_v42, %v6713_v3  ;;  %v3145_v35 = vmul.f32 %v4296_v62, %v3017_v43  ;;  %vm3176_vm2 = vcmp.ne.f32.partialorder %v3144_v14, %v3144_v14  ;;  %v1879_v42 = vand.u32 65535, %v6340_v29 }
 0x5bb   :  { %v1901_v52 = vsel %vm1900_vm11, %v1896_v38, inf  ;;  %v3208_v53 = vsel %vm3176_vm2, 1.0, %v3144_v14  ;;  %v6726_v43 = vcvt.s32.f32 %v2526_v40  ;;  %v1260_v14 = vshll.u32 %v1259_v46, 16 }
 0x5bc   :  { %1902 = vmin.xlane.f32.xlu2 %v1901_v52  ;;  %vm3177_vm14 = vcmp.ne.f32.partialorder %v3145_v35, %v3145_v35  ;;  %v3240_v19 = vsel %vm3080_vm8, %v3208_v53, 0.0  ;;  %v1244_v29 = vcvt.f32.s32 %v6363_v4  ;;  %v1338_v46 = vand.u32 65535, %v6352_v13 }
 0x5bd   :  { %v3209_v10 = vsel %vm3177_vm14, 1.0, %v3145_v35 }
 0x5be   :  { %v3241_v2 = vsel %vm3081_vm1, %v3209_v10, 0.0 }
 0x5bf   :  { %v3284_v23 = vpack.c.bf16 %v3241_v2, %v3240_v19  ;;  %v1881_v19 = vcvt.s32.f32 %v1879_v42 }
 0x5c1   :  { %4100 = vmatmul.msk.bf16.vlgmr.msra.gmra.mxu0 %vm871_vm0, %v3284_v23 }
 0x5c4   :  { %2529 = vmin.xlane.f32.xlu2 %v6726_v43 }
 0x5ce   :  { %v1257_v32 = vpop.xlane.xlu2 %1256 }
 0x5cf   :  { %v1258_v62 = vcvt.f32.s32 %v1257_v32 }
 0x5d1   :  { %v1261_v38 = vadd.s32 %v1260_v14, %v1258_v62  ;;  %v1245_v14 = vshll.u32 %v1244_v29, 16 }
 0x5d3   :  { %vm1377_vm15 = vcmp.eq.s32.totalorder %v8783_v24, %v1261_v38  ;;  %v1409_v35 = vand.u32 4294967232, %v1261_v38 }
 0x5d4   :  { %v6735_v52 = vsel %vm1377_vm15, 2147483647, %v8783_v24 }
 0x5d5   :  { %8784 = vst [vmem:[#allocation15_spill] sm:$0xff] %v6735_v52  ;;  %4297 = vrcp.f32 %v1409_v35  ;;  %v6739_v53 = vsel %vm871_vm0, %v6735_v52, 2147483647  ;;  %v1340_v35 = vcvt.s32.f32 %v1338_v46 }
 0x5d6   :  { %v6741_v45 = vpop.xlane.xlu2 %1883  ;;  %v1985_v10 = vshra.s32 %v6739_v53, 16 }
 0x5d7   :  { %vm1885_vm5 = vcmp.eq.f32.partialorder %v6348_v44, %v6741_v45 }
 0x5d8   :  { %v1886_v2 = vsel %vm1885_vm5, %v1881_v19, inf  ;;  %v6747_v40 = vcvt.s32.f32 %v1985_v10  ;;  %v2450_v19 = vand.u32 65535, %v6371_v20  ;;  %v8787_v10 = vld [vmem:[#allocation77_spill] sm:$0xff] }
 0x5d9   :  { %1887 = vmin.xlane.f32.xlu1 %v1886_v2 }
 0x5da   :  { %v1242_v23 = vpop.xlane.xlu1 %1241  ;;  %1988 = vmin.xlane.f32.xlu2 %v6747_v40  ;;  %v2452_v20 = vcvt.s32.f32 %v2450_v19  ;;  %v2386_v19 = vcvt.f32.s32 %v6412_v12  ;;  %v1289_v12 = vcvt.f32.s32 %v6383_v58 }
 0x5db   :  { %v6751_v32 = vpop.eup %4297  ;;  %v1243_v62 = vcvt.f32.s32 %v1242_v23  ;;  %v8789_v23 = vld [vmem:[#allocation59_spill] sm:$0xff] }
 0x5dc   :  { %8785 = vst [vmem:[#allocation9_spill] sm:$0xff] %v6751_v32  ;;  %v6756_v4 = vsel %vm1377_vm15, %v6751_v32, 0.0  ;;  %v1830_v46 = vcvt.f32.s32 %v8789_v23  ;;  %v1290_v58 = vshll.u32 %v1289_v12, 16 }
 0x5dd   :  { %8786 = vst [vmem:[#allocation61_spill] sm:$0xff] %v6756_v4  ;;  %v1246_v42 = vadd.s32 %v1245_v14, %v1243_v62  ;;  %v8790_v14 = vld [vmem:[#allocation12_spill] sm:$0xff] }
 0x5de   :  { %v6758_v44 = vpop.xlane.xlu2 %1342 }
 0x5df   :  { %vm1376_vm3 = vcmp.eq.s32.totalorder %v8787_v10, %v1246_v42  ;;  %v1408_v2 = vand.u32 4294967232, %v1246_v42  ;;  %vm1344_vm7 = vcmp.eq.f32.partialorder %v6376_v36, %v6758_v44 }
 0x5e0   :  { %v6767_v13 = vsel %vm1376_vm3, 2147483647, %v8787_v10  ;;  %v1345_v38 = vsel %vm1344_vm7, %v1340_v35, inf  ;;  %v1323_v35 = vand.u32 65535, %v6398_v9  ;;  %v2387_v10 = vshll.u32 %v2386_v19, 16 }
 0x5e1   :  { %8788 = vst [vmem:[#allocation10_spill] sm:$0xff] %v6767_v13  ;;  %4299 = vrcp.f32 %v1408_v2  ;;  %1346 = vmin.xlane.f32.xlu1 %v1345_v38  ;;  %v6771_v24 = vsel %vm871_vm0, %v6767_v13, 2147483647  ;;  %v1831_v38 = vshll.u32 %v1830_v46, 16 }
 0x5e2   :  { %v6773_v29 = vpop.xlane.xlu1 %2454  ;;  %v1970_v36 = vshra.s32 %v6771_v24, 16 }
 0x5e3   :  { %vm2456_vm12 = vcmp.eq.f32.partialorder %v8790_v14, %v6773_v29  ;;  %v1325_v14 = vcvt.s32.f32 %v1323_v35 }
 0x5e4   :  { %v2457_v62 = vsel %vm2456_vm12, %v2452_v20, inf  ;;  %v6782_v13 = vcvt.s32.f32 %v1970_v36  ;;  %v6794_v20 = vsel %vm2101_vm4, 2147483647, %v8776_v63 }
 0x5e5   :  { %2458 = vmin.xlane.f32.xlu0 %v2457_v62  ;;  %8793 = vst [vmem:[#allocation69_spill] sm:$0xff] %v6794_v20  ;;  %v6807_v63 = vsel %vm871_vm0, %v6794_v20, 2147483647 }
 0x5e6   :  { %v1828_v22 = vpop.xlane.xlu2 %1827 }
 0x5e7   :  { %v6780_v2 = vpop.eup %4299  ;;  %v1829_v30 = vcvt.f32.s32 %v1828_v22 }
 0x5e8   :  { %8791 = vst [vmem:[#allocation51_spill] sm:$0xff] %v6780_v2  ;;  %v6788_v23 = vsel %vm1376_vm3, %v6780_v2, 0.0 }
 0x5e9   :  { %8792 = vst [vmem:[#allocation52_spill] sm:$0xff] %v6788_v23  ;;  %v6796_v9 = vadd.s32 %v1831_v38, %v1829_v30  ;;  %1973 = vmin.xlane.f32.xlu1 %v6782_v13  ;;  %v2401_v30 = vcvt.f32.s32 %v6373_v31  ;;  %v2541_v23 = vshra.s32 %v6807_v63, 16  ;;  %v2465_v31 = vand.u32 65535, %v6465_v59 }
 0x5ea   :  { %v6799_v22 = vpop.xlane.xlu1 %1327  ;;  %v2384_v46 = vpop.xlane.xlu0 %2383  ;;  %v1274_v59 = vcvt.f32.s32 %v6405_v48  ;;  %v1924_v48 = vand.u32 65535, %v6521_v21  ;;  %v8802_v21 = vld [vmem:[#allocation35_spill] sm:$0xff] }
 0x5eb   :  { %v2134_v42 = vand.u32 4294967232, %v6796_v9  ;;  %vm1329_vm13 = vcmp.eq.f32.partialorder %v6417_v6, %v6799_v22  ;;  %v2385_v36 = vcvt.f32.s32 %v2384_v46  ;;  %v1845_v6 = vcvt.f32.s32 %v6458_v55 }
 0x5ec   :  { %v1330_v50 = vsel %vm1329_vm13, %v1325_v14, inf  ;;  %v2402_v14 = vshll.u32 %v2401_v30, 16  ;;  %v6822_v55 = vcvt.s32.f32 %v2541_v23  ;;  %v1926_v52 = vcvt.s32.f32 %v1924_v48 }
 0x5ed   :  { %4301 = vrcp.f32 %v2134_v42  ;;  %1331 = vmin.xlane.f32.xlu0 %v1330_v50  ;;  %v6810_v62 = vadd.s32 %v2387_v10, %v2385_v36  ;;  %v1909_v42 = vand.u32 65535, %v6451_v57  ;;  %v8794_v36 = vld [vmem:[#allocation76_spill] sm:$0xff]  ;;  %v1846_v2 = vshll.u32 %v1845_v6, 16 }
 0x5ee   :  { %v1287_v35 = vpop.xlane.xlu2 %1286  ;;  %vm2102_vm9 = vcmp.eq.s32.totalorder %v8794_v36, %v6796_v9  ;;  %v8813_v9 = vld [vmem:[#allocation11_spill] sm:$0xff] }
 0x5ef   :  { %v1288_v38 = vcvt.f32.s32 %v1287_v35  ;;  %v2858_v19 = vand.u32 4294967232, %v6810_v62  ;;  %v1911_v6 = vcvt.s32.f32 %v1909_v42 }
 0x5f1   :  { %v6815_v46 = vadd.s32 %v1290_v58, %v1288_v38  ;;  %4303 = vrcp.f32 %v2858_v19  ;;  %v8795_v58 = vld [vmem:[#allocation64_spill] sm:$0xff]  ;;  %v8797_v19 = vld [vmem:[#allocation26_spill] sm:$0xff] }
 0x5f2   :  { %v2399_v20 = vpop.xlane.xlu1 %2398  ;;  %v1843_v35 = vpop.xlane.xlu0 %1842 }
 0x5f3   :  { %v4302_v10 = vpop.eup %4301  ;;  %v1411_v12 = vand.u32 4294967232, %v6815_v46  ;;  %v2400_v50 = vcvt.f32.s32 %v2399_v20  ;;  %v1844_v30 = vcvt.f32.s32 %v1843_v35 }
 0x5f4   :  { %v6825_v38 = vadd.f32 %v4302_v10, %v8795_v58  ;;  %v2262_v57 = vsel %vm2102_vm9, %v4302_v10, 0.0  ;;  %v2467_v10 = vcvt.s32.f32 %v2465_v31 }
 0x5f5   :  { %v6832_v4 = vadd.f32 %v2262_v57, %v8797_v19  ;;  %4305 = vrcp.f32 %v1411_v12  ;;  %v6834_v32 = vadd.s32 %v2402_v14, %v2400_v50  ;;  %2544 = vmin.xlane.f32.xlu0 %v6822_v55  ;;  %v1847_v23 = vadd.s32 %v1846_v2, %v1844_v30  ;;  %v8799_v57 = vld [vmem:[#allocation80_spill] sm:$0xff]  ;;  %v8800_v14 = vld [vmem:[#allocation81_spill] sm:$0xff]  ;;  %v8801_v30 = vld [vmem:[#allocation30_spill] sm:$0xff] }
 0x5f6   :  { %8796 = vst [vmem:[#allocation14_spill] sm:$0xff] %v6825_v38  ;;  %v6837_v20 = vpop.xlane.xlu2 %1913  ;;  %vm2826_vm10 = vcmp.eq.s32.totalorder %v8799_v57, %v6810_v62  ;;  %v1275_v2 = vshll.u32 %v1274_v59, 16 }
 0x5f7   :  { %8798 = vst [vmem:[#allocation4_spill] sm:$0xff] %v6832_v4  ;;  %v2859_v58 = vand.u32 4294967232, %v6834_v32  ;;  %vm1915_vm6 = vcmp.eq.f32.partialorder %v6473_v51, %v6837_v20  ;;  %v4304_v35 = vpop.eup %4303  ;;  %vm2103_vm4 = vcmp.eq.s32.totalorder %v8800_v14, %v1847_v23  ;;  %v2135_v12 = vand.u32 4294967232, %v1847_v23 }
 0x5f8   :  { %v1916_v50 = vsel %vm1915_vm6, %v1911_v6, inf  ;;  %v2954_v19 = vadd.f32 %v4304_v35, %v8801_v30  ;;  %v2986_v42 = vsel %vm2826_vm10, %v4304_v35, 0.0  ;;  %v2431_v51 = vcvt.f32.s32 %v6482_v0  ;;  %v8805_v30 = vld [vmem:[#allocation79_spill] sm:$0xff] }
 0x5f9   :  { %4307 = vrcp.f32 %v2859_v58  ;;  %1917 = vmin.xlane.f32.xlu2 %v1916_v50  ;;  %v3018_v31 = vadd.f32 %v2986_v42, %v8802_v21  ;;  %v6855_v4 = vsel %vm2103_vm4, 2147483647, %v8800_v14  ;;  %vm1379_vm11 = vcmp.eq.s32.totalorder %v8805_v30, %v6815_v46 }
 0x5fa   :  { %4309 = vrcp.f32 %v2135_v12  ;;  %8803 = vst [vmem:[#allocation46_spill] sm:$0xff] %v6855_v4  ;;  %v1272_v6 = vpop.xlane.xlu1 %1271  ;;  %v6861_v58 = vpop.xlane.xlu0 %2469  ;;  %v6865_v0 = vsel %vm871_vm0, %v6855_v4, 2147483647  ;;  %v2432_v21 = vshll.u32 %v2431_v51, 16  ;;  %v2480_v4 = vand.u32 65535, %v6510_v47  ;;  %v8810_v51 = vld [vmem:[#allocation21_spill] sm:$0xff] }
 0x5fb   :  { %v6857_v59 = vpop.eup %4305  ;;  %4311 = vrcp.f32 %v2954_v19  ;;  %v1273_v35 = vcvt.f32.s32 %v1272_v6  ;;  %vm2471_vm2 = vcmp.eq.f32.partialorder %v6501_v7, %v6861_v58  ;;  %v2571_v50 = vshra.s32 %v6865_v0, 16  ;;  %v8807_v6 = vld [vmem:[#allocation25_spill] sm:$0xff] }
 0x5fc   :  { %8804 = vst [vmem:[#allocation24_spill] sm:$0xff] %v6857_v59  ;;  %v6871_v12 = vsel %vm1379_vm11, %v6857_v59, 0.0  ;;  %v2472_v42 = vsel %vm2471_vm2, %v2467_v10, inf  ;;  %vm2827_vm8 = vcmp.eq.s32.totalorder %v8807_v6, %v6834_v32  ;;  %v6887_v10 = vsel %vm2102_vm9, 2147483647, %v8794_v36 }
 0x5fd   :  { %8806 = vst [vmem:[#allocation77_spill] sm:$0xff] %v6871_v12  ;;  %v1276_v19 = vadd.s32 %v1275_v2, %v1273_v35  ;;  %2473 = vmin.xlane.f32.xlu0 %v2472_v42  ;;  %v6880_v33 = vcvt.s32.f32 %v2571_v50  ;;  %v1304_v2 = vcvt.f32.s32 %v6528_v54  ;;  %v8811_v42 = vld [vmem:[#allocation13_spill] sm:$0xff]  ;;  %v8812_v50 = vld [vmem:[#allocation23_spill] sm:$0xff]  ;;  %v2482_v14 = vcvt.s32.f32 %v2480_v4 }
 0x5fe   :  { %v2429_v38 = vpop.xlane.xlu2 %2428  ;;  %8809 = vst [vmem:[#allocation59_spill] sm:$0xff] %v6887_v10 }
 0x5ff   :  { %v4308_v49 = vpop.eup %4307  ;;  %vm1378_vm14 = vcmp.eq.s32.totalorder %v8808_v26, %v1276_v19  ;;  %v1410_v12 = vand.u32 4294967232, %v1276_v19  ;;  %v2430_v59 = vcvt.f32.s32 %v2429_v38 }
 0x600   :  { %v4310_v7 = vpop.eup %4309  ;;  %v2955_v35 = vadd.f32 %v4308_v49, %v8810_v51  ;;  %v2987_v47 = vsel %vm2827_vm8, %v4308_v49, 0.0  ;;  %v6906_v49 = vsel %vm1378_vm14, 2147483647, %v8808_v26 }
 0x601   :  { %v4312_v48 = vpop.eup %4311  ;;  %v3019_v38 = vadd.f32 %v2987_v47, %v8811_v42  ;;  %v6895_v11 = vadd.f32 %v4310_v7, %v8812_v50  ;;  %v2263_v54 = vsel %vm2103_vm4, %v4310_v7, 0.0  ;;  %4313 = vrcp.f32 %v1410_v12  ;;  %2574 = vmin.xlane.f32.xlu2 %v6880_v33  ;;  %8815 = vst [vmem:[#allocation76_spill] sm:$0xff] %v6906_v49 }
 0x602   :  { %4315 = vrcp.f32 %v2955_v35  ;;  %v6901_v36 = vadd.f32 %v2263_v54, %v8813_v9  ;;  %v6908_v51 = vadd.s32 %v2432_v21, %v2430_v59  ;;  %v6910_v47 = vpop.xlane.xlu1 %2484  ;;  %v6914_v23 = vpop.xlane.xlu0 %1928  ;;  %v6918_v12 = vsel %vm871_vm0, %v6887_v10, 2147483647 }
 0x603   :  { %vm2486_vm1 = vcmp.eq.f32.partialorder %v6531_v34, %v6910_v47  ;;  %v3146_v7 = vmul.f32 %v4312_v48, %v3018_v31  ;;  %v3050_v35 = vsel %vm2826_vm10, 2147483647, %v8799_v57  ;;  %vm1930_vm15 = vcmp.eq.f32.partialorder %v6535_v60, %v6914_v23 }
 0x604   :  { %8814 = vst [vmem:[#allocation12_spill] sm:$0xff] %v6901_v36  ;;  %v2861_v59 = vand.u32 4294967232, %v6908_v51  ;;  %v2416_v34 = vcvt.f32.s32 %v6533_v5  ;;  %v2487_v21 = vsel %vm2486_vm1, %v2482_v14, inf  ;;  %v1931_v42 = vsel %vm1930_vm15, %v1926_v52, inf }
 0x605   :  { %v6930_v4 = vsel %vm871_vm0, %v6906_v49, 2147483647  ;;  %v1305_v50 = vshll.u32 %v1304_v2, 16  ;;  %v1860_v31 = vcvt.f32.s32 %v6574_v25  ;;  %2488 = vmin.xlane.f32.xlu1 %v2487_v21  ;;  %1932 = vmin.xlane.f32.xlu0 %v1931_v42  ;;  %v2556_v57 = vshra.s32 %v6918_v12, 16 }
 0x606   :  { %4317 = vrcp.f32 %v2861_v59  ;;  %v1302_v62 = vpop.xlane.xlu2 %1301  ;;  %vm3082_vm5 = vcmp.eq.s32.totalorder %v3050_v35, 2147483647  ;;  %v6940_v5 = vsel %vm1379_vm11, 2147483647, %v8805_v30  ;;  %vm3178_vm3 = vcmp.ne.f32.partialorder %v3146_v7, %v3146_v7 }
 0x607   :  { %v6934_v48 = vpop.eup %4313  ;;  %8817 = vst [vmem:[#allocation26_spill] sm:$0xff] %v6940_v5  ;;  %v1303_v60 = vcvt.f32.s32 %v1302_v62  ;;  %v3051_v25 = vsel %vm2827_vm8, 2147483647, %v8807_v6  ;;  %v2000_v54 = vshra.s32 %v6930_v4, 16  ;;  %v3210_v9 = vsel %vm3178_vm3, 1.0, %v3146_v7  ;;  %v8820_v62 = vld [vmem:[#allocation19_spill] sm:$0xff] }
 0x608   :  { %8816 = vst [vmem:[#allocation64_spill] sm:$0xff] %v6934_v48  ;;  %v4316_v52 = vpop.eup %4315  ;;  %v6949_v2 = vsel %vm1378_vm14, %v6934_v48, 0.0  ;;  %v3242_v30 = vsel %vm3082_vm5, %v3210_v9, 0.0  ;;  %v2417_v35 = vshll.u32 %v2416_v34, 16  ;;  %v1861_v59 = vshll.u32 %v1860_v31, 16  ;;  %v8821_v9 = vld [vmem:[#allocation20_spill] sm:$0xff] }
 0x609   :  { %8818 = vst [vmem:[#allocation80_spill] sm:$0xff] %v6949_v2  ;;  %v6952_v14 = vadd.s32 %v1305_v50, %v1303_v60  ;;  %v3147_v46 = vmul.f32 %v4316_v52, %v3019_v38  ;;  %v6954_v42 = vcvt.s32.f32 %v2556_v57  ;;  %v6958_v32 = vsel %vm871_vm0, %v6940_v5, 2147483647  ;;  %v8819_v50 = vld [vmem:[#allocation82_spill] sm:$0xff]  ;;  %v8829_v48 = vld [vmem:[#allocation16_spill] sm:$0xff] }
 0x60a   :  { %v2414_v21 = vpop.xlane.xlu1 %2413  ;;  %vm3083_vm7 = vcmp.eq.s32.totalorder %v3051_v25, 2147483647  ;;  %v1858_v6 = vpop.xlane.xlu0 %1857  ;;  %vm2829_vm13 = vcmp.eq.s32.totalorder %v8819_v50, %v6908_v51  ;;  %v6963_v34 = vcvt.s32.f32 %v2000_v54  ;;  %v8835_v5 = vld [vmem:[#allocation36_spill] sm:$0xff]  ;;  %vm3698_vm5 = vcmask 1043456  }
 0x60b   :  { %v1412_v26 = vand.u32 4294967232, %v6952_v14  ;;  %v2415_v19 = vcvt.f32.s32 %v2414_v21  ;;  %vm3179_vm12 = vcmp.ne.f32.partialorder %v3147_v46, %v3147_v46  ;;  %v1859_v38 = vcvt.f32.s32 %v1858_v6 }
 0x60c   :  { %v4318_v7 = vpop.eup %4317  ;;  %v3211_v31 = vsel %vm3179_vm12, 1.0, %v3147_v46  ;;  %v2510_v46 = vand.u32 65535, %v6561_v18  ;;  %v1875_v6 = vcvt.f32.s32 %v6585_v41  ;;  %v1939_v41 = vand.u32 65535, %v6639_v37 }
 0x60d   :  { %v2957_v57 = vadd.f32 %v4318_v7, %v8820_v62  ;;  %v2989_v60 = vsel %vm2829_vm13, %v4318_v7, 0.0  ;;  %4319 = vrcp.f32 %v1412_v26  ;;  %v6969_v52 = vadd.s32 %v2417_v35, %v2415_v19  ;;  %2559 = vmin.xlane.f32.xlu1 %v6954_v42  ;;  %2003 = vmin.xlane.f32.xlu0 %v6963_v34  ;;  %v8822_v19 = vld [vmem:[#allocation55_spill] sm:$0xff] }
 0x60e   :  { %v3021_v21 = vadd.f32 %v2989_v60, %v8821_v9  ;;  %v1862_v2 = vadd.s32 %v1861_v59, %v1859_v38  ;;  %v3243_v54 = vsel %vm3083_vm7, %v3211_v31, 0.0  ;;  %v1319_v62 = vcvt.f32.s32 %v6622_v28  ;;  %v6979_v35 = vpop.xlane.xlu2 %2514 }
 0x60f   :  { %4321 = vrcp.f32 %v2957_v57  ;;  %v2860_v26 = vand.u32 4294967232, %v6969_v52  ;;  %v2015_v7 = vshra.s32 %v6958_v32, 16  ;;  %v3285_v18 = vpack.c.bf16 %v3243_v54, %v3242_v30 }
 0x610   :  { %vm2104_vm9 = vcmp.eq.s32.totalorder %v8822_v19, %v1862_v2  ;;  %v2136_v59 = vand.u32 4294967232, %v1862_v2  ;;  %vm2516_vm6 = vcmp.eq.f32.partialorder %v6593_v56, %v6979_v35  ;;  %v2512_v38 = vcvt.s32.f32 %v2510_v46 }
 0x611   :  { %4323 = vrcp.f32 %v2860_v26  ;;  %v6986_v25 = vsel %vm2104_vm9, 2147483647, %v8822_v19  ;;  %v2495_v31 = vand.u32 65535, %v6635_v61  ;;  %v1876_v60 = vshll.u32 %v1875_v6, 16  ;;  %v8825_v26 = vld [vmem:[#allocation84_spill] sm:$0xff]  ;;  %4101 = vmatmul.msk.bf16.gmra.mxu0 %vm871_vm0, %v3285_v18 }
 0x612   :  { %8823 = vst [vmem:[#allocation81_spill] sm:$0xff] %v6986_v25  ;;  %4325 = vrcp.f32 %v2136_v59  ;;  %v1873_v28 = vpop.xlane.xlu1 %1872  ;;  %v1320_v9 = vshll.u32 %v1319_v62, 16  ;;  %vm1380_vm10 = vcmp.eq.s32.totalorder %v8825_v26, %v6952_v14  ;;  %v1317_v54 = vpop.xlane.xlu0 %1316  ;;  %v7003_v59 = vcvt.s32.f32 %v2015_v7  ;;  %v3441_v14 = vld [vmem:[%s8294_s1] sm:$0xff] }
 0x613   :  { %v6992_v57 = vpop.eup %4319  ;;  %v1874_v30 = vcvt.f32.s32 %v1873_v28  ;;  %v1318_v46 = vcvt.f32.s32 %v1317_v54  ;;  %v7007_v61 = vsel %vm871_vm0, %v6986_v25, 2147483647  ;;  %v2517_v18 = vsel %vm2516_vm6, %v2512_v38, inf }
 0x614   :  { %8824 = vst [vmem:[#allocation30_spill] sm:$0xff] %v6992_v57  ;;  %v7001_v37 = vsel %vm1380_vm10, %v6992_v57, 0.0  ;;  %v1941_v28 = vcvt.s32.f32 %v1939_v41  ;;  %v3053_v57 = vsel %vm2829_vm13, 2147483647, %v8819_v50  ;;  %v2497_v7 = vcvt.s32.f32 %v2495_v31  ;;  %v8831_v31 = vld [vmem:[#allocation56_spill] sm:$0xff] }
 0x615   :  { %8826 = vst [vmem:[#allocation35_spill] sm:$0xff] %v7001_v37  ;;  %v4322_v6 = vpop.eup %4321  ;;  %v1877_v62 = vadd.s32 %v1876_v60, %v1874_v30  ;;  %v7016_v37 = vadd.s32 %v1320_v9, %v1318_v46  ;;  %2018 = vmin.xlane.f32.xlu1 %v7003_v59  ;;  %2518 = vmin.xlane.f32.xlu0 %v2517_v18  ;;  %v8827_v60 = vld [vmem:[#allocation83_spill] sm:$0xff]  ;;  %v8828_v30 = vld [vmem:[#allocation85_spill] sm:$0xff]  ;;  %v2586_v41 = vshra.s32 %v7007_v61, 16  ;;  %vm3085_vm8 = vcmp.eq.s32.totalorder %v3053_v57, 2147483647 }
 0x616   :  { %v3149_v54 = vmul.f32 %v4322_v6, %v3021_v21  ;;  %vm2828_vm4 = vcmp.eq.s32.totalorder %v8827_v60, %v6969_v52  ;;  %v8832_v9 = vld [vmem:[#allocation17_spill] sm:$0xff]  ;;  %v3442_v52 = vld [vmem:[%s8294_s1 + $0x8] sm:$0xff]  ;;  %vm3649_vm3 = vcmask 64512  }
 0x617   :  { %v4324_v25 = vpop.eup %4323  ;;  %vm2105_vm11 = vcmp.eq.s32.totalorder %v8828_v30, %v1877_v62  ;;  %v2137_v56 = vand.u32 4294967232, %v1877_v62  ;;  %vm1381_vm2 = vcmp.eq.s32.totalorder %v8831_v31, %v7016_v37  ;;  %v8833_v6 = vld [vmem:[#allocation41_spill] sm:$0xff]  ;;  %v1413_v10 = vand.u32 4294967232, %v7016_v37 }
 0x618   :  { %v4326_v38 = vpop.eup %4325  ;;  %v2956_v51 = vadd.f32 %v4324_v25, %v8829_v48  ;;  %v2988_v50 = vsel %vm2828_vm4, %v4324_v25, 0.0  ;;  %v7030_v21 = vsel %vm2105_vm11, 2147483647, %v8828_v30  ;;  %v7048_v49 = vsel %vm1381_vm2, 2147483647, %v8831_v31 }
 0x619   :  { %8830 = vst [vmem:[#allocation79_spill] sm:$0xff] %v7030_v21  ;;  %v3020_v46 = vadd.f32 %v2988_v50, %v8832_v9  ;;  %v7036_v18 = vadd.f32 %v4326_v38, %v8833_v6  ;;  %v2264_v48 = vsel %vm2104_vm9, %v4326_v38, 0.0  ;;  %4327 = vrcp.f32 %v2137_v56  ;;  %v8838_v6 = vld [vmem:[#allocation66_spill] sm:$0xff] }
 0x61a   :  { %4329 = vrcp.f32 %v2956_v51  ;;  %v7041_v25 = vadd.f32 %v2264_v48, %v8835_v5  ;;  %8837 = vst [vmem:[#allocation21_spill] sm:$0xff] %v7048_v49  ;;  %v7050_v50 = vpop.xlane.xlu1 %2499  ;;  %v7054_v2 = vpop.xlane.xlu0 %1943  ;;  %v7056_v19 = vcvt.s32.f32 %v2586_v41  ;;  %v7060_v5 = vsel %vm871_vm0, %v7048_v49, 2147483647 }
 0x61b   :  { %8834 = vst [vmem:[#allocation25_spill] sm:$0xff] %v7036_v18  ;;  %vm2501_vm14 = vcmp.eq.f32.partialorder %v6652_v15, %v7050_v50  ;;  %4331 = vrcp.f32 %v1413_v10  ;;  %vm1945_vm1 = vcmp.eq.f32.partialorder %v6654_v8, %v7054_v2  ;;  %v7066_v38 = vsel %vm871_vm0, %v7030_v21, 2147483647 }
 0x61c   :  { %8836 = vst [vmem:[#allocation78_spill] sm:$0xff] %v7041_v25  ;;  %v2502_v56 = vsel %vm2501_vm14, %v2497_v7, inf  ;;  %v7072_v15 = vsel %vm1380_vm10, 2147483647, %v8825_v26  ;;  %v3052_v41 = vsel %vm2828_vm4, 2147483647, %v8827_v60  ;;  %vm3181_vm15 = vcmp.ne.f32.partialorder %v3149_v54, %v3149_v54 }
 0x61d   :  { %2503 = vmin.xlane.f32.xlu2 %v2502_v56  ;;  %v1946_v10 = vsel %vm1945_vm1, %v1941_v28, inf  ;;  %2589 = vmin.xlane.f32.xlu0 %v7056_v19  ;;  %v1954_v8 = vand.u32 65535, %v6658_v17  ;;  %v3437_v7 = vld [vmem:[%s8293_s4] sm:$0xf]  ;;  %v2045_v28 = vshra.s32 %v7060_v5, 16  ;;  %v2601_v60 = vshra.s32 %v7066_v38, 16 }
 0x61e   :  { %1947 = vmin.xlane.f32.xlu1 %v1946_v10  ;;  %v3213_v17 = vsel %vm3181_vm15, 1.0, %v3149_v54  ;;  %v3700_v51 = vsel %vm3698_vm5, %v3437_v7, 0  ;;  %v3473_v21 = vpack.c.bf16 %v3442_v52, %v3441_v14  ;;  %v8839_v25 = vld [vmem:[#allocation67_spill] sm:$0xff]  ;;  %v2446_v54 = vcvt.f32.s32 %v6680_v27 }
 0x61f   :  { %v4328_v26 = vpop.eup %4327  ;;  %v3245_v10 = vsel %vm3085_vm8, %v3213_v17, 0.0  ;;  %3709 = vmatpush.bf16.msra.mxu2 %v3700_v51  ;;  %v7107_v62 = vsel %vm871_vm0, %v7072_v15, 2147483647  ;;  %vm3084_vm7 = vcmp.eq.s32.totalorder %v3052_v41, 2147483647  ;;  %v7118_v30 = vcvt.s32.f32 %v2045_v28 }
 0x620   :  { %v4330_v9 = vpop.eup %4329  ;;  %v7092_v48 = vadd.f32 %v4328_v26, %v8838_v6  ;;  %v2265_v56 = vsel %vm2105_vm11, %v4328_v26, 0.0  ;;  %v1956_v6 = vcvt.s32.f32 %v1954_v8  ;;  %v2030_v8 = vshra.s32 %v7107_v62, 16 }
 0x621   :  { %v7098_v18 = vadd.f32 %v2265_v56, %v8839_v25  ;;  %v3148_v49 = vmul.f32 %v4330_v9, %v3020_v46  ;;  %v7100_v36 = vpop.eup %4331  ;;  %v7120_v46 = vcvt.s32.f32 %v2601_v60  ;;  %v1905_v26 = vcvt.f32.s32 %v6713_v3  ;;  %v8842_v3 = vld [vmem:[#allocation2_spill] sm:$0xff] }
 0x622   :  { %v7103_v7 = vpop.xlane.xlu1 %1958  ;;  %v7113_v57 = vsel %vm1381_vm2, %v7100_v36, 0.0  ;;  %4136 = vmatmul.msk.bf16.vlgmr.msra.gmra.mxu2 %vm3649_vm3, %v3473_v21  ;;  %v2447_v21 = vshll.u32 %v2446_v54, 16  ;;  %v7129_v52 = vcvt.s32.f32 %v2030_v8  ;;  %v2525_v56 = vand.u32 65535, %v6722_v16  ;;  %v8840_v54 = vld [vmem:[#allocation60_spill] sm:$0xff] }
 0x623   :  { %vm1960_vm12 = vcmp.eq.f32.partialorder %v6666_v39, %v7103_v7  ;;  %vm3180_vm13 = vcmp.ne.f32.partialorder %v3148_v49, %v3148_v49  ;;  %v4176_v39 = vld [vmem:[%s8295_s5] sm:$0xff]  ;;  %v1906_v17 = vshll.u32 %v1905_v26, 16  ;;  %v8844_v26 = vld [vmem:[#allocation75_spill] sm:$0xff]  ;;  %vm3511_vm2 = vcmask 130048  }
 0x624   :  { %v1961_v27 = vsel %vm1960_vm12, %v1956_v6, inf  ;;  %v3212_v25 = vsel %vm3180_vm13, 1.0, %v3148_v49  ;;  %3567 = vmatpush.bf16.msra.mxu1 %v4176_v39  ;;  %v2527_v8 = vcvt.s32.f32 %v2525_v56 }
 0x625   :  { %1962 = vmin.xlane.f32.xlu2 %v1961_v27  ;;  %v3244_v41 = vsel %vm3084_vm7, %v3212_v25, 0.0  ;;  %2048 = vmin.xlane.f32.xlu0 %v7118_v30  ;;  %v8841_v27 = vld [vmem:[#allocation29_spill] sm:$0xff] }
 0x626   :  { %2604 = vmin.xlane.f32.xlu1 %v7120_v46  ;;  %v3286_v37 = vpack.c.bf16 %v3245_v10, %v3244_v41 }
 0x627   :  { %v2444_v31 = vpop.xlane.xlu2 %2443 }
 0x628   :  { %v2445_v14 = vcvt.f32.s32 %v2444_v31  ;;  %4102 = vmatmul.msk.bf16.gmra.mxu0 %vm871_vm0, %v3286_v37 }
 0x62a   :  { %v2448_v49 = vadd.s32 %v2447_v21, %v2445_v14  ;;  %v8843_v21 = vld [vmem:[#allocation42_spill] sm:$0xff] }
 0x62c   :  { %v2862_v28 = vand.u32 4294967232, %v2448_v49  ;;  %vm2830_vm9 = vcmp.eq.s32.totalorder %v8840_v54, %v2448_v49  ;;  %v1984_v49 = vand.u32 65535, %v6739_v53  ;;  %v2461_v53 = vcvt.f32.s32 %v6773_v29 }
 0x62d   :  { %2033 = vmin.xlane.f32.xlu2 %v7129_v52 }
 0x62e   :  { %4333 = vrcp.f32 %v2862_v28 }
 0x62f   :  { %v1903_v60 = vpop.xlane.xlu2 %1902 }
 0x630   :  { %v1904_v51 = vcvt.f32.s32 %v1903_v60 }
 0x632   :  { %v1907_v9 = vadd.s32 %v1906_v17, %v1904_v51  ;;  %v3054_v17 = vsel %vm2830_vm9, 2147483647, %v8840_v54  ;;  %v8846_v51 = vld [vmem:[#allocation40_spill] sm:$0xff] }
 0x633   :  { %vm3086_vm11 = vcmp.eq.s32.totalorder %v3054_v17, 2147483647 }
 0x634   :  { %v4334_v10 = vpop.eup %4333  ;;  %v2139_v6 = vand.u32 4294967232, %v1907_v9  ;;  %vm2107_vm10 = vcmp.eq.s32.totalorder %v8843_v21, %v1907_v9 }
 0x635   :  { %v2958_v25 = vadd.f32 %v4334_v10, %v8841_v27  ;;  %v2990_v41 = vsel %vm2830_vm9, %v4334_v10, 0.0  ;;  %v7179_v29 = vsel %vm2107_vm10, 2147483647, %v8843_v21 }
 0x636   :  { %v3022_v37 = vadd.f32 %v2990_v41, %v8842_v3  ;;  %4335 = vrcp.f32 %v2139_v6  ;;  %v1890_v3 = vcvt.f32.s32 %v6741_v45  ;;  %8851 = vst [vmem:[#allocation82_spill] sm:$0xff] %v7179_v29  ;;  %v7191_v9 = vsel %vm871_vm0, %v7179_v29, 2147483647 }
 0x637   :  { %4337 = vrcp.f32 %v2958_v25  ;;  %v7139_v31 = vpop.xlane.xlu2 %2529 }
 0x638   :  { %vm2531_vm6 = vcmp.eq.f32.partialorder %v6726_v43, %v7139_v31 }
 0x639   :  { %v2532_v16 = vsel %vm2531_vm6, %v2527_v8, inf  ;;  %v1891_v8 = vshll.u32 %v1890_v3, 16  ;;  %v2462_v3 = vshll.u32 %v2461_v53, 16 }
 0x63a   :  { %2533 = vmin.xlane.f32.xlu1 %v2532_v16 }
 0x63c   :  { %v4336_v39 = vpop.eup %4335 }
 0x63d   :  { %v4338_v14 = vpop.eup %4337  ;;  %v7145_v28 = vadd.f32 %v4336_v39, %v8844_v26  ;;  %v2267_v60 = vsel %vm2107_vm10, %v4336_v39, 0.0 }
 0x63e   :  { %v7153_v56 = vadd.f32 %v2267_v60, %v8846_v51  ;;  %v3357_v43 = vpop.f32.mrf.mxu0  ;;  %v3150_v10 = vmul.f32 %v4338_v14, %v3022_v37  ;;  %v1986_v37 = vcvt.s32.f32 %v1984_v49  ;;  %v1349_v60 = vcvt.f32.s32 %v6758_v44  ;;  %v8849_v44 = vld [vmem:[#allocation65_spill] sm:$0xff] }
 0x63f   :  { %8845 = vst [vmem:[#allocation13_spill] sm:$0xff] %v7145_v28 }
 0x640   :  { %8847 = vst [vmem:[#allocation23_spill] sm:$0xff] %v7153_v56  ;;  %vm3182_vm4 = vcmp.ne.f32.partialorder %v3150_v10, %v3150_v10  ;;  %v1350_v51 = vshll.u32 %v1349_v60, 16 }
 0x641   :  { %v3214_v6 = vsel %vm3182_vm4, 1.0, %v3150_v10 }
 0x642   :  { %v7155_v27 = vsel %vm3086_vm11, %v3214_v6, 0.0 }
 0x646   :  { %v3359_v25 = vpop.f32.mrf.mxu0 }
 0x647   :  { %v3489_v41 = vpack.c.bf16 %v3359_v25, %v3357_v43  ;;  %v1969_v25 = vand.u32 65535, %v6771_v24 }
 0x649   :  { %4120 = vmatmul.msk.bf16.vlgmr.msra.gmra.mxu1 %vm3511_vm2, %v3489_v41 }
 0x64c   :  { %v1888_v54 = vpop.xlane.xlu1 %1887 }
 0x64d   :  { %v1889_v16 = vcvt.f32.s32 %v1888_v54  ;;  %v7160_v39 = vpop.xlane.xlu2 %1988 }
 0x64e   :  { %vm1990_vm8 = vcmp.eq.f32.partialorder %v6747_v40, %v7160_v39  ;;  %v8848_v40 = vld [vmem:[#allocation72_spill] sm:$0xff] }
 0x64f   :  { %v1892_v14 = vadd.s32 %v1891_v8, %v1889_v16  ;;  %v1991_v26 = vsel %vm1990_vm8, %v1986_v37, inf  ;;  %v8852_v37 = vld [vmem:[#allocation7_spill] sm:$0xff] }
 0x650   :  { %1992 = vmin.xlane.f32.xlu1 %v1991_v26 }
 0x651   :  { %v2138_v17 = vand.u32 4294967232, %v1892_v14  ;;  %vm2106_vm14 = vcmp.eq.s32.totalorder %v8848_v40, %v1892_v14 }
 0x653   :  { %4339 = vrcp.f32 %v2138_v17  ;;  %v1971_v17 = vcvt.s32.f32 %v1969_v25 }
 0x654   :  { %v1347_v45 = vpop.xlane.xlu1 %1346 }
 0x655   :  { %v1348_v43 = vcvt.f32.s32 %v1347_v45  ;;  %v1334_v45 = vcvt.f32.s32 %v6799_v22  ;;  %v2631_v22 = vshra.s32 %v7191_v9, 16 }
 0x657   :  { %v7166_v10 = vadd.s32 %v1350_v51, %v1348_v43 }
 0x658   :  { %v2459_v6 = vpop.xlane.xlu0 %2458 }
 0x659   :  { %v4340_v41 = vpop.eup %4339  ;;  %v1415_v49 = vand.u32 4294967232, %v7166_v10  ;;  %v2460_v54 = vcvt.f32.s32 %v2459_v6  ;;  %v1335_v6 = vshll.u32 %v1334_v45, 16  ;;  %v8859_v45 = vld [vmem:[#allocation44_spill] sm:$0xff] }
 0x65a   :  { %v7172_v8 = vadd.f32 %v4340_v41, %v8849_v44  ;;  %v2266_v16 = vsel %vm2106_vm14, %v4340_v41, 0.0  ;;  %v8855_v41 = vld [vmem:[#allocation45_spill] sm:$0xff]  ;;  %v8857_v44 = vld [vmem:[#allocation74_spill] sm:$0xff] }
 0x65b   :  { %v7182_v24 = vadd.f32 %v2266_v16, %v8852_v37  ;;  %4341 = vrcp.f32 %v1415_v49  ;;  %v2463_v26 = vadd.s32 %v2462_v3, %v2460_v54  ;;  %vm1383_vm15 = vcmp.eq.s32.totalorder %v8855_v41, %v7166_v10  ;;  %v8858_v16 = vld [vmem:[#allocation5_spill] sm:$0xff] }
 0x65c   :  { %8850 = vst [vmem:[#allocation11_spill] sm:$0xff] %v7172_v8  ;;  %v7184_v60 = vpop.xlane.xlu1 %1973  ;;  %v2540_v49 = vand.u32 65535, %v6807_v63  ;;  %v7220_v63 = vsel %vm2106_vm14, 2147483647, %v8848_v40  ;;  %v2570_v8 = vand.u32 65535, %v6865_v0 }
 0x65d   :  { %8853 = vst [vmem:[#allocation19_spill] sm:$0xff] %v7182_v24  ;;  %v2863_v51 = vand.u32 4294967232, %v2463_v26  ;;  %vm1975_vm1 = vcmp.eq.f32.partialorder %v6782_v13, %v7184_v60  ;;  %vm2831_vm5 = vcmp.eq.s32.totalorder %v8857_v44, %v2463_v26 }
 0x65e   :  { %v1976_v53 = vsel %vm1975_vm1, %v1971_v17, inf  ;;  %v7207_v17 = vcvt.s32.f32 %v2631_v22  ;;  %8861 = vst [vmem:[#allocation83_spill] sm:$0xff] %v7220_v63 }
 0x65f   :  { %4343 = vrcp.f32 %v2863_v51  ;;  %1977 = vmin.xlane.f32.xlu0 %v1976_v53 }
 0x660   :  { %v1332_v21 = vpop.xlane.xlu0 %1331 }
 0x661   :  { %v7193_v43 = vpop.eup %4341  ;;  %v1333_v25 = vcvt.f32.s32 %v1332_v21 }
 0x662   :  { %8854 = vst [vmem:[#allocation20_spill] sm:$0xff] %v7193_v43  ;;  %v7202_v13 = vsel %vm1383_vm15, %v7193_v43, 0.0  ;;  %v1920_v43 = vcvt.f32.s32 %v6837_v20 }
 0x663   :  { %8856 = vst [vmem:[#allocation55_spill] sm:$0xff] %v7202_v13  ;;  %v1336_v3 = vadd.s32 %v1335_v6, %v1333_v25  ;;  %v8862_v6 = vld [vmem:[#allocation6_spill] sm:$0xff] }
 0x665   :  { %v4344_v54 = vpop.eup %4343  ;;  %vm1382_vm7 = vcmp.eq.s32.totalorder %v8858_v16, %v1336_v3  ;;  %v1414_v37 = vand.u32 4294967232, %v1336_v3 }
 0x666   :  { %v2959_v51 = vadd.f32 %v4344_v54, %v8859_v45  ;;  %v2991_v53 = vsel %vm2831_vm5, %v4344_v54, 0.0  ;;  %v7215_v21 = vsel %vm1382_vm7, 2147483647, %v8858_v16  ;;  %v2542_v45 = vcvt.s32.f32 %v2540_v49 }
 0x667   :  { %8860 = vst [vmem:[#allocation84_spill] sm:$0xff] %v7215_v21  ;;  %v3023_v25 = vadd.f32 %v2991_v53, %v8862_v6  ;;  %4345 = vrcp.f32 %v1414_v37  ;;  %2634 = vmin.xlane.f32.xlu0 %v7207_v17  ;;  %v7226_v22 = vsel %vm871_vm0, %v7215_v21, 2147483647  ;;  %v7238_v37 = vsel %vm871_vm0, %v7220_v63, 2147483647 }
 0x668   :  { %4347 = vrcp.f32 %v2959_v51  ;;  %v7228_v54 = vpop.xlane.xlu0 %2544  ;;  %v2060_v13 = vshra.s32 %v7226_v22, 16  ;;  %v2476_v51 = vcvt.f32.s32 %v6861_v58  ;;  %v1921_v6 = vshll.u32 %v1920_v43, 16 }
 0x669   :  { %vm2546_vm12 = vcmp.eq.f32.partialorder %v6822_v55, %v7228_v54  ;;  %v2616_v24 = vshra.s32 %v7238_v37, 16  ;;  %v7254_v58 = vsel %vm1383_vm15, 2147483647, %v8855_v41 }
 0x66a   :  { %v2547_v14 = vsel %vm2546_vm12, %v2542_v45, inf  ;;  %v7234_v40 = vcvt.s32.f32 %v2060_v13  ;;  %8865 = vst [vmem:[#allocation56_spill] sm:$0xff] %v7254_v58  ;;  %v3055_v45 = vsel %vm2831_vm5, 2147483647, %v8857_v44 }
 0x66b   :  { %2548 = vmin.xlane.f32.xlu2 %v2547_v14  ;;  %v7261_v63 = vcvt.s32.f32 %v2616_v24  ;;  %vm3087_vm6 = vcmp.eq.s32.totalorder %v3055_v45, 2147483647 }
 0x66c   :  { %v1918_v53 = vpop.xlane.xlu2 %1917  ;;  %2063 = vmin.xlane.f32.xlu1 %v7234_v40 }
 0x66d   :  { %v7242_v49 = vpop.eup %4345  ;;  %v1919_v20 = vcvt.f32.s32 %v1918_v53  ;;  %v2477_v53 = vshll.u32 %v2476_v51, 16  ;;  %v2572_v51 = vcvt.s32.f32 %v2570_v8 }
 0x66e   :  { %8863 = vst [vmem:[#allocation85_spill] sm:$0xff] %v7242_v49  ;;  %v4348_v55 = vpop.eup %4347  ;;  %v7248_v13 = vsel %vm1382_vm7, %v7242_v49, 0.0 }
 0x66f   :  { %8864 = vst [vmem:[#allocation16_spill] sm:$0xff] %v7248_v13  ;;  %v1922_v43 = vadd.s32 %v1921_v6, %v1919_v20  ;;  %v3151_v14 = vmul.f32 %v4348_v55, %v3023_v25  ;;  %v7265_v13 = vsel %vm871_vm0, %v7254_v58, 2147483647  ;;  %v2491_v6 = vcvt.f32.s32 %v6910_v47  ;;  %v3443_v47 = vld [vmem:[%s8294_s1 + $0x10] sm:$0xff] }
 0x670   :  { %v2474_v16 = vpop.xlane.xlu0 %2473  ;;  %v1935_v20 = vcvt.f32.s32 %v6914_v23  ;;  %v2075_v55 = vshra.s32 %v7265_v13, 16  ;;  %v3444_v23 = vld [vmem:[%s8294_s1 + $0x18] sm:$0xff] }
 0x671   :  { %vm2108_vm13 = vcmp.eq.s32.totalorder %v6422_v1, %v1922_v43  ;;  %v2140_v3 = vand.u32 4294967232, %v1922_v43  ;;  %vm3183_vm9 = vcmp.ne.f32.partialorder %v3151_v14, %v3151_v14  ;;  %v2475_v10 = vcvt.f32.s32 %v2474_v16 }
 0x672   :  { %v3215_v41 = vsel %vm3183_vm9, 1.0, %v3151_v14  ;;  %v7270_v26 = vsel %vm2108_vm13, 2147483647, %v6422_v1  ;;  %v2492_v8 = vshll.u32 %v2491_v6, 16  ;;  %v8871_v1 = vld [vmem:[#allocation33_spill] sm:$0xff] }
 0x673   :  { %4349 = vrcp.f32 %v2140_v3  ;;  %8866 = vst [vmem:[#allocation17_spill] sm:$0xff] %v7270_v26  ;;  %2619 = vmin.xlane.f32.xlu2 %v7261_v63  ;;  %v3247_v0 = vsel %vm3087_vm6, %v3215_v41, 0.0  ;;  %v7273_v44 = vadd.s32 %v2477_v53, %v2475_v10  ;;  %v7287_v53 = vsel %vm871_vm0, %v7270_v26, 2147483647 }
 0x674   :  { %v7275_v24 = vpop.xlane.xlu2 %2574  ;;  %v3287_v25 = vpack.c.bf16 %v3247_v0, %v7155_v27  ;;  %v1936_v3 = vshll.u32 %v1935_v20, 16  ;;  %v7295_v41 = vcvt.s32.f32 %v2075_v55  ;;  %v2646_v0 = vshra.s32 %v7287_v53, 16 }
 0x675   :  { %vm2576_vm10 = vcmp.eq.f32.partialorder %v6880_v33, %v7275_v24  ;;  %v2864_v45 = vand.u32 4294967232, %v7273_v44  ;;  %v3474_v33 = vpack.c.bf16 %v3444_v23, %v3443_v47  ;;  %vm2832_vm4 = vcmp.eq.s32.totalorder %v8871_v1, %v7273_v44 }
 0x676   :  { %4103 = vmatmul.msk.bf16.gmra.mxu0 %vm871_vm0, %v3287_v25  ;;  %v2577_v14 = vsel %vm2576_vm10, %v2572_v51, inf  ;;  %v8867_v25 = vld [vmem:[#allocation70_spill] sm:$0xff]  ;;  %v7310_v55 = vcvt.s32.f32 %v2646_v0 }
 0x677   :  { %2578 = vmin.xlane.f32.xlu1 %v2577_v14  ;;  %4351 = vrcp.f32 %v2864_v45  ;;  %4137 = vmatmul.msk.bf16.gmra.mxu2 %vm3649_vm3, %v3474_v33  ;;  %v8869_v45 = vld [vmem:[#allocation39_spill] sm:$0xff]  ;;  %v2555_v33 = vand.u32 65535, %v6918_v12 }
 0x678   :  { %v2489_v16 = vpop.xlane.xlu1 %2488  ;;  %v1933_v10 = vpop.xlane.xlu0 %1932  ;;  %v8874_v12 = vld [vmem:[#allocation71_spill] sm:$0xff] }
 0x679   :  { %v4350_v27 = vpop.eup %4349  ;;  %v2490_v14 = vcvt.f32.s32 %v2489_v16  ;;  %v1934_v47 = vcvt.f32.s32 %v1933_v10  ;;  %v8873_v16 = vld [vmem:[#allocation62_spill] sm:$0xff] }
 0x67a   :  { %v7300_v51 = vadd.f32 %v4350_v27, %v8867_v25  ;;  %v2268_v26 = vsel %vm2108_vm13, %v4350_v27, 0.0  ;;  %v1999_v25 = vand.u32 65535, %v6930_v4  ;;  %v8872_v27 = vld [vmem:[#allocation27_spill] sm:$0xff] }
 0x67b   :  { %v7305_v23 = vadd.f32 %v2268_v26, %v8869_v45  ;;  %2078 = vmin.xlane.f32.xlu2 %v7295_v41  ;;  %v7308_v6 = vadd.s32 %v2492_v8, %v2490_v14  ;;  %v1937_v20 = vadd.s32 %v1936_v3, %v1934_v47  ;;  %v2557_v47 = vcvt.s32.f32 %v2555_v33 }
 0x67c   :  { %8868 = vst [vmem:[#allocation41_spill] sm:$0xff] %v7300_v51  ;;  %v2001_v45 = vcvt.s32.f32 %v1999_v25  ;;  %v8876_v25 = vld [vmem:[#allocation54_spill] sm:$0xff] }
 0x67d   :  { %8870 = vst [vmem:[#allocation36_spill] sm:$0xff] %v7305_v23  ;;  %v4352_v51 = vpop.eup %4351  ;;  %v2865_v43 = vand.u32 4294967232, %v7308_v6  ;;  %vm2109_vm11 = vcmp.eq.s32.totalorder %v8872_v27, %v1937_v20  ;;  %v2141_v26 = vand.u32 4294967232, %v1937_v20  ;;  %vm2833_vm1 = vcmp.eq.s32.totalorder %v8876_v25, %v7308_v6 }
 0x67e   :  { %v2960_v10 = vadd.f32 %v4352_v51, %v8873_v16  ;;  %v2992_v8 = vsel %vm2832_vm4, %v4352_v51, 0.0  ;;  %v7327_v4 = vsel %vm2109_vm11, 2147483647, %v8872_v27  ;;  %v2014_v16 = vand.u32 65535, %v6958_v32 }
 0x67f   :  { %2649 = vmin.xlane.f32.xlu1 %v7310_v55  ;;  %v3024_v3 = vadd.f32 %v2992_v8, %v8874_v12  ;;  %4353 = vrcp.f32 %v2865_v43  ;;  %8875 = vst [vmem:[#allocation66_spill] sm:$0xff] %v7327_v4  ;;  %v2521_v8 = vcvt.f32.s32 %v6979_v35  ;;  %v3445_v35 = vld [vmem:[%s8294_s1 + $0x20] sm:$0xff]  ;;  %v1950_v27 = vcvt.f32.s32 %v7054_v2 }
 0x680   :  { %4355 = vrcp.f32 %v2960_v10  ;;  %v7329_v0 = vpop.xlane.xlu1 %2559  ;;  %v7331_v14 = vpop.xlane.xlu0 %2003  ;;  %v7340_v10 = vsel %vm871_vm0, %v7327_v4, 2147483647  ;;  %v8878_v4 = vld [vmem:[#allocation68_spill] sm:$0xff] }
 0x681   :  { %4357 = vrcp.f32 %v2141_v26  ;;  %vm2561_vm8 = vcmp.eq.f32.partialorder %v6954_v42, %v7329_v0  ;;  %vm2005_vm14 = vcmp.eq.f32.partialorder %v6963_v34, %v7331_v14  ;;  %v2661_v42 = vshra.s32 %v7340_v10, 16  ;;  %v8877_v34 = vld [vmem:[#allocation34_spill] sm:$0xff] }
 0x682   :  { %v2562_v51 = vsel %vm2561_vm8, %v2557_v47, inf  ;;  %v2006_v43 = vsel %vm2005_vm14, %v2001_v45, inf  ;;  %v2016_v47 = vcvt.s32.f32 %v2014_v16  ;;  %v3446_v45 = vld [vmem:[%s8294_s1 + $0x28] sm:$0xff] }
 0x683   :  { %2563 = vmin.xlane.f32.xlu0 %v2562_v51  ;;  %2007 = vmin.xlane.f32.xlu2 %v2006_v43  ;;  %v2522_v43 = vshll.u32 %v2521_v8, 16  ;;  %v3475_v49 = vpack.c.bf16 %v3446_v45, %v3445_v35  ;;  %v8879_v16 = vld [vmem:[#allocation63_spill] sm:$0xff]  ;;  %v8880_v8 = vld [vmem:[#allocation73_spill] sm:$0xff]  ;;  %v1951_v35 = vshll.u32 %v1950_v27, 16 }
 0x685   :  { %v4354_v33 = vpop.eup %4353 }
 0x686   :  { %v4356_v26 = vpop.eup %4355  ;;  %v2961_v12 = vadd.f32 %v4354_v33, %v8877_v34  ;;  %v2993_v32 = vsel %vm2833_vm1, %v4354_v33, 0.0  ;;  %v3056_v33 = vsel %vm2832_vm4, 2147483647, %v8871_v1 }
 0x687   :  { %v4358_v51 = vpop.eup %4357  ;;  %v3025_v23 = vadd.f32 %v2993_v32, %v8878_v4  ;;  %v3152_v58 = vmul.f32 %v4356_v26, %v3024_v3  ;;  %v7373_v4 = vcvt.s32.f32 %v2661_v42  ;;  %4138 = vmatmul.msk.bf16.gmra.mxu2 %vm3649_vm3, %v3475_v49  ;;  %vm3088_vm7 = vcmp.eq.s32.totalorder %v3056_v33, 2147483647 }
 0x688   :  { %4359 = vrcp.f32 %v2961_v12  ;;  %v7362_v34 = vadd.f32 %v4358_v51, %v8879_v16  ;;  %v2269_v56 = vsel %vm2109_vm11, %v4358_v51, 0.0  ;;  %v7366_v28 = vpop.xlane.xlu1 %2018  ;;  %v2519_v29 = vpop.xlane.xlu0 %2518  ;;  %v3057_v49 = vsel %vm2833_vm1, 2147483647, %v8876_v25 }
 0x689   :  { %v7369_v21 = vadd.f32 %v2269_v56, %v8880_v8  ;;  %vm2020_vm15 = vcmp.eq.f32.partialorder %v7003_v59, %v7366_v28  ;;  %v2520_v3 = vcvt.f32.s32 %v2519_v29  ;;  %vm3184_vm5 = vcmp.ne.f32.partialorder %v3152_v58, %v3152_v58 }
 0x68a   :  { %v2021_v44 = vsel %vm2020_vm15, %v2016_v47, inf  ;;  %v3216_v20 = vsel %vm3184_vm5, 1.0, %v3152_v58  ;;  %v2506_v56 = vcvt.f32.s32 %v7050_v50  ;;  %v2585_v59 = vand.u32 65535, %v7007_v61 }
 0x68b   :  { %v7376_v1 = vadd.s32 %v2522_v43, %v2520_v3  ;;  %2022 = vmin.xlane.f32.xlu0 %v2021_v44  ;;  %2664 = vmin.xlane.f32.xlu2 %v7373_v4  ;;  %v3248_v29 = vsel %vm3088_vm7, %v3216_v20, 0.0  ;;  %v2600_v43 = vand.u32 65535, %v7066_v38  ;;  %vm3089_vm9 = vcmp.eq.s32.totalorder %v3057_v49, 2147483647  ;;  %v8882_v38 = vld [vmem:[#allocation22_spill] sm:$0xff] }
 0x68c   :  { %v2507_v58 = vshll.u32 %v2506_v56, 16  ;;  %v2587_v61 = vcvt.s32.f32 %v2585_v59  ;;  %v2044_v8 = vand.u32 65535, %v7060_v5  ;;  %v1965_v3 = vcvt.f32.s32 %v7103_v7 }
 0x68d   :  { %v2867_v42 = vand.u32 4294967232, %v7376_v1  ;;  %v2029_v59 = vand.u32 65535, %v7107_v62  ;;  %v2602_v7 = vcvt.s32.f32 %v2600_v43 }
 0x68e   :  { %v4360_v26 = vpop.eup %4359  ;;  %v3362_v12 = vpop.f32.mrf.mxu0 }
 0x68f   :  { %4361 = vrcp.f32 %v2867_v42  ;;  %v3153_v47 = vmul.f32 %v4360_v26, %v3025_v23  ;;  %v8883_v42 = vld [vmem:[#allocation28_spill] sm:$0xff] }
 0x690   :  { %v2504_v32 = vpop.xlane.xlu2 %2503  ;;  %v7387_v2 = vpop.xlane.xlu0 %2589 }
 0x691   :  { %v2505_v50 = vcvt.f32.s32 %v2504_v32  ;;  %v1948_v45 = vpop.xlane.xlu1 %1947  ;;  %vm2591_vm12 = vcmp.eq.f32.partialorder %v7056_v19, %v7387_v2  ;;  %vm3185_vm13 = vcmp.ne.f32.partialorder %v3153_v47, %v3153_v47  ;;  %v8881_v19 = vld [vmem:[#allocation31_spill] sm:$0xff] }
 0x692   :  { %v1949_v51 = vcvt.f32.s32 %v1948_v45  ;;  %v2592_v25 = vsel %vm2591_vm12, %v2587_v61, inf  ;;  %v3217_v33 = vsel %vm3185_vm13, 1.0, %v3153_v47  ;;  %vm2835_vm6 = vcmp.eq.s32.totalorder %v8881_v19, %v7376_v1 }
 0x693   :  { %v7392_v6 = vadd.s32 %v2507_v58, %v2505_v50  ;;  %2593 = vmin.xlane.f32.xlu0 %v2592_v25  ;;  %v3249_v16 = vsel %vm3089_vm9, %v3217_v33, 0.0  ;;  %v2046_v58 = vcvt.s32.f32 %v2044_v8  ;;  %v8885_v8 = vld [vmem:[#allocation8_spill] sm:$0xff] }
 0x694   :  { %v1952_v23 = vadd.s32 %v1951_v35, %v1949_v51  ;;  %v3288_v20 = vpack.c.bf16 %v3249_v16, %v3248_v29  ;;  %v8884_v29 = vld [vmem:[#allocation3_spill] sm:$0xff]  ;;  %v1966_v35 = vshll.u32 %v1965_v3, 16  ;;  %v8886_v3 = vld [vmem:[#allocation57_spill] sm:$0xff] }
 0x695   :  { %v2866_v44 = vand.u32 4294967232, %v7392_v6  ;;  %v4362_v56 = vpop.eup %4361  ;;  %vm2834_vm8 = vcmp.eq.s32.totalorder %v8885_v8, %v7392_v6 }
 0x696   :  { %vm2110_vm10 = vcmp.eq.s32.totalorder %v8882_v38, %v1952_v23  ;;  %v2142_v27 = vand.u32 4294967232, %v1952_v23  ;;  %v2963_v26 = vadd.f32 %v4362_v56, %v8883_v42  ;;  %v2995_v5 = vsel %vm2835_vm6, %v4362_v56, 0.0  ;;  %4104 = vmatmul.msk.bf16.gmra.mxu0 %vm871_vm0, %v3288_v20  ;;  %v3364_v47 = vpop.f32.mrf.mxu0  ;;  %v8887_v20 = vld [vmem:[#allocation32_spill] sm:$0xff] }
 0x697   :  { %4363 = vrcp.f32 %v2866_v44  ;;  %v3027_v49 = vadd.f32 %v2995_v5, %v8884_v29  ;;  %v7410_v32 = vsel %vm2110_vm10, 2147483647, %v8882_v38  ;;  %v3490_v50 = vpack.c.bf16 %v3364_v47, %v3362_v12  ;;  %v8889_v47 = vld [vmem:[#allocation50_spill] sm:$0xff] }
 0x698   :  { %4365 = vrcp.f32 %v2142_v27  ;;  %v1963_v62 = vpop.xlane.xlu2 %1962  ;;  %v7414_v51 = vpop.xlane.xlu0 %2048  ;;  %v7423_v16 = vsel %vm871_vm0, %v7410_v32, 2147483647  ;;  %v2031_v44 = vcvt.s32.f32 %v2029_v59 }
 0x699   :  { %4367 = vrcp.f32 %v2963_v26  ;;  %v1964_v45 = vcvt.f32.s32 %v1963_v62  ;;  %v7412_v61 = vpop.xlane.xlu1 %2604  ;;  %vm2050_vm11 = vcmp.eq.f32.partialorder %v7118_v30, %v7414_v51  ;;  %4121 = vmatmul.msk.bf16.gmra.mxu1 %vm3511_vm2, %v3490_v50  ;;  %v2676_v26 = vshra.s32 %v7423_v16, 16 }
 0x69a   :  { %vm2606_vm4 = vcmp.eq.f32.partialorder %v7120_v46, %v7412_v61  ;;  %v2051_v33 = vsel %vm2050_vm11, %v2046_v58, inf  ;;  %v3059_v58 = vsel %vm2835_vm6, 2147483647, %v8881_v19 }
 0x69b   :  { %v1967_v43 = vadd.s32 %v1966_v35, %v1964_v45  ;;  %v2607_v25 = vsel %vm2606_vm4, %v2602_v7, inf  ;;  %2052 = vmin.xlane.f32.xlu0 %v2051_v33  ;;  %v8888_v7 = vld [vmem:[#allocation38_spill] sm:$0xff]  ;;  %v8890_v35 = vld [vmem:[#allocation53_spill] sm:$0xff]  ;;  %v7455_v33 = vcvt.s32.f32 %v2676_v26  ;;  %vm3091_vm5 = vcmp.eq.s32.totalorder %v3059_v58, 2147483647 }
 0x69c   :  { %2608 = vmin.xlane.f32.xlu1 %v2607_v25  ;;  %vm3894_vm4 = vcmask 261120  }
 0x69d   :  { %v4364_v12 = vpop.eup %4363  ;;  %vm2111_vm14 = vcmp.eq.s32.totalorder %v8886_v3, %v1967_v43  ;;  %v2143_v46 = vand.u32 4294967232, %v1967_v43 }
 0x69e   :  { %v4366_v30 = vpop.eup %4365  ;;  %v2962_v56 = vadd.f32 %v4364_v12, %v8887_v20  ;;  %v2994_v27 = vsel %vm2834_vm8, %v4364_v12, 0.0  ;;  %v7435_v42 = vsel %vm2111_vm14, 2147483647, %v8886_v3 }
 0x69f   :  { %v4368_v5 = vpop.eup %4367  ;;  %v3026_v29 = vadd.f32 %v2994_v27, %v8888_v7  ;;  %v7440_v62 = vadd.f32 %v4366_v30, %v8889_v47  ;;  %v2270_v59 = vsel %vm2110_vm10, %v4366_v30, 0.0  ;;  %4369 = vrcp.f32 %v2143_v46  ;;  %v8892_v27 = vld [vmem:[#allocation43_spill] sm:$0xff] }
 0x6a0   :  { %4371 = vrcp.f32 %v2962_v56  ;;  %v7449_v50 = vadd.f32 %v2270_v59, %v8890_v35  ;;  %v7451_v45 = vpop.xlane.xlu2 %2033  ;;  %v3155_v25 = vmul.f32 %v4368_v5, %v3027_v49  ;;  %v7459_v38 = vsel %vm871_vm0, %v7435_v42, 2147483647 }
 0x6a1   :  { %vm2035_vm1 = vcmp.eq.f32.partialorder %v7129_v52, %v7451_v45  ;;  %v2691_v49 = vshra.s32 %v7459_v38, 16  ;;  %v8891_v52 = vld [vmem:[#allocation37_spill] sm:$0xff]  ;;  %v3058_v56 = vsel %vm2834_vm8, 2147483647, %v8885_v8  ;;  %v2536_v47 = vcvt.f32.s32 %v7139_v31  ;;  %v4178_v31 = vld [vmem:[%s8297_s7 + $0x8] sm:$0xff] }
 0x6a2   :  { %v2036_v23 = vsel %vm2035_vm1, %v2031_v44, inf  ;;  %vm3187_vm15 = vcmp.ne.f32.partialorder %v3155_v25, %v3155_v25  ;;  %vm3090_vm12 = vcmp.eq.s32.totalorder %v3058_v56, 2147483647  ;;  %3949 = vmatpush.bf16.msra.mxu3 %v4178_v31  ;;  %v1995_v56 = vcvt.f32.s32 %v7160_v39  ;;  %v7497_v39 = vld [vmem:[%s8296_s6] ss:$0 sm:$0xff] }
 0x6a3   :  { %2037 = vmin.xlane.f32.xlu2 %v2036_v23  ;;  %v3219_v1 = vsel %vm3187_vm15, 1.0, %v3155_v25  ;;  %v7475_v7 = vcvt.s32.f32 %v2691_v49  ;;  %v2537_v25 = vshll.u32 %v2536_v47, 16 }
 0x6a4   :  { %2679 = vmin.xlane.f32.xlu1 %v7455_v33  ;;  %v3251_v19 = vsel %vm3091_vm5, %v3219_v1, 0.0 }
 0x6a5   :  { %v4370_v12 = vpop.eup %4369  ;;  %v3367_v46 = vpop.f32.mrf.mxu0 }
 0x6a6   :  { %v4372_v30 = vpop.eup %4371  ;;  %v7464_v20 = vadd.f32 %v4370_v12, %v8891_v52  ;;  %v2271_v44 = vsel %vm2111_vm14, %v4370_v12, 0.0  ;;  %v8893_v12 = vld [vmem:[#allocation48_spill] sm:$0xff]  ;;  %v8895_v52 = vld [vmem:[#allocation18_spill] sm:$0xff] }
 0x6a7   :  { %v7473_v26 = vadd.f32 %v2271_v44, %v8892_v27  ;;  %v3154_v5 = vmul.f32 %v4372_v30, %v3026_v29  ;;  %v3711_v27 = vpop.f32.mrf.mxu2 }
 0x6a9   :  { %vm3186_vm7 = vcmp.ne.f32.partialorder %v3154_v5, %v3154_v5 }
 0x6aa   :  { %v3218_v59 = vsel %vm3186_vm7, 1.0, %v3154_v5 }
 0x6ab   :  { %2694 = vmin.xlane.f32.xlu2 %v7475_v7  ;;  %v3250_v43 = vsel %vm3090_vm12, %v3218_v59, 0.0  ;;  %v1996_v59 = vshll.u32 %v1995_v56, 16 }
 0x6ac   :  { %v3289_v3 = vpack.c.bf16 %v3251_v19, %v3250_v43  ;;  %v4177_v19 = vld [vmem:[%s8297_s7] sm:$0xff] }
 0x6ad   :  { %v3369_v58 = vpop.f32.mrf.mxu0  ;;  %v2534_v35 = vpop.xlane.xlu1 %2533  ;;  %3950 = vmatpush.bf16.msra.mxu3 %v4177_v19 }
 0x6ae   :  { %v3491_v6 = vpack.c.bf16 %v3369_v58, %v3367_v46  ;;  %v2535_v8 = vcvt.f32.s32 %v2534_v35  ;;  %4105 = vmatmul.msk.bf16.gmra.mxu0 %vm871_vm0, %v3289_v3  ;;  %v8894_v46 = vld [vmem:[#allocation58_spill] sm:$0xff] }
 0x6af   :  { %v3713_v31 = vpop.f32.mrf.mxu2 }
 0x6b0   :  { %v2538_v23 = vadd.s32 %v2537_v25, %v2535_v8  ;;  %4122 = vmatmul.msk.bf16.gmra.mxu1 %vm3511_vm2, %v3491_v6 }
 0x6b2   :  { %v2868_v29 = vand.u32 4294967232, %v2538_v23  ;;  %vm2836_vm13 = vcmp.eq.s32.totalorder %v8893_v12, %v2538_v23 }
 0x6b3   :  { %v3060_v43 = vsel %vm2836_vm13, 2147483647, %v8893_v12  ;;  %v1980_v12 = vcvt.f32.s32 %v7184_v60 }
 0x6b4   :  { %4373 = vrcp.f32 %v2868_v29  ;;  %vm3092_vm6 = vcmp.eq.s32.totalorder %v3060_v43, 2147483647 }
 0x6b5   :  { %v1981_v43 = vshll.u32 %v1980_v12, 16 }
 0x6ba   :  { %v4374_v1 = vpop.eup %4373 }
 0x6bb   :  { %v2964_v49 = vadd.f32 %v4374_v1, %v8894_v46  ;;  %v2996_v30 = vsel %vm2836_vm13, %v4374_v1, 0.0 }
 0x6bc   :  { %v3028_v44 = vadd.f32 %v2996_v30, %v8895_v52  ;;  %v8896_v30 = vld [vmem:[#allocation15_spill] sm:$0xff]  ;;  %v8897_v52 = vld [vmem:[#allocation9_spill] sm:$0xff] }
 0x6bd   :  { %4375 = vrcp.f32 %v2964_v49 }
 0x6c3   :  { %v4376_v5 = vpop.eup %4375  ;;  %v1993_v47 = vpop.xlane.xlu1 %1992 }
 0x6c4   :  { %v1994_v3 = vcvt.f32.s32 %v1993_v47  ;;  %v3156_v58 = vmul.f32 %v4376_v5, %v3028_v44  ;;  %v8899_v5 = vld [vmem:[#allocation61_spill] sm:$0xff] }
 0x6c6   :  { %v1997_v35 = vadd.s32 %v1996_v59, %v1994_v3  ;;  %v3569_v25 = vpop.f32.mrf.mxu1  ;;  %vm3188_vm9 = vcmp.ne.f32.partialorder %v3156_v58, %v3156_v58 }
 0x6c7   :  { %v3220_v6 = vsel %vm3188_vm9, 1.0, %v3156_v58  ;;  %v3712_v29 = vadd.f32 %v3711_v27, %v3569_v25 }
 0x6c8   :  { %v2145_v8 = vand.u32 4294967232, %v1997_v35  ;;  %v7492_v23 = vsel %vm3092_vm6, %v3220_v6, 0.0  ;;  %vm2113_vm10 = vcmp.eq.s32.totalorder %v8896_v30, %v1997_v35  ;;  %v8903_v35 = vld [vmem:[#allocation52_spill] sm:$0xff] }
 0x6c9   :  { %v3794_v19 = vadd.f32 %v7497_v39, %v3712_v29  ;;  %v8901_v29 = vld [vmem:[#allocation10_spill] sm:$0xff] }
 0x6ca   :  { %4377 = vrcp.f32 %v2145_v8  ;;  %v2630_v8 = vand.u32 65535, %v7191_v9  ;;  %v2059_v9 = vand.u32 65535, %v7226_v22 }
 0x6cb   :  { %v3826_v60 = vmax.f32 %v3794_v19, 0.0 }
 0x6cc   :  { %v2632_v19 = vcvt.s32.f32 %v2630_v8 }
 0x6ce   :  { %v3571_v1 = vpop.f32.mrf.mxu1 }
 0x6cf   :  { %v3714_v46 = vadd.f32 %v3713_v31, %v3571_v1 }
 0x6d0   :  { %v4378_v49 = vpop.eup %4377 }
 0x6d1   :  { %v7503_v44 = vadd.f32 %v4378_v49, %v8897_v52  ;;  %v2273_v56 = vsel %vm2113_vm10, %v4378_v49, 0.0  ;;  %v3795_v27 = vadd.f32 %v7497_v39, %v3714_v46  ;;  %v2551_v46 = vcvt.f32.s32 %v7228_v54 }
 0x6d2   :  { %v7509_v47 = vadd.f32 %v2273_v56, %v8899_v5  ;;  %v1978_v59 = vpop.xlane.xlu0 %1977  ;;  %v3447_v56 = vld [vmem:[%s8294_s1 + $0x30] sm:$0xff] }
 0x6d3   :  { %8898 = vst [vmem:[#allocation67_spill] sm:$0xff] %v7503_v44  ;;  %v3827_v3 = vmax.f32 %v3795_v27, 0.0  ;;  %v1979_v58 = vcvt.f32.s32 %v1978_v59  ;;  %v3448_v27 = vld [vmem:[%s8294_s1 + $0x38] sm:$0xff]  ;;  %v2552_v59 = vshll.u32 %v2551_v46, 16  ;;  %v2025_v44 = vcvt.f32.s32 %v7366_v28  ;;  %v3450_v28 = vld [vmem:[%s8294_s1 + $0x48] sm:$0xff] }
 0x6d4   :  { %8900 = vst [vmem:[#allocation60_spill] sm:$0xff] %v7509_v47  ;;  %v3476_v54 = vpack.c.bf16 %v3448_v27, %v3447_v56 }
 0x6d5   :  { %v1982_v25 = vadd.s32 %v1981_v43, %v1979_v58  ;;  %v3863_v6 = vpack.c.bf16 %v3827_v3, %v3826_v60  ;;  %v2061_v3 = vcvt.s32.f32 %v2059_v9 }
 0x6d6   :  { %4139 = vmatmul.msk.bf16.gmra.mxu2 %vm3649_vm3, %v3476_v54 }
 0x6d7   :  { %vm2112_vm11 = vcmp.eq.s32.totalorder %v8901_v29, %v1982_v25  ;;  %v2144_v31 = vand.u32 4294967232, %v1982_v25  ;;  %4160 = vmatmul.msk.bf16.vlgmr.msra.gmra.mxu3 %vm3894_vm4, %v3863_v6  ;;  %v8902_v6 = vld [vmem:[#allocation51_spill] sm:$0xff] }
 0x6d8   :  { %v7517_v1 = vsel %vm2112_vm11, 2147483647, %v8901_v29 }
 0x6d9   :  { %4379 = vrcp.f32 %v2144_v31  ;;  %v7527_v52 = vsel %vm871_vm0, %v7517_v1, 2147483647 }
 0x6da   :  { %v7519_v12 = vpop.xlane.xlu0 %2634  ;;  %v2706_v58 = vshra.s32 %v7527_v52, 16 }
 0x6db   :  { %vm2636_vm8 = vcmp.eq.f32.partialorder %v7207_v17, %v7519_v12  ;;  %v7538_v17 = vsel %vm2113_vm10, 2147483647, %v8896_v30 }
 0x6dc   :  { %v2637_v49 = vsel %vm2636_vm8, %v2632_v19, inf  ;;  %v7556_v9 = vsel %vm871_vm0, %v7538_v17, 2147483647  ;;  %v7559_v25 = vcvt.s32.f32 %v2706_v58  ;;  %v8904_v58 = vld [vmem:[#allocation69_spill] sm:$0xff] }
 0x6dd   :  { %2638 = vmin.xlane.f32.xlu1 %v2637_v49  ;;  %v2615_v49 = vand.u32 65535, %v7238_v37  ;;  %v2721_v29 = vshra.s32 %v7556_v9, 16 }
 0x6de   :  { %v2549_v22 = vpop.xlane.xlu2 %2548 }
 0x6df   :  { %v4380_v5 = vpop.eup %4379  ;;  %v2550_v43 = vcvt.f32.s32 %v2549_v22  ;;  %v7540_v60 = vpop.xlane.xlu1 %2063  ;;  %v2617_v27 = vcvt.s32.f32 %v2615_v49  ;;  %v2581_v22 = vcvt.f32.s32 %v7275_v24 }
 0x6e0   :  { %v7544_v8 = vadd.f32 %v4380_v5, %v8902_v6  ;;  %v2272_v31 = vsel %vm2112_vm11, %v4380_v5, 0.0  ;;  %vm2065_vm14 = vcmp.eq.f32.partialorder %v7234_v40, %v7540_v60  ;;  %v7568_v5 = vcvt.s32.f32 %v2721_v29 }
 0x6e1   :  { %v7552_v30 = vadd.f32 %v2272_v31, %v8903_v35  ;;  %v2553_v19 = vadd.s32 %v2552_v59, %v2550_v43  ;;  %v2066_v46 = vsel %vm2065_vm14, %v2061_v3, inf  ;;  %v2074_v59 = vand.u32 65535, %v7265_v13  ;;  %v8905_v31 = vld [vmem:[#allocation47_spill] sm:$0xff] }
 0x6e2   :  { %2067 = vmin.xlane.f32.xlu2 %v2066_v46  ;;  %v2582_v3 = vshll.u32 %v2581_v22, 16  ;;  %v2645_v22 = vand.u32 65535, %v7287_v53 }
 0x6e3   :  { %v2869_v56 = vand.u32 4294967232, %v2553_v19  ;;  %vm2837_vm15 = vcmp.eq.s32.totalorder %v8904_v58, %v2553_v19  ;;  %v2076_v29 = vcvt.s32.f32 %v2074_v59  ;;  %v8908_v19 = vld [vmem:[#allocation12_spill] sm:$0xff] }
 0x6e4   :  { %v2647_v59 = vcvt.s32.f32 %v2645_v22 }
 0x6e5   :  { %4381 = vrcp.f32 %v2869_v56  ;;  %2709 = vmin.xlane.f32.xlu1 %v7559_v25 }
 0x6e6   :  { %v7563_v40 = vpop.xlane.xlu2 %2619 }
 0x6e7   :  { %vm2621_vm1 = vcmp.eq.f32.partialorder %v7261_v63, %v7563_v40  ;;  %v8906_v63 = vld [vmem:[#allocation49_spill] sm:$0xff] }
 0x6e8   :  { %v2622_v54 = vsel %vm2621_vm1, %v2617_v27, inf }
 0x6e9   :  { %2623 = vmin.xlane.f32.xlu0 %v2622_v54  ;;  %v2566_v54 = vcvt.f32.s32 %v7329_v0  ;;  %v8907_v0 = vld [vmem:[#allocation46_spill] sm:$0xff] }
 0x6ea   :  { %v2579_v37 = vpop.xlane.xlu1 %2578  ;;  %2724 = vmin.xlane.f32.xlu2 %v7568_v5 }
 0x6eb   :  { %v4382_v43 = vpop.eup %4381  ;;  %v2580_v6 = vcvt.f32.s32 %v2579_v37 }
 0x6ec   :  { %v2965_v35 = vadd.f32 %v4382_v43, %v8905_v31  ;;  %v2997_v24 = vsel %vm2837_vm15, %v4382_v43, 0.0  ;;  %v2010_v43 = vcvt.f32.s32 %v7331_v14 }
 0x6ed   :  { %v3029_v46 = vadd.f32 %v2997_v24, %v8906_v63  ;;  %v7577_v49 = vadd.s32 %v2582_v3, %v2580_v6 }
 0x6ee   :  { %4383 = vrcp.f32 %v2965_v35  ;;  %v7579_v56 = vpop.xlane.xlu2 %2078  ;;  %v2567_v35 = vshll.u32 %v2566_v54, 16  ;;  %v2011_v53 = vshll.u32 %v2010_v43, 16 }
 0x6ef   :  { %v2871_v13 = vand.u32 4294967232, %v7577_v49  ;;  %vm2080_vm5 = vcmp.eq.f32.partialorder %v7295_v41, %v7579_v56  ;;  %v3061_v41 = vsel %vm2837_vm15, 2147483647, %v8904_v58  ;;  %vm2839_vm12 = vcmp.eq.s32.totalorder %v8907_v0, %v7577_v49  ;;  %v8910_v49 = vld [vmem:[#allocation59_spill] sm:$0xff] }
 0x6f0   :  { %v2081_v27 = vsel %vm2080_vm5, %v2076_v29, inf  ;;  %vm3093_vm9 = vcmp.eq.s32.totalorder %v3061_v41, 2147483647 }
 0x6f1   :  { %4385 = vrcp.f32 %v2871_v13  ;;  %2082 = vmin.xlane.f32.xlu0 %v2081_v27 }
 0x6f2   :  { %v7586_v37 = vpop.xlane.xlu1 %2649 }
 0x6f3   :  { %v3372_v3 = vpop.f32.mrf.mxu0  ;;  %vm2651_vm7 = vcmp.eq.f32.partialorder %v7310_v55, %v7586_v37 }
 0x6f4   :  { %v4384_v6 = vpop.eup %4383  ;;  %v2652_v14 = vsel %vm2651_vm7, %v2647_v59, inf }
 0x6f5   :  { %v3157_v31 = vmul.f32 %v4384_v6, %v3029_v46 }
 0x6f6   :  { %v2008_v63 = vpop.xlane.xlu2 %2007  ;;  %v2564_v29 = vpop.xlane.xlu0 %2563 }
 0x6f7   :  { %v4386_v24 = vpop.eup %4385  ;;  %vm3189_vm13 = vcmp.ne.f32.partialorder %v3157_v31, %v3157_v31  ;;  %v2009_v46 = vcvt.f32.s32 %v2008_v63  ;;  %v2565_v27 = vcvt.f32.s32 %v2564_v29 }
 0x6f8   :  { %v2967_v13 = vadd.f32 %v4386_v24, %v6895_v11  ;;  %v2999_v55 = vsel %vm2839_vm12, %v4386_v24, 0.0  ;;  %v3221_v22 = vsel %vm3189_vm13, 1.0, %v3157_v31  ;;  %v2660_v11 = vand.u32 65535, %v7340_v10  ;;  %v8909_v24 = vld [vmem:[#allocation76_spill] sm:$0xff] }
 0x6f9   :  { %v3031_v58 = vadd.f32 %v2999_v55, %v8908_v19  ;;  %2653 = vmin.xlane.f32.xlu0 %v2652_v14  ;;  %v2012_v54 = vadd.s32 %v2011_v53, %v2009_v46  ;;  %v7601_v43 = vadd.s32 %v2567_v35, %v2565_v27  ;;  %v3253_v6 = vsel %vm3093_vm9, %v3221_v22, 0.0 }
 0x6fa   :  { %4387 = vrcp.f32 %v2967_v13  ;;  %v3290_v47 = vpack.c.bf16 %v3253_v6, %v7492_v23  ;;  %v3449_v23 = vld [vmem:[%s8294_s1 + $0x40] sm:$0xff]  ;;  %v2662_v29 = vcvt.s32.f32 %v2660_v11  ;;  %v2026_v55 = vshll.u32 %v2025_v44, 16 }
 0x6fb   :  { %v3374_v59 = vpop.f32.mrf.mxu0  ;;  %vm2114_vm6 = vcmp.eq.s32.totalorder %v8909_v24, %v2012_v54  ;;  %v2146_v63 = vand.u32 4294967232, %v2012_v54  ;;  %v2870_v41 = vand.u32 4294967232, %v7601_v43  ;;  %v3477_v53 = vpack.c.bf16 %v3450_v28, %v3449_v23 }
 0x6fc   :  { %v7611_v31 = vsel %vm2114_vm6, 2147483647, %v8909_v24  ;;  %v3492_v35 = vpack.c.bf16 %v3374_v59, %v3372_v3  ;;  %4106 = vmatmul.msk.bf16.gmra.mxu0 %vm871_vm0, %v3290_v47  ;;  %v3063_v46 = vsel %vm2839_vm12, 2147483647, %v8907_v0  ;;  %v2596_v11 = vcvt.f32.s32 %v7387_v2 }
 0x6fd   :  { %4389 = vrcp.f32 %v2146_v63  ;;  %v7622_v10 = vsel %vm871_vm0, %v7611_v31, 2147483647  ;;  %4140 = vmatmul.msk.bf16.gmra.mxu2 %vm3649_vm3, %v3477_v53  ;;  %vm3095_vm11 = vcmp.eq.s32.totalorder %v3063_v46, 2147483647  ;;  %vm2838_vm14 = vcmp.eq.s32.totalorder %v8910_v49, %v7601_v43  ;;  %v8914_v53 = vld [vmem:[#allocation80_spill] sm:$0xff] }
 0x6fe   :  { %4391 = vrcp.f32 %v2870_v41  ;;  %4123 = vmatmul.msk.bf16.gmra.mxu1 %vm3511_vm2, %v3492_v35  ;;  %v7625_v3 = vpop.xlane.xlu2 %2664  ;;  %v2023_v47 = vpop.xlane.xlu0 %2022  ;;  %v2736_v14 = vshra.s32 %v7622_v10, 16  ;;  %v8912_v35 = vld [vmem:[#allocation64_spill] sm:$0xff] }
 0x6ff   :  { %vm2666_vm10 = vcmp.eq.f32.partialorder %v7373_v4, %v7625_v3  ;;  %v2024_v27 = vcvt.f32.s32 %v2023_v47  ;;  %v8911_v4 = vld [vmem:[#allocation26_spill] sm:$0xff]  ;;  %v3451_v43 = vld [vmem:[%s8294_s1 + $0x50] sm:$0xff] }
 0x700   :  { %v4388_v13 = vpop.eup %4387  ;;  %v2667_v19 = vsel %vm2666_vm10, %v2662_v29, inf  ;;  %v7635_v22 = vcvt.s32.f32 %v2736_v14  ;;  %v8916_v29 = vld [vmem:[#allocation14_spill] sm:$0xff] }
 0x701   :  { %v3159_v6 = vmul.f32 %v4388_v13, %v3031_v58  ;;  %v2027_v59 = vadd.s32 %v2026_v55, %v2024_v27  ;;  %2668 = vmin.xlane.f32.xlu1 %v2667_v19  ;;  %v8917_v55 = vld [vmem:[#allocation4_spill] sm:$0xff]  ;;  %v2597_v27 = vshll.u32 %v2596_v11, 16 }
 0x702   :  { %2739 = vmin.xlane.f32.xlu2 %v7635_v22 }
 0x703   :  { %vm3191_vm8 = vcmp.ne.f32.partialorder %v3159_v6, %v3159_v6  ;;  %v4390_v44 = vpop.eup %4389  ;;  %vm2115_vm1 = vcmp.eq.s32.totalorder %v8911_v4, %v2027_v59  ;;  %v2147_v0 = vand.u32 4294967232, %v2027_v59  ;;  %v2675_v59 = vand.u32 65535, %v7423_v16  ;;  %v8922_v16 = vld [vmem:[#allocation81_spill] sm:$0xff] }
 0x704   :  { %v3223_v63 = vsel %vm3191_vm8, 1.0, %v3159_v6  ;;  %v4392_v41 = vpop.eup %4391  ;;  %v7643_v23 = vadd.f32 %v4390_v44, %v8912_v35  ;;  %v2274_v58 = vsel %vm2114_vm6, %v4390_v44, 0.0  ;;  %v7650_v2 = vsel %vm2115_vm1, 2147483647, %v8911_v4 }
 0x705   :  { %8913 = vst [vmem:[#allocation29_spill] sm:$0xff] %v7650_v2  ;;  %v7652_v28 = vsel %vm3095_vm11, %v3223_v63, 0.0  ;;  %v7655_v47 = vadd.f32 %v2274_v58, %v8914_v53  ;;  %v2966_v14 = vadd.f32 %v4392_v41, %v8916_v29  ;;  %v2998_v13 = vsel %vm2838_vm14, %v4392_v41, 0.0  ;;  %v8918_v53 = vld [vmem:[#allocation24_spill] sm:$0xff] }
 0x706   :  { %4393 = vrcp.f32 %v2147_v0  ;;  %v3030_v54 = vadd.f32 %v2998_v13, %v8917_v55  ;;  %v2594_v24 = vpop.xlane.xlu0 %2593  ;;  %v7664_v46 = vsel %vm871_vm0, %v7650_v2, 2147483647  ;;  %v2611_v41 = vcvt.f32.s32 %v7412_v61  ;;  %v8920_v13 = vld [vmem:[#allocation77_spill] sm:$0xff] }
 0x707   :  { %8915 = vst [vmem:[#allocation2_spill] sm:$0xff] %v7655_v47  ;;  %4395 = vrcp.f32 %v2966_v14  ;;  %v2595_v19 = vcvt.f32.s32 %v2594_v24  ;;  %v2751_v6 = vshra.s32 %v7664_v46, 16  ;;  %v2055_v0 = vcvt.f32.s32 %v7414_v51 }
 0x708   :  { %v3062_v61 = vsel %vm2838_vm14, 2147483647, %v8910_v49  ;;  %v3452_v49 = vld [vmem:[%s8294_s1 + $0x58] sm:$0xff] }
 0x709   :  { %v7667_v44 = vadd.s32 %v2597_v27, %v2595_v19  ;;  %v7669_v63 = vcvt.s32.f32 %v2751_v6  ;;  %v2612_v19 = vshll.u32 %v2611_v41, 16  ;;  %v2056_v6 = vshll.u32 %v2055_v0, 16 }
 0x70a   :  { %vm3094_vm5 = vcmp.eq.s32.totalorder %v3062_v61, 2147483647  ;;  %v3478_v0 = vpack.c.bf16 %v3452_v49, %v3451_v43 }
 0x70b   :  { %v2872_v58 = vand.u32 4294967232, %v7667_v44  ;;  %2754 = vmin.xlane.f32.xlu0 %v7669_v63  ;;  %vm2840_vm7 = vcmp.eq.s32.totalorder %v8922_v16, %v7667_v44 }
 0x70c   :  { %v4394_v35 = vpop.eup %4393 }
 0x70d   :  { %v7676_v29 = vadd.f32 %v4394_v35, %v8918_v53  ;;  %v2275_v11 = vsel %vm2115_vm1, %v4394_v35, 0.0  ;;  %v4396_v14 = vpop.eup %4395  ;;  %4397 = vrcp.f32 %v2872_v58  ;;  %4141 = vmatmul.msk.bf16.gmra.mxu2 %vm3649_vm3, %v3478_v0 }
 0x70e   :  { %v7681_v55 = vadd.f32 %v2275_v11, %v8920_v13  ;;  %v2053_v24 = vpop.xlane.xlu0 %2052  ;;  %v3158_v27 = vmul.f32 %v4396_v14, %v3030_v54  ;;  %v2040_v54 = vcvt.f32.s32 %v7451_v45  ;;  %v2677_v45 = vcvt.s32.f32 %v2675_v59 }
 0x70f   :  { %8919 = vst [vmem:[#allocation42_spill] sm:$0xff] %v7676_v29  ;;  %v2609_v51 = vpop.xlane.xlu1 %2608  ;;  %v2054_v29 = vcvt.f32.s32 %v2053_v24  ;;  %v8924_v24 = vld [vmem:[#allocation25_spill] sm:$0xff]  ;;  %v2690_v59 = vand.u32 65535, %v7459_v38  ;;  %v3064_v38 = vsel %vm2840_vm7, 2147483647, %v8922_v16 }
 0x710   :  { %8921 = vst [vmem:[#allocation75_spill] sm:$0xff] %v7681_v55  ;;  %v2610_v53 = vcvt.f32.s32 %v2609_v51  ;;  %vm3190_vm15 = vcmp.ne.f32.partialorder %v3158_v27, %v3158_v27  ;;  %v3716_v51 = vpop.f32.mrf.mxu2  ;;  %v2041_v55 = vshll.u32 %v2040_v54, 16  ;;  %vm3096_vm8 = vcmp.eq.s32.totalorder %v3064_v38, 2147483647  ;;  %v8929_v38 = vld [vmem:[#allocation35_spill] sm:$0xff] }
 0x711   :  { %v2057_v35 = vadd.s32 %v2056_v6, %v2054_v29  ;;  %v3222_v58 = vsel %vm3190_vm15, 1.0, %v3158_v27  ;;  %v8923_v29 = vld [vmem:[#allocation21_spill] sm:$0xff]  ;;  %v8925_v6 = vld [vmem:[#allocation78_spill] sm:$0xff] }
 0x712   :  { %v7688_v4 = vadd.s32 %v2612_v19, %v2610_v53  ;;  %v3254_v41 = vsel %vm3094_vm5, %v3222_v58, 0.0 }
 0x713   :  { %v4398_v11 = vpop.eup %4397  ;;  %vm2117_vm12 = vcmp.eq.s32.totalorder %v8923_v29, %v2057_v35  ;;  %v2149_v13 = vand.u32 4294967232, %v2057_v35  ;;  %v3377_v61 = vpop.f32.mrf.mxu0  ;;  %v3291_v43 = vpack.c.bf16 %v7652_v28, %v3254_v41  ;;  %v2692_v41 = vcvt.s32.f32 %v2690_v59 }
 0x714   :  { %v2873_v14 = vand.u32 4294967232, %v7688_v4  ;;  %v2968_v27 = vadd.f32 %v4398_v11, %v8924_v24  ;;  %v3000_v19 = vsel %vm2840_vm7, %v4398_v11, 0.0  ;;  %v7710_v58 = vsel %vm2117_vm12, 2147483647, %v8923_v29 }
 0x715   :  { %v3032_v53 = vadd.f32 %v3000_v19, %v8925_v6  ;;  %8926 = vst [vmem:[#allocation40_spill] sm:$0xff] %v7710_v58  ;;  %4107 = vmatmul.msk.bf16.gmra.mxu0 %vm871_vm0, %v3291_v43  ;;  %v7721_v28 = vsel %vm871_vm0, %v7710_v58, 2147483647 }
 0x716   :  { %4399 = vrcp.f32 %v2873_v14  ;;  %v2038_v49 = vpop.xlane.xlu2 %2037  ;;  %v3574_v0 = vpop.f32.mrf.mxu1 }
 0x717   :  { %4401 = vrcp.f32 %v2968_v27  ;;  %v7713_v24 = vpop.xlane.xlu1 %2679  ;;  %v2039_v2 = vcvt.f32.s32 %v2038_v49  ;;  %v3717_v44 = vadd.f32 %v3716_v51, %v3574_v0 }
 0x718   :  { %4403 = vrcp.f32 %v2149_v13  ;;  %vm2681_vm13 = vcmp.eq.f32.partialorder %v7455_v33, %v7713_v24  ;;  %v8927_v13 = vld [vmem:[#allocation79_spill] sm:$0xff]  ;;  %v3718_v59 = vpop.f32.mrf.mxu2 }
 0x719   :  { %v2042_v11 = vadd.s32 %v2041_v55, %v2039_v2  ;;  %v2682_v14 = vsel %vm2681_vm13, %v2677_v45, inf  ;;  %vm2841_vm6 = vcmp.eq.s32.totalorder %v8927_v13, %v7688_v4  ;;  %v2781_v55 = vshra.s32 %v7721_v28, 16 }
 0x71a   :  { %2683 = vmin.xlane.f32.xlu1 %v2682_v14 }
 0x71b   :  { %vm2116_vm9 = vcmp.eq.s32.totalorder %v7072_v15, %v2042_v11  ;;  %v2148_v54 = vand.u32 4294967232, %v2042_v11  ;;  %v3379_v2 = vpop.f32.mrf.mxu0 }
 0x71c   :  { %v4400_v27 = vpop.eup %4399  ;;  %v7733_v33 = vsel %vm2116_vm9, 2147483647, %v7072_v15  ;;  %v3493_v49 = vpack.c.bf16 %v3379_v2, %v3377_v61 }
 0x71d   :  { %v4402_v19 = vpop.eup %4401  ;;  %v2969_v45 = vadd.f32 %v4400_v27, %v7092_v48  ;;  %v3001_v6 = vsel %vm2841_vm6, %v4400_v27, 0.0  ;;  %4405 = vrcp.f32 %v2148_v54  ;;  %v7745_v58 = vsel %vm871_vm0, %v7733_v33, 2147483647 }
 0x71e   :  { %v4404_v16 = vpop.eup %4403  ;;  %v3033_v43 = vadd.f32 %v3001_v6, %v7098_v18  ;;  %v7741_v14 = vpop.xlane.xlu2 %2694  ;;  %v3160_v47 = vmul.f32 %v4402_v19, %v3032_v53  ;;  %4124 = vmatmul.msk.bf16.gmra.mxu1 %vm3511_vm2, %v3493_v49  ;;  %v7758_v54 = vcvt.s32.f32 %v2781_v55  ;;  %v2766_v53 = vshra.s32 %v7745_v58, 16 }
 0x71f   :  { %4407 = vrcp.f32 %v2969_v45  ;;  %v7748_v48 = vadd.f32 %v4404_v16, %v7100_v36  ;;  %v2277_v51 = vsel %vm2117_vm12, %v4404_v16, 0.0  ;;  %vm2696_vm10 = vcmp.eq.f32.partialorder %v7475_v7, %v7741_v14  ;;  %v3576_v61 = vpop.f32.mrf.mxu1 }
 0x720   :  { %v7755_v18 = vadd.f32 %v2277_v51, %v7113_v57  ;;  %v2697_v0 = vsel %vm2696_vm10, %v2692_v41, inf  ;;  %v3796_v36 = vadd.f32 %v7497_v39, %v3717_v44  ;;  %v3719_v27 = vadd.f32 %v3718_v59, %v3576_v61  ;;  %v8928_v41 = vld [vmem:[#allocation30_spill] sm:$0xff]  ;;  %v3721_v11 = vpop.f32.mrf.mxu2 }
 0x721   :  { %2698 = vmin.xlane.f32.xlu2 %v2697_v0  ;;  %vm3192_vm11 = vcmp.ne.f32.partialorder %v3160_v47, %v3160_v47  ;;  %v7763_v7 = vcvt.s32.f32 %v2766_v53 }
 0x722   :  { %2784 = vmin.xlane.f32.xlu1 %v7758_v54  ;;  %v3224_v57 = vsel %vm3192_vm11, 1.0, %v3160_v47  ;;  %v3797_v29 = vadd.f32 %v7497_v39, %v3719_v27  ;;  %v3828_v6 = vmax.f32 %v3796_v36, 0.0  ;;  %v3065_v47 = vsel %vm2841_vm6, 2147483647, %v8927_v13 }
 0x723   :  { %v4406_v35 = vpop.eup %4405  ;;  %v3256_v2 = vsel %vm3096_vm8, %v3224_v57, 0.0  ;;  %2769 = vmin.xlane.f32.xlu0 %v7763_v7  ;;  %vm3097_vm1 = vcmp.eq.s32.totalorder %v3065_v47, 2147483647  ;;  %v2070_v47 = vcvt.f32.s32 %v7540_v60  ;;  %v2720_v60 = vand.u32 65535, %v7556_v9 }
 0x724   :  { %v7767_v55 = vadd.f32 %v4406_v35, %v8928_v41  ;;  %v2276_v19 = vsel %vm2116_vm9, %v4406_v35, 0.0  ;;  %v3829_v16 = vmax.f32 %v3797_v29, 0.0 }
 0x725   :  { %v4408_v45 = vpop.eup %4407  ;;  %v7773_v44 = vadd.f32 %v2276_v19, %v8929_v38  ;;  %v2722_v9 = vcvt.s32.f32 %v2720_v60 }
 0x726   :  { %v3161_v49 = vmul.f32 %v4408_v45, %v3033_v43  ;;  %v3864_v59 = vpack.c.bf16 %v3829_v16, %v3828_v6 }
 0x728   :  { %vm3193_vm14 = vcmp.ne.f32.partialorder %v3161_v49, %v3161_v49  ;;  %4161 = vmatmul.msk.bf16.gmra.mxu3 %vm3894_vm4, %v3864_v59  ;;  %v3723_v57 = vpop.f32.mrf.mxu2  ;;  %v2705_v59 = vand.u32 65535, %v7527_v52  ;;  %v8930_v52 = vld [vmem:[#allocation84_spill] sm:$0xff] }
 0x729   :  { %v3225_v15 = vsel %vm3193_vm14, 1.0, %v3161_v49 }
 0x72a   :  { %v3257_v51 = vsel %vm3097_vm1, %v3225_v15, 0.0 }
 0x72b   :  { %v3382_v61 = vpop.f32.mrf.mxu0  ;;  %v3292_v0 = vpack.c.bf16 %v3257_v51, %v3256_v2  ;;  %v2641_v2 = vcvt.f32.s32 %v7519_v12  ;;  %v2071_v51 = vshll.u32 %v2070_v47, 16  ;;  %v2626_v12 = vcvt.f32.s32 %v7563_v40 }
 0x72d   :  { %4108 = vmatmul.msk.bf16.gmra.mxu0 %vm871_vm0, %v3292_v0  ;;  %v3579_v53 = vpop.f32.mrf.mxu1  ;;  %v2642_v38 = vshll.u32 %v2641_v2, 16  ;;  %v7791_v0 = vld [vmem:[%s8298_s8] ss:$0 sm:$0xff] }
 0x72e   :  { %v3722_v36 = vadd.f32 %v3721_v11, %v3579_v53 }
 0x730   :  { %v3798_v13 = vadd.f32 %v7497_v39, %v3722_v36 }
 0x732   :  { %v3830_v41 = vmax.f32 %v3798_v13, 0.0 }
 0x733   :  { %v3384_v27 = vpop.f32.mrf.mxu0 }
 0x734   :  { %v3494_v35 = vpack.c.bf16 %v3384_v27, %v3382_v61  ;;  %v2707_v27 = vcvt.s32.f32 %v2705_v59 }
 0x735   :  { %v3581_v4 = vpop.f32.mrf.mxu1 }
 0x736   :  { %v3724_v43 = vadd.f32 %v3723_v57, %v3581_v4  ;;  %4125 = vmatmul.msk.bf16.gmra.mxu1 %vm3511_vm2, %v3494_v35 }
 0x738   :  { %v3799_v29 = vadd.f32 %v7497_v39, %v3724_v43  ;;  %v2627_v43 = vshll.u32 %v2626_v12, 16 }
 0x73a   :  { %v3831_v19 = vmax.f32 %v3799_v29, 0.0 }
 0x73c   :  { %v3865_v45 = vpack.c.bf16 %v3831_v19, %v3830_v41  ;;  %v8931_v19 = vld [vmem:[#allocation82_spill] sm:$0xff] }
 0x73e   :  { %4162 = vmatmul.msk.bf16.gmra.mxu3 %vm3894_vm4, %v3865_v45 }
 0x750   :  { %v2639_v6 = vpop.xlane.xlu1 %2638 }
 0x751   :  { %v2640_v16 = vcvt.f32.s32 %v2639_v6 }
 0x753   :  { %v2643_v49 = vadd.s32 %v2642_v38, %v2640_v16  ;;  %v8932_v16 = vld [vmem:[#allocation13_spill] sm:$0xff] }
 0x755   :  { %v2875_v15 = vand.u32 4294967232, %v2643_v49  ;;  %v2068_v11 = vpop.xlane.xlu2 %2067  ;;  %vm2843_vm7 = vcmp.eq.s32.totalorder %v8931_v19, %v2643_v49  ;;  %v8937_v49 = vld [vmem:[#allocation56_spill] sm:$0xff] }
 0x756   :  { %v2069_v61 = vcvt.f32.s32 %v2068_v11 }
 0x757   :  { %4409 = vrcp.f32 %v2875_v15  ;;  %v8933_v15 = vld [vmem:[#allocation23_spill] sm:$0xff] }
 0x758   :  { %v2072_v53 = vadd.s32 %v2071_v51, %v2069_v61  ;;  %v7794_v36 = vpop.xlane.xlu1 %2709 }
 0x759   :  { %vm2711_vm15 = vcmp.eq.f32.partialorder %v7559_v25, %v7794_v36 }
 0x75a   :  { %vm2118_vm5 = vcmp.eq.s32.totalorder %v8930_v52, %v2072_v53  ;;  %v2150_v57 = vand.u32 4294967232, %v2072_v53  ;;  %v3952_v35 = vpop.f32.mrf.mxu3  ;;  %v2712_v4 = vsel %vm2711_vm15, %v2707_v27, inf  ;;  %v2085_v27 = vcvt.f32.s32 %v7579_v56  ;;  %v3454_v56 = vld [vmem:[%s8294_s1 + $0x68] sm:$0xff] }
 0x75b   :  { %v7803_v13 = vsel %vm2118_vm5, 2147483647, %v8930_v52  ;;  %v3953_v40 = vadd.f32 %v7791_v0, %v3952_v35  ;;  %2713 = vmin.xlane.f32.xlu2 %v2712_v4  ;;  %v8934_v35 = vld [vmem:[#allocation85_spill] sm:$0xff]  ;;  %v3067_v53 = vsel %vm2843_vm7, 2147483647, %v8931_v19 }
 0x75c   :  { %4411 = vrcp.f32 %v2150_v57  ;;  %v2624_v29 = vpop.xlane.xlu0 %2623  ;;  %v7808_v25 = vsel %vm871_vm0, %v7803_v13, 2147483647  ;;  %vm3099_vm13 = vcmp.eq.s32.totalorder %v3067_v53, 2147483647 }
 0x75d   :  { %v4410_v41 = vpop.eup %4409  ;;  %v4032_v45 = vmax.f32 %v3953_v40, 0.0  ;;  %v2625_v2 = vcvt.f32.s32 %v2624_v29  ;;  %v7811_v6 = vpop.xlane.xlu2 %2724  ;;  %v2796_v38 = vshra.s32 %v7808_v25, 16  ;;  %v8935_v29 = vld [vmem:[#allocation16_spill] sm:$0xff] }
 0x75e   :  { %v2971_v47 = vadd.f32 %v4410_v41, %v8932_v16  ;;  %v3003_v59 = vsel %vm2843_vm7, %v4410_v41, 0.0  ;;  %vm2726_vm12 = vcmp.eq.f32.partialorder %v7568_v5, %v7811_v6 }
 0x75f   :  { %v3035_v11 = vadd.f32 %v3003_v59, %v8933_v15  ;;  %4064 = vst.msk [vmem:[%s8299_s9] sm:$0xff] %vm3511_vm2, %v4032_v45  ;;  %v2628_v51 = vadd.s32 %v2627_v43, %v2625_v2  ;;  %v2727_v61 = vsel %vm2726_vm12, %v2722_v9, inf  ;;  %v7824_v12 = vcvt.s32.f32 %v2796_v38  ;;  %v3453_v43 = vld [vmem:[%s8294_s1 + $0x60] sm:$0xff] }
 0x760   :  { %4413 = vrcp.f32 %v2971_v47  ;;  %2728 = vmin.xlane.f32.xlu0 %v2727_v61  ;;  %v3479_v2 = vpack.c.bf16 %v3454_v56, %v3453_v43  ;;  %v2086_v38 = vshll.u32 %v2085_v27, 16  ;;  %v2656_v61 = vcvt.f32.s32 %v7586_v37 }
 0x761   :  { %v2874_v60 = vand.u32 4294967232, %v2628_v51  ;;  %2799 = vmin.xlane.f32.xlu1 %v7824_v12 }
 0x762   :  { %v4412_v57 = vpop.eup %4411  ;;  %v3954_v5 = vpop.f32.mrf.mxu3  ;;  %4142 = vmatmul.msk.bf16.gmra.mxu2 %vm3649_vm3, %v3479_v2  ;;  %v2657_v2 = vshll.u32 %v2656_v61, 16 }
 0x763   :  { %v7829_v4 = vadd.f32 %v4412_v57, %v8934_v35  ;;  %v2278_v40 = vsel %vm2118_vm5, %v4412_v57, 0.0  ;;  %4415 = vrcp.f32 %v2874_v60  ;;  %v3955_v41 = vadd.f32 %v7791_v0, %v3954_v5  ;;  %v8936_v60 = vld [vmem:[#allocation83_spill] sm:$0xff] }
 0x764   :  { %v7840_v9 = vadd.f32 %v2278_v40, %v8935_v29  ;;  %v2083_v45 = vpop.xlane.xlu0 %2082  ;;  %vm2842_vm9 = vcmp.eq.s32.totalorder %v8936_v60, %v2628_v51  ;;  %v8938_v57 = vld [vmem:[#allocation11_spill] sm:$0xff] }
 0x765   :  { %v2084_v52 = vcvt.f32.s32 %v2083_v45  ;;  %v4033_v47 = vmax.f32 %v3955_v41, 0.0  ;;  %v8939_v40 = vld [vmem:[#allocation19_spill] sm:$0xff]  ;;  %v3066_v61 = vsel %vm2842_vm9, 2147483647, %v8936_v60 }
 0x766   :  { %v4414_v16 = vpop.eup %4413  ;;  %vm3098_vm8 = vcmp.eq.s32.totalorder %v3066_v61, 2147483647 }
 0x767   :  { %v2087_v59 = vadd.s32 %v2086_v38, %v2084_v52  ;;  %v3163_v15 = vmul.f32 %v4414_v16, %v3035_v11  ;;  %4065 = vst.msk [vmem:[%s8299_s9 + $0x8] sm:$0xff] %vm3511_vm2, %v4033_v47 }
 0x769   :  { %v4416_v27 = vpop.eup %4415  ;;  %vm2119_vm6 = vcmp.eq.s32.totalorder %v8937_v49, %v2087_v59  ;;  %v2151_v19 = vand.u32 4294967232, %v2087_v59  ;;  %vm3195_vm10 = vcmp.ne.f32.partialorder %v3163_v15, %v3163_v15 }
 0x76a   :  { %v2970_v5 = vadd.f32 %v4416_v27, %v8938_v57  ;;  %v3002_v11 = vsel %vm2842_vm9, %v4416_v27, 0.0  ;;  %v7860_v37 = vsel %vm2119_vm6, 2147483647, %v8937_v49  ;;  %v3227_v35 = vsel %vm3195_vm10, 1.0, %v3163_v15  ;;  %v8940_v57 = vld [vmem:[#allocation20_spill] sm:$0xff] }
 0x76b   :  { %v3034_v43 = vadd.f32 %v3002_v11, %v8939_v40  ;;  %4417 = vrcp.f32 %v2151_v19  ;;  %v7865_v56 = vsel %vm871_vm0, %v7860_v37, 2147483647  ;;  %v3259_v29 = vsel %vm3099_vm13, %v3227_v35, 0.0  ;;  %v8941_v35 = vld [vmem:[#allocation55_spill] sm:$0xff] }
 0x76c   :  { %4419 = vrcp.f32 %v2970_v5  ;;  %v2654_v41 = vpop.xlane.xlu0 %2653  ;;  %v2811_v45 = vshra.s32 %v7865_v56, 16  ;;  %v2735_v15 = vand.u32 65535, %v7622_v10  ;;  %v2671_v19 = vcvt.f32.s32 %v7625_v3 }
 0x76d   :  { %v2655_v38 = vcvt.f32.s32 %v2654_v41 }
 0x76e   :  { %v7868_v53 = vcvt.s32.f32 %v2811_v45  ;;  %v2737_v10 = vcvt.s32.f32 %v2735_v15 }
 0x76f   :  { %v2658_v52 = vadd.s32 %v2657_v2, %v2655_v38  ;;  %v2672_v2 = vshll.u32 %v2671_v19, 16 }
 0x770   :  { %2814 = vmin.xlane.f32.xlu2 %v7868_v53 }
 0x771   :  { %v4418_v16 = vpop.eup %4417  ;;  %v2876_v47 = vand.u32 4294967232, %v2658_v52 }
 0x772   :  { %v4420_v27 = vpop.eup %4419  ;;  %v7874_v11 = vadd.f32 %v4418_v16, %v8940_v57  ;;  %v2279_v5 = vsel %vm2119_vm6, %v4418_v16, 0.0  ;;  %v3726_v16 = vpop.f32.mrf.mxu2 }
 0x773   :  { %v7882_v40 = vadd.f32 %v2279_v5, %v8941_v35  ;;  %4421 = vrcp.f32 %v2876_v47  ;;  %v3162_v41 = vmul.f32 %v4420_v27, %v3034_v43  ;;  %v8942_v47 = vld [vmem:[#allocation17_spill] sm:$0xff]  ;;  %v8944_v35 = vld [vmem:[#allocation36_spill] sm:$0xff] }
 0x774   :  { %v2669_v45 = vpop.xlane.xlu1 %2668  ;;  %vm2844_vm1 = vcmp.eq.s32.totalorder %v8942_v47, %v2658_v52  ;;  %v8943_v43 = vld [vmem:[#allocation41_spill] sm:$0xff] }
 0x775   :  { %vm3194_vm11 = vcmp.ne.f32.partialorder %v3162_v41, %v3162_v41  ;;  %v2670_v3 = vcvt.f32.s32 %v2669_v45  ;;  %v7884_v38 = vpop.xlane.xlu2 %2739  ;;  %v3456_v45 = vld [vmem:[%s8294_s1 + $0x78] sm:$0xff] }
 0x776   :  { %v3226_v57 = vsel %vm3194_vm11, 1.0, %v3162_v41  ;;  %vm2741_vm14 = vcmp.eq.f32.partialorder %v7635_v22, %v7884_v38  ;;  %v2750_v41 = vand.u32 65535, %v7664_v46 }
 0x777   :  { %v3258_v59 = vsel %vm3098_vm8, %v3226_v57, 0.0  ;;  %v2673_v51 = vadd.s32 %v2672_v2, %v2670_v3  ;;  %v2742_v60 = vsel %vm2741_vm14, %v2737_v10, inf }
 0x778   :  { %v3293_v49 = vpack.c.bf16 %v3259_v29, %v3258_v59  ;;  %2743 = vmin.xlane.f32.xlu0 %v2742_v60  ;;  %v3455_v29 = vld [vmem:[%s8294_s1 + $0x70] sm:$0xff]  ;;  %v2752_v57 = vcvt.s32.f32 %v2750_v41 }
 0x779   :  { %v4422_v5 = vpop.eup %4421  ;;  %v2877_v19 = vand.u32 4294967232, %v2673_v51  ;;  %v3387_v61 = vpop.f32.mrf.mxu0  ;;  %v3480_v2 = vpack.c.bf16 %v3456_v45, %v3455_v29 }
 0x77a   :  { %v2972_v15 = vadd.f32 %v4422_v5, %v8943_v43  ;;  %v3004_v27 = vsel %vm2844_vm1, %v4422_v5, 0.0  ;;  %4109 = vmatmul.msk.bf16.gmra.mxu0 %vm871_vm0, %v3293_v49  ;;  %v3728_v5 = vpop.f32.mrf.mxu2 }
 0x77b   :  { %v3036_v22 = vadd.f32 %v3004_v27, %v8944_v35  ;;  %v3584_v10 = vpop.f32.mrf.mxu1  ;;  %4143 = vmatmul.msk.bf16.gmra.mxu2 %vm3649_vm3, %v3480_v2  ;;  %v8945_v27 = vld [vmem:[#allocation66_spill] sm:$0xff]  ;;  %v2686_v2 = vcvt.f32.s32 %v7713_v24  ;;  %v2780_v24 = vand.u32 65535, %v7721_v28 }
 0x77c   :  { %4423 = vrcp.f32 %v2972_v15  ;;  %v3727_v46 = vadd.f32 %v3726_v16, %v3584_v10  ;;  %v3068_v15 = vsel %vm2844_vm1, 2147483647, %v8942_v47  ;;  %vm2845_vm5 = vcmp.eq.s32.totalorder %v8945_v27, %v2673_v51  ;;  %v3457_v51 = vld [vmem:[%s8294_s1 + $0x80] sm:$0xff] }
 0x77d   :  { %4425 = vrcp.f32 %v2877_v19  ;;  %vm3100_vm12 = vcmp.eq.s32.totalorder %v3068_v15, 2147483647  ;;  %v2701_v15 = vcvt.f32.s32 %v7741_v14 }
 0x77e   :  { %v7902_v3 = vpop.xlane.xlu0 %2754  ;;  %v3800_v45 = vadd.f32 %v7497_v39, %v3727_v46 }
 0x77f   :  { %vm2756_vm15 = vcmp.eq.f32.partialorder %v7669_v63, %v7902_v3  ;;  %v2702_v28 = vshll.u32 %v2701_v15, 16 }
 0x780   :  { %v2757_v59 = vsel %vm2756_vm15, %v2752_v57, inf }
 0x781   :  { %2758 = vmin.xlane.f32.xlu1 %v2757_v59  ;;  %v3389_v49 = vpop.f32.mrf.mxu0 }
 0x782   :  { %v4424_v60 = vpop.eup %4423  ;;  %v3495_v19 = vpack.c.bf16 %v3389_v49, %v3387_v61  ;;  %v2687_v49 = vshll.u32 %v2686_v2, 16 }
 0x783   :  { %v4426_v43 = vpop.eup %4425  ;;  %v3164_v35 = vmul.f32 %v4424_v60, %v3036_v22  ;;  %v3586_v16 = vpop.f32.mrf.mxu1  ;;  %v3832_v22 = vmax.f32 %v3800_v45, 0.0 }
 0x784   :  { %v2973_v41 = vadd.f32 %v4426_v43, %v7362_v34  ;;  %v3005_v63 = vsel %vm2845_vm5, %v4426_v43, 0.0  ;;  %v3729_v10 = vadd.f32 %v3728_v5, %v3586_v16  ;;  %4126 = vmatmul.msk.bf16.gmra.mxu1 %vm3511_vm2, %v3495_v19  ;;  %v2765_v16 = vand.u32 65535, %v7745_v58 }
 0x785   :  { %v3037_v29 = vadd.f32 %v3005_v63, %v7369_v21  ;;  %vm3196_vm7 = vcmp.ne.f32.partialorder %v3164_v35, %v3164_v35  ;;  %v3069_v21 = vsel %vm2845_vm5, 2147483647, %v8945_v27  ;;  %v3458_v27 = vld [vmem:[%s8294_s1 + $0x88] sm:$0xff] }
 0x786   :  { %4427 = vrcp.f32 %v2973_v41  ;;  %v3228_v52 = vsel %vm3196_vm7, 1.0, %v3164_v35  ;;  %v3801_v47 = vadd.f32 %v7497_v39, %v3729_v10  ;;  %vm3101_vm9 = vcmp.eq.s32.totalorder %v3069_v21, 2147483647 }
 0x787   :  { %v3260_v61 = vsel %vm3100_vm12, %v3228_v52, 0.0  ;;  %v3481_v63 = vpack.c.bf16 %v3458_v27, %v3457_v51  ;;  %v2782_v52 = vcvt.s32.f32 %v2780_v24  ;;  %v2767_v58 = vcvt.s32.f32 %v2765_v16 }
 0x788   :  { %v3833_v34 = vmax.f32 %v3801_v47, 0.0 }
 0x78a   :  { %v3866_v57 = vpack.c.bf16 %v3833_v34, %v3832_v22 }
 0x78b   :  { %4144 = vmatmul.msk.bf16.gmra.mxu2 %vm3649_vm3, %v3481_v63 }
 0x78c   :  { %v4428_v59 = vpop.eup %4427  ;;  %4163 = vmatmul.msk.bf16.gmra.mxu3 %vm3894_vm4, %v3866_v57  ;;  %v3731_v57 = vpop.f32.mrf.mxu2 }
 0x78d   :  { %v2684_v46 = vpop.xlane.xlu1 %2683  ;;  %v3165_v60 = vmul.f32 %v4428_v59, %v3037_v29 }
 0x78e   :  { %v2685_v5 = vcvt.f32.s32 %v2684_v46 }
 0x78f   :  { %vm3197_vm13 = vcmp.ne.f32.partialorder %v3165_v60, %v3165_v60 }
 0x790   :  { %v2688_v39 = vadd.s32 %v2687_v49, %v2685_v5  ;;  %v3229_v43 = vsel %vm3197_vm13, 1.0, %v3165_v60 }
 0x791   :  { %v3261_v19 = vsel %vm3101_vm9, %v3229_v43, 0.0 }
 0x792   :  { %v2878_v35 = vand.u32 4294967232, %v2688_v39  ;;  %v3294_v41 = vpack.c.bf16 %v3261_v19, %v3260_v61  ;;  %v3392_v29 = vpop.f32.mrf.mxu0  ;;  %vm2846_vm11 = vcmp.eq.s32.totalorder %v7410_v32, %v2688_v39 }
 0x794   :  { %4429 = vrcp.f32 %v2878_v35  ;;  %4110 = vmatmul.msk.bf16.gmra.mxu0 %vm871_vm0, %v3294_v41  ;;  %v2699_v14 = vpop.xlane.xlu2 %2698  ;;  %v3733_v51 = vpop.f32.mrf.mxu2  ;;  %v7958_v41 = vld [vmem:[%s8296_s6] ss:$0 sm:$0xff] }
 0x795   :  { %v2700_v45 = vcvt.f32.s32 %v2699_v14  ;;  %v7933_v10 = vpop.xlane.xlu1 %2784 }
 0x796   :  { %vm2786_vm6 = vcmp.eq.f32.partialorder %v7758_v54, %v7933_v10  ;;  %v7937_v61 = vpop.xlane.xlu0 %2769 }
 0x797   :  { %v2703_v47 = vadd.s32 %v2702_v28, %v2700_v45  ;;  %v2787_v22 = vsel %vm2786_vm6, %v2782_v52, inf  ;;  %vm2771_vm10 = vcmp.eq.f32.partialorder %v7763_v7, %v7937_v61 }
 0x798   :  { %2788 = vmin.xlane.f32.xlu0 %v2787_v22  ;;  %v2772_v2 = vsel %vm2771_vm10, %v2767_v58, inf }
 0x799   :  { %v2879_v34 = vand.u32 4294967232, %v2703_v47  ;;  %2773 = vmin.xlane.f32.xlu2 %v2772_v2  ;;  %vm2847_vm8 = vcmp.eq.s32.totalorder %v7435_v42, %v2703_v47 }
 0x79a   :  { %v4430_v59 = vpop.eup %4429  ;;  %v3394_v60 = vpop.f32.mrf.mxu0  ;;  %v3071_v45 = vsel %vm2847_vm8, 2147483647, %v7435_v42 }
 0x79b   :  { %v2974_v21 = vadd.f32 %v4430_v59, %v7440_v62  ;;  %v3006_v54 = vsel %vm2846_vm11, %v4430_v59, 0.0  ;;  %4431 = vrcp.f32 %v2879_v34  ;;  %v3589_v49 = vpop.f32.mrf.mxu1  ;;  %v3496_v7 = vpack.c.bf16 %v3394_v60, %v3392_v29 }
 0x79c   :  { %v3038_v46 = vadd.f32 %v3006_v54, %v7449_v50  ;;  %v3732_v15 = vadd.f32 %v3731_v57, %v3589_v49  ;;  %v3070_v50 = vsel %vm2846_vm11, 2147483647, %v7410_v32  ;;  %vm3103_vm5 = vcmp.eq.s32.totalorder %v3071_v45, 2147483647 }
 0x79d   :  { %4433 = vrcp.f32 %v2974_v21  ;;  %4127 = vmatmul.msk.bf16.gmra.mxu1 %vm3511_vm2, %v3496_v7  ;;  %vm3102_vm1 = vcmp.eq.s32.totalorder %v3070_v50, 2147483647  ;;  %v3736_v21 = vpop.f32.mrf.mxu2  ;;  %v2731_v45 = vcvt.f32.s32 %v7811_v6 }
 0x7a1   :  { %v4432_v5 = vpop.eup %4431 }
 0x7a2   :  { %v2975_v43 = vadd.f32 %v4432_v5, %v7464_v20  ;;  %v3007_v62 = vsel %vm2847_vm8, %v4432_v5, 0.0  ;;  %v3802_v20 = vadd.f32 %v7958_v41, %v3732_v15 }
 0x7a3   :  { %v4434_v19 = vpop.eup %4433  ;;  %v3039_v24 = vadd.f32 %v3007_v62, %v7473_v26  ;;  %v3591_v35 = vpop.f32.mrf.mxu1 }
 0x7a4   :  { %4435 = vrcp.f32 %v2975_v43  ;;  %v3166_v27 = vmul.f32 %v4434_v19, %v3038_v46  ;;  %v3734_v63 = vadd.f32 %v3733_v51, %v3591_v35  ;;  %v3834_v39 = vmax.f32 %v3802_v20, 0.0 }
 0x7a5   :  { %v3738_v43 = vpop.f32.mrf.mxu2 }
 0x7a6   :  { %vm3198_vm14 = vcmp.ne.f32.partialorder %v3166_v27, %v3166_v27  ;;  %v3803_v26 = vadd.f32 %v7958_v41, %v3734_v63 }
 0x7a7   :  { %v3230_v16 = vsel %vm3198_vm14, 1.0, %v3166_v27 }
 0x7a8   :  { %v3262_v14 = vsel %vm3102_vm1, %v3230_v16, 0.0  ;;  %v3835_v32 = vmax.f32 %v3803_v26, 0.0 }
 0x7aa   :  { %v4436_v28 = vpop.eup %4435  ;;  %v3397_v29 = vpop.f32.mrf.mxu0  ;;  %v3867_v58 = vpack.c.bf16 %v3835_v32, %v3834_v39 }
 0x7ab   :  { %v3167_v52 = vmul.f32 %v4436_v28, %v3039_v24  ;;  %v3957_v22 = vpop.f32.mrf.mxu3 }
 0x7ac   :  { %v3958_v34 = vadd.f32 %v7791_v0, %v3957_v22  ;;  %4164 = vmatmul.msk.bf16.gmra.mxu3 %vm3894_vm4, %v3867_v58 }
 0x7ad   :  { %vm3199_vm15 = vcmp.ne.f32.partialorder %v3167_v52, %v3167_v52 }
 0x7ae   :  { %v3231_v2 = vsel %vm3199_vm15, 1.0, %v3167_v52  ;;  %v4034_v57 = vmax.f32 %v3958_v34, 0.0  ;;  %v2795_v52 = vand.u32 65535, %v7808_v25 }
 0x7af   :  { %v3263_v59 = vsel %vm3103_vm5, %v3231_v2, 0.0  ;;  %v2732_v2 = vshll.u32 %v2731_v45, 16 }
 0x7b0   :  { %v3295_v54 = vpack.c.bf16 %v3263_v59, %v3262_v14  ;;  %4066 = vst.msk [vmem:[%s8299_s9 + $0x10] sm:$0xff] %vm3511_vm2, %v4034_v57  ;;  %v2716_v14 = vcvt.f32.s32 %v7794_v36  ;;  %v2797_v36 = vcvt.s32.f32 %v2795_v52 }
 0x7b2   :  { %v3399_v42 = vpop.f32.mrf.mxu0  ;;  %4111 = vmatmul.msk.bf16.gmra.mxu0 %vm871_vm0, %v3295_v54  ;;  %v2717_v32 = vshll.u32 %v2716_v14, 16 }
 0x7b3   :  { %v3497_v47 = vpack.c.bf16 %v3399_v42, %v3397_v29  ;;  %v3594_v46 = vpop.f32.mrf.mxu1  ;;  %v3959_v60 = vpop.f32.mrf.mxu3 }
 0x7b4   :  { %v3960_v49 = vadd.f32 %v7791_v0, %v3959_v60  ;;  %v3737_v5 = vadd.f32 %v3736_v21, %v3594_v46  ;;  %v2810_v60 = vand.u32 65535, %v7865_v56 }
 0x7b5   :  { %4128 = vmatmul.msk.bf16.gmra.mxu1 %vm3511_vm2, %v3497_v47 }
 0x7b6   :  { %v4035_v7 = vmax.f32 %v3960_v49, 0.0  ;;  %v3804_v15 = vadd.f32 %v7958_v41, %v3737_v5 }
 0x7b8   :  { %4067 = vst.msk [vmem:[%s8299_s9 + $0x18] sm:$0xff] %vm3511_vm2, %v4035_v7  ;;  %v3836_v51 = vmax.f32 %v3804_v15, 0.0 }
 0x7bb   :  { %v3596_v62 = vpop.f32.mrf.mxu1 }
 0x7bc   :  { %v3739_v19 = vadd.f32 %v3738_v43, %v3596_v62  ;;  %v3460_v43 = vld [vmem:[%s8294_s1 + $0x98] sm:$0xff] }
 0x7be   :  { %v3805_v24 = vadd.f32 %v7958_v41, %v3739_v19  ;;  %v2812_v19 = vcvt.s32.f32 %v2810_v60 }
 0x7c0   :  { %v3837_v50 = vmax.f32 %v3805_v24, 0.0 }
 0x7c1   :  { %v3962_v27 = vpop.f32.mrf.mxu3 }
 0x7c2   :  { %v3963_v35 = vadd.f32 %v7791_v0, %v3962_v27  ;;  %v3868_v20 = vpack.c.bf16 %v3837_v50, %v3836_v51 }
 0x7c4   :  { %v4036_v63 = vmax.f32 %v3963_v35, 0.0  ;;  %4165 = vmatmul.msk.bf16.gmra.mxu3 %vm3894_vm4, %v3868_v20 }
 0x7c6   :  { %4068 = vst.msk [vmem:[%s8299_s9 + $0x20] sm:$0xff] %vm3511_vm2, %v4036_v63  ;;  %v2746_v63 = vcvt.f32.s32 %v7884_v38  ;;  %v2761_v38 = vcvt.f32.s32 %v7902_v3 }
 0x7c9   :  { %v3964_v16 = vpop.f32.mrf.mxu3 }
 0x7ca   :  { %v3965_v26 = vadd.f32 %v7791_v0, %v3964_v16 }
 0x7cc   :  { %v4037_v28 = vmax.f32 %v3965_v26, 0.0 }
 0x7ce   :  { %4069 = vst.msk [vmem:[%s8299_s9 + $0x28] sm:$0xff] %vm3511_vm2, %v4037_v28  ;;  %v2714_v39 = vpop.xlane.xlu2 %2713  ;;  %v2747_v28 = vshll.u32 %v2746_v63, 16 }
 0x7cf   :  { %v2715_v29 = vcvt.f32.s32 %v2714_v39 }
 0x7d1   :  { %v2718_v22 = vadd.s32 %v2717_v32, %v2715_v29 }
 0x7d3   :  { %v2880_v58 = vand.u32 4294967232, %v2718_v22  ;;  %v2729_v34 = vpop.xlane.xlu0 %2728  ;;  %vm2848_vm12 = vcmp.eq.s32.totalorder %v7517_v1, %v2718_v22 }
 0x7d4   :  { %v2730_v57 = vcvt.f32.s32 %v2729_v34  ;;  %v7994_v59 = vpop.xlane.xlu1 %2799  ;;  %v3072_v51 = vsel %vm2848_vm12, 2147483647, %v7517_v1 }
 0x7d5   :  { %4437 = vrcp.f32 %v2880_v58  ;;  %vm2801_vm7 = vcmp.eq.f32.partialorder %v7824_v12, %v7994_v59  ;;  %v8946_v12 = vld [vmem:[#allocation67_spill] sm:$0xff]  ;;  %vm3104_vm10 = vcmp.eq.s32.totalorder %v3072_v51, 2147483647  ;;  %v2762_v58 = vshll.u32 %v2761_v38, 16 }
 0x7d6   :  { %v2733_v21 = vadd.s32 %v2732_v2, %v2730_v57  ;;  %v2802_v54 = vsel %vm2801_vm7, %v2797_v36, inf  ;;  %v3461_v36 = vld [vmem:[%s8294_s1 + $0xa0] sm:$0xff] }
 0x7d7   :  { %2803 = vmin.xlane.f32.xlu1 %v2802_v54 }
 0x7d8   :  { %v2881_v42 = vand.u32 4294967232, %v2733_v21  ;;  %vm2849_vm13 = vcmp.eq.s32.totalorder %v7538_v17, %v2733_v21  ;;  %v3462_v21 = vld [vmem:[%s8294_s1 + $0xa8] sm:$0xff] }
 0x7da   :  { %4439 = vrcp.f32 %v2881_v42 }
 0x7db   :  { %v4438_v6 = vpop.eup %4437 }
 0x7dc   :  { %v2976_v25 = vadd.f32 %v4438_v6, %v7544_v8  ;;  %v3008_v47 = vsel %vm2848_vm12, %v4438_v6, 0.0  ;;  %v3459_v8 = vld [vmem:[%s8294_s1 + $0x90] sm:$0xff]  ;;  %v8948_v6 = vld [vmem:[#allocation2_spill] sm:$0xff] }
 0x7dd   :  { %v3040_v46 = vadd.f32 %v3008_v47, %v7552_v30  ;;  %v8947_v30 = vld [vmem:[#allocation60_spill] sm:$0xff]  ;;  %v3482_v15 = vpack.c.bf16 %v3460_v43, %v3459_v8  ;;  %v3483_v47 = vpack.c.bf16 %v3462_v21, %v3461_v36  ;;  %v8949_v43 = vld [vmem:[#allocation29_spill] sm:$0xff] }
 0x7de   :  { %4441 = vrcp.f32 %v2976_v25 }
 0x7df   :  { %4145 = vmatmul.msk.bf16.gmra.mxu2 %vm3649_vm3, %v3482_v15 }
 0x7e0   :  { %v4440_v49 = vpop.eup %4439 }
 0x7e1   :  { %v2977_v7 = vadd.f32 %v4440_v49, %v8946_v12  ;;  %v3009_v5 = vsel %vm2849_vm13, %v4440_v49, 0.0 }
 0x7e2   :  { %v3041_v62 = vadd.f32 %v3009_v5, %v8947_v30  ;;  %v8950_v30 = vld [vmem:[#allocation42_spill] sm:$0xff] }
 0x7e3   :  { %4443 = vrcp.f32 %v2977_v7  ;;  %v8015_v56 = vpop.xlane.xlu2 %2814 }
 0x7e4   :  { %v4442_v24 = vpop.eup %4441  ;;  %vm2816_vm9 = vcmp.eq.f32.partialorder %v7868_v53, %v8015_v56  ;;  %v3073_v53 = vsel %vm2849_vm13, 2147483647, %v7538_v17 }
 0x7e5   :  { %v3168_v50 = vmul.f32 %v4442_v24, %v3040_v46  ;;  %v2817_v27 = vsel %vm2816_vm9, %v2812_v19, inf  ;;  %vm3105_vm8 = vcmp.eq.s32.totalorder %v3073_v53, 2147483647  ;;  %v3741_v46 = vpop.f32.mrf.mxu2  ;;  %v8951_v19 = vld [vmem:[#allocation75_spill] sm:$0xff] }
 0x7e6   :  { %2818 = vmin.xlane.f32.xlu2 %v2817_v27 }
 0x7e7   :  { %vm3200_vm6 = vcmp.ne.f32.partialorder %v3168_v50, %v3168_v50 }
 0x7e8   :  { %v3232_v35 = vsel %vm3200_vm6, 1.0, %v3168_v50 }
 0x7e9   :  { %v4444_v20 = vpop.eup %4443  ;;  %v3264_v16 = vsel %vm3104_vm10, %v3232_v35, 0.0  ;;  %v2791_v35 = vcvt.f32.s32 %v7933_v10 }
 0x7ea   :  { %v3169_v26 = vmul.f32 %v4444_v20, %v3041_v62 }
 0x7eb   :  { %v2744_v14 = vpop.xlane.xlu0 %2743 }
 0x7ec   :  { %vm3201_vm11 = vcmp.ne.f32.partialorder %v3169_v26, %v3169_v26  ;;  %v2745_v39 = vcvt.f32.s32 %v2744_v14 }
 0x7ed   :  { %v3233_v1 = vsel %vm3201_vm11, 1.0, %v3169_v26  ;;  %v3743_v20 = vpop.f32.mrf.mxu2 }
 0x7ee   :  { %v3265_v32 = vsel %vm3105_vm8, %v3233_v1, 0.0  ;;  %v2748_v29 = vadd.s32 %v2747_v28, %v2745_v39  ;;  %v2792_v28 = vshll.u32 %v2791_v35, 16 }
 0x7ef   :  { %v3296_v45 = vpack.c.bf16 %v3265_v32, %v3264_v16  ;;  %4146 = vmatmul.msk.bf16.gmra.mxu2 %vm3649_vm3, %v3483_v47  ;;  %v3464_v47 = vld [vmem:[%s8294_s1 + $0xb8] sm:$0xff] }
 0x7f0   :  { %v2882_v52 = vand.u32 4294967232, %v2748_v29  ;;  %vm2850_vm14 = vcmp.eq.s32.totalorder %v7611_v31, %v2748_v29 }
 0x7f1   :  { %4112 = vmatmul.msk.bf16.gmra.mxu0 %vm871_vm0, %v3296_v45 }
 0x7f2   :  { %4445 = vrcp.f32 %v2882_v52 }
 0x7f4   :  { %v2759_v22 = vpop.xlane.xlu1 %2758 }
 0x7f5   :  { %v2760_v34 = vcvt.f32.s32 %v2759_v22 }
 0x7f7   :  { %v3402_v17 = vpop.f32.mrf.mxu0  ;;  %v2763_v2 = vadd.s32 %v2762_v58, %v2760_v34 }
 0x7f8   :  { %v4446_v57 = vpop.eup %4445 }
 0x7f9   :  { %v2978_v54 = vadd.f32 %v4446_v57, %v7643_v23  ;;  %v3010_v3 = vsel %vm2850_vm14, %v4446_v57, 0.0  ;;  %v2883_v42 = vand.u32 4294967232, %v2763_v2  ;;  %v3074_v23 = vsel %vm2850_vm14, 2147483647, %v7611_v31 }
 0x7fa   :  { %v3042_v25 = vadd.f32 %v3010_v3, %v8948_v6  ;;  %vm2851_vm1 = vcmp.eq.s32.totalorder %v8949_v43, %v2763_v2  ;;  %vm3106_vm5 = vcmp.eq.s32.totalorder %v3074_v23, 2147483647  ;;  %v2776_v31 = vcvt.f32.s32 %v7937_v61 }
 0x7fb   :  { %4447 = vrcp.f32 %v2978_v54  ;;  %v3075_v39 = vsel %vm2851_vm1, 2147483647, %v8949_v43 }
 0x7fc   :  { %4449 = vrcp.f32 %v2883_v42  ;;  %v2777_v10 = vshll.u32 %v2776_v31, 16  ;;  %vm3107_vm12 = vcmp.eq.s32.totalorder %v3075_v39, 2147483647 }
 0x7fe   :  { %v3746_v43 = vpop.f32.mrf.mxu2 }
 0x7ff   :  { %v3404_v60 = vpop.f32.mrf.mxu0 }
 0x800   :  { %v3498_v49 = vpack.c.bf16 %v3404_v60, %v3402_v17  ;;  %v8952_v60 = vld [vmem:[#allocation40_spill] sm:$0xff] }
 0x801   :  { %v4448_v12 = vpop.eup %4447  ;;  %v3599_v7 = vpop.f32.mrf.mxu1 }
 0x802   :  { %4129 = vmatmul.msk.bf16.gmra.mxu1 %vm3511_vm2, %v3498_v49  ;;  %v4450_v5 = vpop.eup %4449  ;;  %v3170_v8 = vmul.f32 %v4448_v12, %v3042_v25  ;;  %v3742_v27 = vadd.f32 %v3741_v46, %v3599_v7  ;;  %v3463_v25 = vld [vmem:[%s8294_s1 + $0xb0] sm:$0xff] }
 0x803   :  { %v2979_v62 = vadd.f32 %v4450_v5, %v8950_v30  ;;  %v3011_v15 = vsel %vm2851_vm1, %v4450_v5, 0.0  ;;  %v3484_v12 = vpack.c.bf16 %v3464_v47, %v3463_v25 }
 0x804   :  { %vm3202_vm15 = vcmp.ne.f32.partialorder %v3170_v8, %v3170_v8  ;;  %v3043_v24 = vadd.f32 %v3011_v15, %v8951_v19  ;;  %v3806_v16 = vadd.f32 %v7958_v41, %v3742_v27 }
 0x805   :  { %v3234_v51 = vsel %vm3202_vm15, 1.0, %v3170_v8  ;;  %4451 = vrcp.f32 %v2979_v62  ;;  %4147 = vmatmul.msk.bf16.gmra.mxu2 %vm3649_vm3, %v3484_v12  ;;  %v2806_v12 = vcvt.f32.s32 %v7994_v59  ;;  %v3465_v59 = vld [vmem:[%s8294_s1 + $0xc0] sm:$0xff] }
 0x806   :  { %v3266_v50 = vsel %vm3106_vm5, %v3234_v51, 0.0  ;;  %v3838_v61 = vmax.f32 %v3806_v16, 0.0  ;;  %v3748_v31 = vpop.f32.mrf.mxu2 }
 0x809   :  { %v3601_v63 = vpop.f32.mrf.mxu1 }
 0x80a   :  { %v3744_v53 = vadd.f32 %v3743_v20, %v3601_v63 }
 0x80b   :  { %v2789_v26 = vpop.xlane.xlu0 %2788  ;;  %v4452_v14 = vpop.eup %4451 }
 0x80c   :  { %v2790_v1 = vcvt.f32.s32 %v2789_v26  ;;  %v3171_v32 = vmul.f32 %v4452_v14, %v3043_v24  ;;  %v3807_v29 = vadd.f32 %v7958_v41, %v3744_v53  ;;  %v2774_v45 = vpop.xlane.xlu2 %2773 }
 0x80d   :  { %v2775_v38 = vcvt.f32.s32 %v2774_v45 }
 0x80e   :  { %v2793_v52 = vadd.s32 %v2792_v28, %v2790_v1  ;;  %vm3203_vm7 = vcmp.ne.f32.partialorder %v3171_v32, %v3171_v32  ;;  %v3839_v22 = vmax.f32 %v3807_v29, 0.0 }
 0x80f   :  { %v3235_v58 = vsel %vm3203_vm7, 1.0, %v3171_v32  ;;  %v2778_v17 = vadd.s32 %v2777_v10, %v2775_v38  ;;  %v3967_v57 = vpop.f32.mrf.mxu3 }
 0x810   :  { %v2885_v34 = vand.u32 4294967232, %v2793_v52  ;;  %v3267_v36 = vsel %vm3107_vm12, %v3235_v58, 0.0  ;;  %v3968_v2 = vadd.f32 %v7791_v0, %v3967_v57  ;;  %v3869_v54 = vpack.c.bf16 %v3839_v22, %v3838_v61 }
 0x811   :  { %v3407_v21 = vpop.f32.mrf.mxu0  ;;  %v2884_v3 = vand.u32 4294967232, %v2778_v17  ;;  %v3297_v6 = vpack.c.bf16 %v3267_v36, %v3266_v50  ;;  %vm2853_vm13 = vcmp.eq.s32.totalorder %v8952_v60, %v2793_v52  ;;  %vm2852_vm9 = vcmp.eq.s32.totalorder %v7733_v33, %v2778_v17  ;;  %v3751_v52 = vpop.f32.mrf.mxu2 }
 0x812   :  { %4453 = vrcp.f32 %v2885_v34  ;;  %v4038_v42 = vmax.f32 %v3968_v2, 0.0  ;;  %4166 = vmatmul.msk.bf16.gmra.mxu3 %vm3894_vm4, %v3869_v54 }
 0x813   :  { %4455 = vrcp.f32 %v2884_v3  ;;  %4113 = vmatmul.msk.bf16.gmra.mxu0 %vm871_vm0, %v3297_v6 }
 0x814   :  { %4070 = vst.msk [vmem:[%s8299_s9 + $0x30] sm:$0xff] %vm3511_vm2, %v4038_v42 }
 0x817   :  { %v3969_v49 = vpop.f32.mrf.mxu3 }
 0x818   :  { %v4454_v46 = vpop.eup %4453  ;;  %v3970_v8 = vadd.f32 %v7791_v0, %v3969_v49 }
 0x819   :  { %v2981_v7 = vadd.f32 %v4454_v46, %v7748_v48  ;;  %v3013_v5 = vsel %vm2853_vm13, %v4454_v46, 0.0  ;;  %v3409_v23 = vpop.f32.mrf.mxu0  ;;  %v4456_v30 = vpop.eup %4455 }
 0x81a   :  { %v3045_v62 = vadd.f32 %v3013_v5, %v7755_v18  ;;  %v3499_v15 = vpack.c.bf16 %v3409_v23, %v3407_v21  ;;  %v2980_v19 = vadd.f32 %v4456_v30, %v7767_v55  ;;  %v3012_v48 = vsel %vm2852_vm9, %v4456_v30, 0.0  ;;  %v3604_v18 = vpop.f32.mrf.mxu1  ;;  %v3753_v21 = vpop.f32.mrf.mxu2 }
 0x81b   :  { %4457 = vrcp.f32 %v2981_v7  ;;  %v4039_v24 = vmax.f32 %v3970_v8, 0.0  ;;  %v3044_v51 = vadd.f32 %v3012_v48, %v7773_v44  ;;  %v3077_v55 = vsel %vm2853_vm13, 2147483647, %v8952_v60 }
 0x81c   :  { %4130 = vmatmul.msk.bf16.gmra.mxu1 %vm3511_vm2, %v3499_v15  ;;  %4459 = vrcp.f32 %v2980_v19  ;;  %v3747_v35 = vadd.f32 %v3746_v43, %v3604_v18  ;;  %v3076_v44 = vsel %vm2852_vm9, 2147483647, %v7733_v33  ;;  %vm3109_vm10 = vcmp.eq.s32.totalorder %v3077_v55, 2147483647 }
 0x81d   :  { %4071 = vst.msk [vmem:[%s8299_s9 + $0x38] sm:$0xff] %vm3511_vm2, %v4039_v24  ;;  %vm3108_vm8 = vcmp.eq.s32.totalorder %v3076_v44, 2147483647  ;;  %v2807_v43 = vshll.u32 %v2806_v12, 16  ;;  %v2821_v18 = vcvt.f32.s32 %v8015_v56  ;;  %v8160_v12 = vld [vmem:[%s8298_s8] ss:$0 sm:$0xff] }
 0x81e   :  { %v3808_v14 = vadd.f32 %v7958_v41, %v3747_v35 }
 0x820   :  { %v3840_v45 = vmax.f32 %v3808_v14, 0.0 }
 0x821   :  { %v4458_v50 = vpop.eup %4457 }
 0x822   :  { %v3173_v27 = vmul.f32 %v4458_v50, %v3045_v62  ;;  %v4460_v20 = vpop.eup %4459  ;;  %v3606_v53 = vpop.f32.mrf.mxu1 }
 0x823   :  { %v3172_v63 = vmul.f32 %v4460_v20, %v3044_v51  ;;  %v3749_v28 = vadd.f32 %v3748_v31, %v3606_v53  ;;  %v3466_v51 = vld [vmem:[%s8294_s1 + $0xc8] sm:$0xff]  ;;  %v2822_v31 = vshll.u32 %v2821_v18, 16 }
 0x824   :  { %vm3205_vm6 = vcmp.ne.f32.partialorder %v3173_v27, %v3173_v27  ;;  %v3485_v50 = vpack.c.bf16 %v3466_v51, %v3465_v59 }
 0x825   :  { %v3237_v16 = vsel %vm3205_vm6, 1.0, %v3173_v27  ;;  %vm3204_vm11 = vcmp.ne.f32.partialorder %v3172_v63, %v3172_v63  ;;  %v3809_v32 = vadd.f32 %v7958_v41, %v3749_v28 }
 0x826   :  { %v3269_v26 = vsel %vm3109_vm10, %v3237_v16, 0.0  ;;  %v3236_v1 = vsel %vm3204_vm11, 1.0, %v3172_v63  ;;  %4148 = vmatmul.msk.bf16.gmra.mxu2 %vm3649_vm3, %v3485_v50 }
 0x827   :  { %v3268_v39 = vsel %vm3108_vm8, %v3236_v1, 0.0  ;;  %v3841_v10 = vmax.f32 %v3809_v32, 0.0 }
 0x828   :  { %v3298_v29 = vpack.c.bf16 %v3269_v26, %v3268_v39 }
 0x829   :  { %v3870_v33 = vpack.c.bf16 %v3841_v10, %v3840_v45 }
 0x82a   :  { %4114 = vmatmul.msk.bf16.gmra.mxu0 %vm871_vm0, %v3298_v29 }
 0x82b   :  { %4167 = vmatmul.msk.bf16.gmra.mxu3 %vm3894_vm4, %v3870_v33  ;;  %v3468_v33 = vld [vmem:[%s8294_s1 + $0xd8] sm:$0xff] }
 0x82f   :  { %v3412_v38 = vpop.f32.mrf.mxu0  ;;  %v3972_v61 = vpop.f32.mrf.mxu3 }
 0x830   :  { %v3973_v22 = vadd.f32 %v7791_v0, %v3972_v61 }
 0x832   :  { %v3609_v58 = vpop.f32.mrf.mxu1  ;;  %v4040_v34 = vmax.f32 %v3973_v22, 0.0 }
 0x833   :  { %v3752_v17 = vadd.f32 %v3751_v52, %v3609_v58 }
 0x834   :  { %4072 = vst.msk [vmem:[%s8299_s9 + $0x40] sm:$0xff] %vm3511_vm2, %v4040_v34 }
 0x835   :  { %v3810_v42 = vadd.f32 %v7958_v41, %v3752_v17 }
 0x837   :  { %v3414_v57 = vpop.f32.mrf.mxu0  ;;  %v3974_v2 = vpop.f32.mrf.mxu3  ;;  %v3842_v46 = vmax.f32 %v3810_v42, 0.0 }
 0x838   :  { %v3500_v36 = vpack.c.bf16 %v3414_v57, %v3412_v38  ;;  %v3975_v54 = vadd.f32 %v7791_v0, %v3974_v2 }
 0x83a   :  { %v3611_v3 = vpop.f32.mrf.mxu1  ;;  %4131 = vmatmul.msk.bf16.gmra.mxu1 %vm3511_vm2, %v3500_v36  ;;  %v4041_v25 = vmax.f32 %v3975_v54, 0.0  ;;  %v3469_v54 = vld [vmem:[%s8294_s1 + $0xe0] sm:$0xff] }
 0x83b   :  { %v3754_v6 = vadd.f32 %v3753_v21, %v3611_v3  ;;  %v3470_v3 = vld [vmem:[%s8294_s1 + $0xe8] sm:$0xff] }
 0x83c   :  { %4073 = vst.msk [vmem:[%s8299_s9 + $0x48] sm:$0xff] %vm3511_vm2, %v4041_v25  ;;  %v3487_v42 = vpack.c.bf16 %v3470_v3, %v3469_v54 }
 0x83d   :  { %v3811_v47 = vadd.f32 %v7958_v41, %v3754_v6 }
 0x83f   :  { %v3843_v60 = vmax.f32 %v3811_v47, 0.0 }
 0x841   :  { %v3871_v49 = vpack.c.bf16 %v3843_v60, %v3842_v46 }
 0x843   :  { %4168 = vmatmul.msk.bf16.gmra.mxu3 %vm3894_vm4, %v3871_v49 }
 0x847   :  { %v3977_v7 = vpop.f32.mrf.mxu3 }
 0x848   :  { %v3978_v5 = vadd.f32 %v7791_v0, %v3977_v7 }
 0x84a   :  { %v4042_v23 = vmax.f32 %v3978_v5, 0.0  ;;  %v2804_v8 = vpop.xlane.xlu1 %2803 }
 0x84b   :  { %v2805_v30 = vcvt.f32.s32 %v2804_v8 }
 0x84c   :  { %4074 = vst.msk [vmem:[%s8299_s9 + $0x50] sm:$0xff] %vm3511_vm2, %v4042_v23 }
 0x84d   :  { %v2808_v62 = vadd.s32 %v2807_v43, %v2805_v30 }
 0x84f   :  { %v2886_v15 = vand.u32 4294967232, %v2808_v62  ;;  %v3979_v19 = vpop.f32.mrf.mxu3  ;;  %vm2854_vm14 = vcmp.eq.s32.totalorder %v7803_v13, %v2808_v62 }
 0x850   :  { %v3980_v48 = vadd.f32 %v7791_v0, %v3979_v19  ;;  %v3078_v56 = vsel %vm2854_vm14, 2147483647, %v7803_v13  ;;  %v3467_v13 = vld [vmem:[%s8294_s1 + $0xd0] sm:$0xff] }
 0x851   :  { %4461 = vrcp.f32 %v2886_v15  ;;  %vm3110_vm15 = vcmp.eq.s32.totalorder %v3078_v56, 2147483647  ;;  %v3486_v52 = vpack.c.bf16 %v3468_v33, %v3467_v13 }
 0x852   :  { %v4043_v24 = vmax.f32 %v3980_v48, 0.0 }
 0x853   :  { %4149 = vmatmul.msk.bf16.gmra.mxu2 %vm3649_vm3, %v3486_v52 }
 0x854   :  { %4075 = vst.msk [vmem:[%s8299_s9 + $0x58] sm:$0xff] %vm3511_vm2, %v4043_v24 }
 0x857   :  { %v4462_v55 = vpop.eup %4461 }
 0x858   :  { %v2982_v0 = vadd.f32 %v4462_v55, %v7829_v4  ;;  %v3014_v27 = vsel %vm2854_vm14, %v4462_v55, 0.0 }
 0x859   :  { %v3046_v35 = vadd.f32 %v3014_v27, %v7840_v9  ;;  %v2819_v20 = vpop.xlane.xlu2 %2818 }
 0x85a   :  { %4463 = vrcp.f32 %v2982_v0  ;;  %v2820_v44 = vcvt.f32.s32 %v2819_v20 }
 0x85c   :  { %v2823_v63 = vadd.s32 %v2822_v31, %v2820_v44 }
 0x85e   :  { %v2887_v16 = vand.u32 4294967232, %v2823_v63  ;;  %vm2855_vm5 = vcmp.eq.s32.totalorder %v7860_v37, %v2823_v63 }
 0x85f   :  { %v3079_v45 = vsel %vm2855_vm5, 2147483647, %v7860_v37 }
 0x860   :  { %v4464_v53 = vpop.eup %4463  ;;  %4465 = vrcp.f32 %v2887_v16  ;;  %vm3111_vm12 = vcmp.eq.s32.totalorder %v3079_v45, 2147483647  ;;  %v3471_v16 = vld [vmem:[%s8294_s1 + $0xf0] sm:$0xff] }
 0x861   :  { %v3174_v26 = vmul.f32 %v4464_v53, %v3046_v35  ;;  %v3472_v53 = vld [vmem:[%s8294_s1 + $0xf8] sm:$0xff] }
 0x862   :  { %v3756_v37 = vpop.f32.mrf.mxu2 }
 0x863   :  { %vm3206_vm1 = vcmp.ne.f32.partialorder %v3174_v26, %v3174_v26  ;;  %4150 = vmatmul.msk.bf16.gmra.mxu2 %vm3649_vm3, %v3487_v42 }
 0x864   :  { %v3238_v14 = vsel %vm3206_vm1, 1.0, %v3174_v26  ;;  %v3488_v26 = vpack.c.bf16 %v3472_v53, %v3471_v16 }
 0x865   :  { %v3270_v4 = vsel %vm3110_vm15, %v3238_v14, 0.0 }
 0x866   :  { %v4466_v28 = vpop.eup %4465 }
 0x867   :  { %v2983_v9 = vadd.f32 %v4466_v28, %v7874_v11  ;;  %v3015_v1 = vsel %vm2855_vm5, %v4466_v28, 0.0 }
 0x868   :  { %v3047_v39 = vadd.f32 %v3015_v1, %v7882_v40 }
 0x869   :  { %4467 = vrcp.f32 %v2983_v9 }
 0x86a   :  { %v3758_v17 = vpop.f32.mrf.mxu2 }
 0x86e   :  { %v3417_v32 = vpop.f32.mrf.mxu0 }
 0x86f   :  { %v4468_v29 = vpop.eup %4467 }
 0x870   :  { %v3175_v10 = vmul.f32 %v4468_v29, %v3047_v39 }
 0x872   :  { %vm3207_vm7 = vcmp.ne.f32.partialorder %v3175_v10, %v3175_v10  ;;  %v3761_v60 = vpop.f32.mrf.mxu2 }
 0x873   :  { %v3239_v11 = vsel %vm3207_vm7, 1.0, %v3175_v10  ;;  %4151 = vmatmul.msk.bf16.gmra.mxu2 %vm3649_vm3, %v3488_v26 }
 0x874   :  { %v3271_v38 = vsel %vm3111_vm12, %v3239_v11, 0.0 }
 0x875   :  { %v3299_v40 = vpack.c.bf16 %v3271_v38, %v3270_v4 }
 0x876   :  { %v3419_v61 = vpop.f32.mrf.mxu0 }
 0x877   :  { %v3501_v22 = vpack.c.bf16 %v3419_v61, %v3417_v32  ;;  %4115 = vmatmul.msk.bf16.gmra.mxu0 %vm871_vm0, %v3299_v40 }
 0x879   :  { %4132 = vmatmul.msk.bf16.gmra.mxu1 %vm3511_vm2, %v3501_v22 }
 0x87a   :  { %v3763_v19 = vpop.f32.mrf.mxu2 }
 0x87f   :  { %v3614_v58 = vpop.f32.mrf.mxu1 }
 0x880   :  { %v3757_v34 = vadd.f32 %v3756_v37, %v3614_v58 }
 0x882   :  { %v3812_v36 = vadd.f32 %v7958_v41, %v3757_v34 }
 0x884   :  { %v3844_v6 = vmax.f32 %v3812_v36, 0.0 }
 0x887   :  { %v3616_v57 = vpop.f32.mrf.mxu1 }
 0x888   :  { %v3759_v21 = vadd.f32 %v3758_v17, %v3616_v57  ;;  %v3766_v63 = vpop.f32.mrf.mxu2 }
 0x88a   :  { %v3813_v2 = vadd.f32 %v7958_v41, %v3759_v21 }
 0x88c   :  { %v3845_v25 = vmax.f32 %v3813_v2, 0.0 }
 0x88e   :  { %v3872_v47 = vpack.c.bf16 %v3845_v25, %v3844_v6 }
 0x890   :  { %4169 = vmatmul.msk.bf16.gmra.mxu3 %vm3894_vm4, %v3872_v47  ;;  %v3422_v46 = vpop.f32.mrf.mxu0  ;;  %v3768_v39 = vpop.f32.mrf.mxu2 }
 0x895   :  { %v3982_v49 = vpop.f32.mrf.mxu3 }
 0x896   :  { %v3983_v7 = vadd.f32 %v8160_v12, %v3982_v49 }
 0x898   :  { %v4044_v5 = vmax.f32 %v3983_v7, 0.0  ;;  %v3424_v8 = vpop.f32.mrf.mxu0 }
 0x899   :  { %v3619_v23 = vpop.f32.mrf.mxu1  ;;  %v3502_v43 = vpack.c.bf16 %v3424_v8, %v3422_v46 }
 0x89a   :  { %4076 = vst.msk [vmem:[%s8299_s9 + $0x60] sm:$0xff] %vm3511_vm2, %v4044_v5  ;;  %v3762_v30 = vadd.f32 %v3761_v60, %v3619_v23 }
 0x89b   :  { %4133 = vmatmul.msk.bf16.gmra.mxu1 %vm3511_vm2, %v3502_v43 }
 0x89c   :  { %v3814_v59 = vadd.f32 %v7958_v41, %v3762_v30 }
 0x89d   :  { %v3984_v62 = vpop.f32.mrf.mxu3 }
 0x89e   :  { %v3985_v15 = vadd.f32 %v8160_v12, %v3984_v62  ;;  %v3846_v50 = vmax.f32 %v3814_v59, 0.0 }
 0x8a0   :  { %v4045_v48 = vmax.f32 %v3985_v15, 0.0 }
 0x8a1   :  { %v3621_v24 = vpop.f32.mrf.mxu1 }
 0x8a2   :  { %v3764_v51 = vadd.f32 %v3763_v19, %v3621_v24  ;;  %4077 = vst.msk [vmem:[%s8299_s9 + $0x68] sm:$0xff] %vm3511_vm2, %v4045_v48 }
 0x8a4   :  { %v3815_v18 = vadd.f32 %v7958_v41, %v3764_v51 }
 0x8a6   :  { %v3847_v55 = vmax.f32 %v3815_v18, 0.0 }
 0x8a7   :  { %v3427_v0 = vpop.f32.mrf.mxu0 }
 0x8a8   :  { %v3873_v27 = vpack.c.bf16 %v3847_v55, %v3846_v50 }
 0x8a9   :  { %v3771_v58 = vpop.f32.mrf.mxu2 }
 0x8aa   :  { %4170 = vmatmul.msk.bf16.gmra.mxu3 %vm3894_vm4, %v3873_v27 }
 0x8ae   :  { %v3987_v20 = vpop.f32.mrf.mxu3 }
 0x8af   :  { %v3429_v35 = vpop.f32.mrf.mxu0  ;;  %v3988_v44 = vadd.f32 %v8160_v12, %v3987_v20 }
 0x8b0   :  { %v3503_v31 = vpack.c.bf16 %v3429_v35, %v3427_v0 }
 0x8b1   :  { %v4046_v56 = vmax.f32 %v3988_v44, 0.0  ;;  %v3773_v21 = vpop.f32.mrf.mxu2 }
 0x8b2   :  { %4134 = vmatmul.msk.bf16.gmra.mxu1 %vm3511_vm2, %v3503_v31 }
 0x8b3   :  { %4078 = vst.msk [vmem:[%s8299_s9 + $0x70] sm:$0xff] %vm3511_vm2, %v4046_v56 }
 0x8b6   :  { %v3989_v4 = vpop.f32.mrf.mxu3 }
 0x8b7   :  { %v3624_v14 = vpop.f32.mrf.mxu1  ;;  %v3990_v28 = vadd.f32 %v8160_v12, %v3989_v4 }
 0x8b8   :  { %v3767_v1 = vadd.f32 %v3766_v63, %v3624_v14 }
 0x8b9   :  { %v4047_v9 = vmax.f32 %v3990_v28, 0.0 }
 0x8ba   :  { %v3816_v29 = vadd.f32 %v7958_v41, %v3767_v1 }
 0x8bb   :  { %4079 = vst.msk [vmem:[%s8299_s9 + $0x78] sm:$0xff] %vm3511_vm2, %v4047_v9 }
 0x8bc   :  { %v3848_v13 = vmax.f32 %v3816_v29, 0.0 }
 0x8bf   :  { %v3626_v32 = vpop.f32.mrf.mxu1 }
 0x8c0   :  { %v3769_v45 = vadd.f32 %v3768_v39, %v3626_v32 }
 0x8c2   :  { %v3817_v10 = vadd.f32 %v7958_v41, %v3769_v45 }
 0x8c4   :  { %v3849_v33 = vmax.f32 %v3817_v10, 0.0 }
 0x8c6   :  { %v3992_v11 = vpop.f32.mrf.mxu3  ;;  %v3874_v52 = vpack.c.bf16 %v3849_v33, %v3848_v13 }
 0x8c7   :  { %v3993_v38 = vadd.f32 %v8160_v12, %v3992_v11 }
 0x8c8   :  { %4171 = vmatmul.msk.bf16.gmra.mxu3 %vm3894_vm4, %v3874_v52 }
 0x8c9   :  { %v4048_v40 = vmax.f32 %v3993_v38, 0.0 }
 0x8cb   :  { %4080 = vst.msk [vmem:[%s8299_s9 + $0x80] sm:$0xff] %vm3511_vm2, %v4048_v40 }
 0x8ce   :  { %v3994_v61 = vpop.f32.mrf.mxu3 }
 0x8cf   :  { %v3995_v22 = vadd.f32 %v8160_v12, %v3994_v61 }
 0x8d1   :  { %v4049_v37 = vmax.f32 %v3995_v22, 0.0 }
 0x8d3   :  { %4081 = vst.msk [vmem:[%s8299_s9 + $0x88] sm:$0xff] %vm3511_vm2, %v4049_v37 }
 0x8d6   :  { %v3776_v5 = vpop.f32.mrf.mxu2 }
 0x8de   :  { %v3778_v15 = vpop.f32.mrf.mxu2 }
 0x8e6   :  { %v3781_v55 = vpop.f32.mrf.mxu2 }
 0x8ee   :  { %v3783_v16 = vpop.f32.mrf.mxu2 }
 0x8f4   :  { %v3432_v34 = vpop.f32.mrf.mxu0 }
 0x8f6   :  { %v3629_v17 = vpop.f32.mrf.mxu1  ;;  %v3786_v33 = vpop.f32.mrf.mxu2 }
 0x8f7   :  { %v3772_v57 = vadd.f32 %v3771_v58, %v3629_v17 }
 0x8f9   :  { %v3818_v3 = vadd.f32 %v7958_v41, %v3772_v57 }
 0x8fb   :  { %v3850_v25 = vmax.f32 %v3818_v3, 0.0 }
 0x8fc   :  { %v3434_v36 = vpop.f32.mrf.mxu0 }
 0x8fd   :  { %v3504_v2 = vpack.c.bf16 %v3434_v36, %v3432_v34 }
 0x8fe   :  { %v3631_v54 = vpop.f32.mrf.mxu1  ;;  %v3788_v38 = vpop.f32.mrf.mxu2 }
 0x8ff   :  { %v3774_v42 = vadd.f32 %v3773_v21, %v3631_v54  ;;  %4135 = vmatmul.msk.bf16.gmra.mxu1 %vm3511_vm2, %v3504_v2 }
 0x901   :  { %v3819_v6 = vadd.f32 %v7958_v41, %v3774_v42 }
 0x903   :  { %v3851_v47 = vmax.f32 %v3819_v6, 0.0 }
 0x905   :  { %v3875_v46 = vpack.c.bf16 %v3851_v47, %v3850_v25 }
 0x907   :  { %4172 = vmatmul.msk.bf16.gmra.mxu3 %vm3894_vm4, %v3875_v46 }
 0x913   :  { %v3997_v60 = vpop.f32.mrf.mxu3 }
 0x914   :  { %v3998_v49 = vadd.f32 %v8160_v12, %v3997_v60 }
 0x916   :  { %v4050_v7 = vmax.f32 %v3998_v49, 0.0 }
 0x918   :  { %4082 = vst.msk [vmem:[%s8299_s9 + $0x90] sm:$0xff] %vm3511_vm2, %v4050_v7  ;;  %v3634_v23 = vpop.f32.mrf.mxu1 }
 0x919   :  { %v3777_v62 = vadd.f32 %v3776_v5, %v3634_v23 }
 0x91b   :  { %v3999_v8 = vpop.f32.mrf.mxu3  ;;  %v3820_v48 = vadd.f32 %v7958_v41, %v3777_v62 }
 0x91c   :  { %v4000_v43 = vadd.f32 %v8160_v12, %v3999_v8 }
 0x91d   :  { %v3852_v51 = vmax.f32 %v3820_v48, 0.0 }
 0x91e   :  { %v4051_v30 = vmax.f32 %v4000_v43, 0.0 }
 0x920   :  { %4083 = vst.msk [vmem:[%s8299_s9 + $0x98] sm:$0xff] %vm3511_vm2, %v4051_v30  ;;  %v3636_v19 = vpop.f32.mrf.mxu1 }
 0x921   :  { %v3779_v24 = vadd.f32 %v3778_v15, %v3636_v19 }
 0x923   :  { %v3821_v59 = vadd.f32 %v7958_v41, %v3779_v24 }
 0x925   :  { %v3853_v18 = vmax.f32 %v3821_v59, 0.0 }
 0x927   :  { %v3876_v50 = vpack.c.bf16 %v3853_v18, %v3852_v51 }
 0x929   :  { %4173 = vmatmul.msk.bf16.gmra.mxu3 %vm3894_vm4, %v3876_v50 }
 0x92d   :  { %v4002_v0 = vpop.f32.mrf.mxu3 }
 0x92e   :  { %v4003_v27 = vadd.f32 %v8160_v12, %v4002_v0 }
 0x92f   :  { %v3639_v20 = vpop.f32.mrf.mxu1 }
 0x930   :  { %v4052_v35 = vmax.f32 %v4003_v27, 0.0  ;;  %v3782_v31 = vadd.f32 %v3781_v55, %v3639_v20 }
 0x932   :  { %4084 = vst.msk [vmem:[%s8299_s9 + $0xa0] sm:$0xff] %vm3511_vm2, %v4052_v35  ;;  %v3822_v26 = vadd.f32 %v7958_v41, %v3782_v31 }
 0x934   :  { %v3854_v28 = vmax.f32 %v3822_v26, 0.0 }
 0x935   :  { %v4004_v44 = vpop.f32.mrf.mxu3 }
 0x936   :  { %v4005_v63 = vadd.f32 %v8160_v12, %v4004_v44 }
 0x937   :  { %v3641_v56 = vpop.f32.mrf.mxu1 }
 0x938   :  { %v4053_v53 = vmax.f32 %v4005_v63, 0.0  ;;  %v3784_v14 = vadd.f32 %v3783_v16, %v3641_v56 }
 0x93a   :  { %4085 = vst.msk [vmem:[%s8299_s9 + $0xa8] sm:$0xff] %vm3511_vm2, %v4053_v53  ;;  %v3823_v4 = vadd.f32 %v7958_v41, %v3784_v14 }
 0x93c   :  { %v3855_v9 = vmax.f32 %v3823_v4, 0.0 }
 0x93e   :  { %v3877_v1 = vpack.c.bf16 %v3855_v9, %v3854_v28 }
 0x940   :  { %4174 = vmatmul.msk.bf16.gmra.mxu3 %vm3894_vm4, %v3877_v1 }
 0x94b   :  { %v4007_v39 = vpop.f32.mrf.mxu3 }
 0x94c   :  { %v4008_v32 = vadd.f32 %v8160_v12, %v4007_v39 }
 0x94e   :  { %v4054_v29 = vmax.f32 %v4008_v32, 0.0 }
 0x950   :  { %4086 = vst.msk [vmem:[%s8299_s9 + $0xb0] sm:$0xff] %vm3511_vm2, %v4054_v29 }
 0x953   :  { %v4009_v45 = vpop.f32.mrf.mxu3 }
 0x954   :  { %v4010_v10 = vadd.f32 %v8160_v12, %v4009_v45 }
 0x956   :  { %v4055_v13 = vmax.f32 %v4010_v10, 0.0 }
 0x958   :  { %4087 = vst.msk [vmem:[%s8299_s9 + $0xb8] sm:$0xff] %vm3511_vm2, %v4055_v13 }
 0x97c   :  { %v3644_v11 = vpop.f32.mrf.mxu1 }
 0x97d   :  { %v3787_v52 = vadd.f32 %v3786_v33, %v3644_v11 }
 0x97f   :  { %v3824_v61 = vadd.f32 %v7958_v41, %v3787_v52 }
 0x981   :  { %v3856_v58 = vmax.f32 %v3824_v61, 0.0 }
 0x984   :  { %v3646_v40 = vpop.f32.mrf.mxu1 }
 0x985   :  { %v3789_v22 = vadd.f32 %v3788_v38, %v3646_v40 }
 0x987   :  { %v3825_v37 = vadd.f32 %v7958_v41, %v3789_v22 }
 0x989   :  { %v3857_v34 = vmax.f32 %v3825_v37, 0.0 }
 0x98a   :  { %v4012_v17 = vpop.f32.mrf.mxu3 }
 0x98b   :  { %v3878_v57 = vpack.c.bf16 %v3857_v34, %v3856_v58  ;;  %v4013_v36 = vadd.f32 %v8160_v12, %v4012_v17 }
 0x98d   :  { %v4056_v21 = vmax.f32 %v4013_v36, 0.0  ;;  %4175 = vmatmul.msk.bf16.gmra.mxu3 %vm3894_vm4, %v3878_v57 }
 0x98f   :  { %4088 = vst.msk [vmem:[%s8299_s9 + $0xc0] sm:$0xff] %vm3511_vm2, %v4056_v21 }
 0x992   :  { %v4014_v2 = vpop.f32.mrf.mxu3 }
 0x993   :  { %v4015_v54 = vadd.f32 %v8160_v12, %v4014_v2 }
 0x995   :  { %v4057_v3 = vmax.f32 %v4015_v54, 0.0 }
 0x997   :  { %4089 = vst.msk [vmem:[%s8299_s9 + $0xc8] sm:$0xff] %vm3511_vm2, %v4057_v3 }
 0x9ac   :  { %v4017_v41 = vpop.f32.mrf.mxu3 }
 0x9ad   :  { %v4018_v42 = vadd.f32 %v8160_v12, %v4017_v41 }
 0x9af   :  { %v4058_v6 = vmax.f32 %v4018_v42, 0.0 }
 0x9b1   :  { %4090 = vst.msk [vmem:[%s8299_s9 + $0xd0] sm:$0xff] %vm3511_vm2, %v4058_v6 }
 0x9b4   :  { %v4019_v25 = vpop.f32.mrf.mxu3 }
 0x9b5   :  { %v4020_v47 = vadd.f32 %v8160_v12, %v4019_v25 }
 0x9b7   :  { %v4059_v46 = vmax.f32 %v4020_v47, 0.0 }
 0x9b9   :  { %4091 = vst.msk [vmem:[%s8299_s9 + $0xd8] sm:$0xff] %vm3511_vm2, %v4059_v46 }
 0x9c3   :  { %v4022_v60 = vpop.f32.mrf.mxu3 }
 0x9c4   :  { %v4023_v49 = vadd.f32 %v8160_v12, %v4022_v60 }
 0x9c6   :  { %v4060_v7 = vmax.f32 %v4023_v49, 0.0 }
 0x9c8   :  { %4092 = vst.msk [vmem:[%s8299_s9 + $0xe0] sm:$0xff] %vm3511_vm2, %v4060_v7 }
 0x9cb   :  { %v4024_v5 = vpop.f32.mrf.mxu3 }
 0x9cc   :  { %v4025_v23 = vadd.f32 %v8160_v12, %v4024_v5 }
 0x9ce   :  { %v4061_v8 = vmax.f32 %v4025_v23, 0.0 }
 0x9d0   :  { %4093 = vst.msk [vmem:[%s8299_s9 + $0xe8] sm:$0xff] %vm3511_vm2, %v4061_v8 }
 0xa10   :  { %v4027_v43 = vpop.f32.mrf.mxu3 }
 0xa11   :  { %v4028_v30 = vadd.f32 %v8160_v12, %v4027_v43 }
 0xa13   :  { %v4062_v62 = vmax.f32 %v4028_v30, 0.0 }
 0xa15   :  { %4094 = vst.msk [vmem:[%s8299_s9 + $0xf0] sm:$0xff] %vm3511_vm2, %v4062_v62 }
 0xa18   :  { %v4029_v15 = vpop.f32.mrf.mxu3 }
 0xa19   :  { %v4030_v19 = vadd.f32 %v8160_v12, %v4029_v15 }
 0xa1b   :  { %v4063_v48 = vmax.f32 %v4030_v19, 0.0 }
 0xa1d   :  { %4095 = vst.msk [vmem:[%s8299_s9 + $0xf8] sm:$0xff] %vm3511_vm2, %v4063_v48 }

</bundles_post_ra>
